<compile_context>
chip_gen: v7x
topology: tpu7x:2x2x1
jax: 0.10.0
libtpu: 0.0.40
codegen_flags: <defaults>
</compile_context>

<pallas_src>
import functools

import jax
import jax.numpy as jnp
from jax import lax
from jax.experimental import pallas as pl
from jax.experimental.pallas import tpu as pltpu


def _round_up(x, m):
    return ((x + m - 1) // m) * m


def _row_tile(M, tm_max=256):
    """Row-tile height: multiple of 16 (bf16 sublanes), >=2 blocks when M>=32
    (v7x megacore), minimal padding waste on the last block."""
    if M <= 32:
        return M                      # single full block (always legal)
    nb_min = max(pl.cdiv(M, tm_max), 2)
    best_tm, best_waste = None, None
    for nb in range(nb_min, nb_min + 4):
        tm = _round_up(pl.cdiv(M, nb), 16)
        waste = pl.cdiv(M, tm) * tm - M
        if best_waste is None or waste < best_waste:
            best_tm, best_waste = tm, waste
    return best_tm


# ----------------------------------------------------------------------------
# Pallas kernels
# ----------------------------------------------------------------------------
def _matmul_bias_relu_kernel(x_ref, w_ref, b_ref, o_ref):
    acc = jnp.dot(x_ref[...], w_ref[...], preferred_element_type=jnp.float32)
    acc = jnp.maximum(acc + b_ref[...], 0.0)
    o_ref[...] = acc.astype(o_ref.dtype)


def matmul_bias_relu(x, w, b_row, *, out_dtype=jnp.bfloat16, tm_max=256):
    """y = relu(x @ w + b), tiled over rows of x; partial last block, no pads."""
    M, K = x.shape
    Kw, N = w.shape
    assert K == Kw and b_row.shape == (1, N)
    tm = _row_tile(M, tm_max)
    return pl.pallas_call(
        _matmul_bias_relu_kernel,
        out_shape=jax.ShapeDtypeStruct((M, N), out_dtype),
        grid_spec=pltpu.PrefetchScalarGridSpec(
            num_scalar_prefetch=0,
            grid=(pl.cdiv(M, tm),),
            in_specs=[
                pl.BlockSpec((tm, K), lambda i: (i, 0)),
                pl.BlockSpec((K, N), lambda i: (0, 0)),
                pl.BlockSpec((1, N), lambda i: (0, 0)),
            ],
            out_specs=pl.BlockSpec((tm, N), lambda i: (i, 0)),
        ),
        compiler_params=pltpu.CompilerParams(
            dimension_semantics=("parallel",),   # megacore row-split on v7x
        ),
    )(x, w, b_row)


def _fc_heads_kernel(f_ref, wf_ref, bf_ref, wh_ref, bh_ref, v_ref, lp_ref, *,
                     action_size):
    # FC feature layer (bf16 inputs, f32 accumulate) + ReLU
    feats = jnp.dot(f_ref[...], wf_ref[...], preferred_element_type=jnp.float32)
    feats = jnp.maximum(feats + bf_ref[...], 0.0)
    # One lane-dense matmul for both heads: cols [0, A) = actor logits,
    # col A = critic value, remaining cols are zero padding.
    head = jnp.dot(feats.astype(jnp.bfloat16), wh_ref[...],
                   preferred_element_type=jnp.float32) + bh_ref[...]
    A = action_size
    v_ref[...] = head[:, A:A + 1].astype(v_ref.dtype)
    # actor logits -> log-softmax (Categorical over logits, use_probs=False)
    logits = head[:, :A]
    m = jnp.max(logits, axis=-1, keepdims=True)
    z = logits - m
    lse = jnp.log(jnp.sum(jnp.exp(z), axis=-1, keepdims=True))
    lp_ref[...] = (z - lse).astype(lp_ref.dtype)


def fc_and_heads(x, fc_w, fc_b, head_w, head_b, *, action_size):
    """Fused: feats = relu(x @ fc_w + fc_b); one merged head matmul gives
    value and actor logits; log-softmax applied in-kernel. One pallas_call."""
    B, K = x.shape
    H = fc_w.shape[1]
    Np = head_w.shape[1]
    tb = _row_tile(B)
    kernel = functools.partial(_fc_heads_kernel, action_size=action_size)
    value, log_probs = pl.pallas_call(
        kernel,
        out_shape=(
            jax.ShapeDtypeStruct((B, 1), jnp.float32),
            jax.ShapeDtypeStruct((B, action_size), jnp.float32),
        ),
        grid_spec=pltpu.PrefetchScalarGridSpec(
            num_scalar_prefetch=0,
            grid=(pl.cdiv(B, tb),),
            in_specs=[
                pl.BlockSpec((tb, K), lambda i: (i, 0)),
                pl.BlockSpec((K, H), lambda i: (0, 0)),
                pl.BlockSpec((1, H), lambda i: (0, 0)),
                pl.BlockSpec((H, Np), lambda i: (0, 0)),
                pl.BlockSpec((1, Np), lambda i: (0, 0)),
            ],
            out_specs=[
                pl.BlockSpec((tb, 1), lambda i: (i, 0)),
                pl.BlockSpec((tb, action_size), lambda i: (i, 0)),
            ],
        ),
        compiler_params=pltpu.CompilerParams(
            dimension_semantics=("parallel",),
            # unpadded fc_w (~3.1 MiB bf16) double-buffered + row tiles fits
            # comfortably; keep the scoped budget tight for v7x (64 MiB/TC).
            vmem_limit_bytes=24 << 20,
        ),
    )(x, fc_w, fc_b, head_w, head_b)
    return value, log_probs


# ----------------------------------------------------------------------------
# Plain-JAX glue: slice-based NHWC im2col (zero-FLOP copies, no gathers).
# Only the REAL input channels are sliced, so no zero rows enter K.
# ----------------------------------------------------------------------------
def _im2col_nhwc(x, kh, kw, stride, c_take):
    B, H, W, C = x.shape
    assert c_take <= C
    Ho = (H - kh) // stride + 1
    Wo = (W - kw) // stride + 1
    cols = []
    for di in range(kh):
        for dj in range(kw):
            sl = lax.slice(
                x,
                (0, di, dj, 0),
                (B, di + (Ho - 1) * stride + 1, dj + (Wo - 1) * stride + 1, c_take),
                (1, stride, stride, 1),
            )
            cols.append(sl)                       # (B, Ho, Wo, c_take)
    patches = jnp.concatenate(cols, axis=-1)      # (B, Ho, Wo, kh*kw*c_take)
    return patches.reshape(B * Ho * Wo, kh * kw * c_take), Ho, Wo


def conv2d_relu_nhwc(x, w_mat, b_row, *, kh, kw, stride, c_in):
    """NHWC valid-padding conv + bias + ReLU via im2col matmul (Pallas MXU)."""
    B = x.shape[0]
    patches, Ho, Wo = _im2col_nhwc(x, kh, kw, stride, c_in)
    cout = w_mat.shape[1]
    y = matmul_bias_relu(patches, w_mat, b_row, out_dtype=jnp.bfloat16)
    return y.reshape(B, Ho, Wo, cout)


# ----------------------------------------------------------------------------
# Parameters (PyTorch-layout init, then one-time kernel-layout preparation)
# ----------------------------------------------------------------------------
def init_params(key, hidden_size=512, action_size=6):
    ks = jax.random.split(key, 12)

    def lin(kw_, kb_, fan_in, shape_w, shape_b):
        s = 1.0 / jnp.sqrt(fan_in)
        return (jax.random.uniform(kw_, shape_w, jnp.float32, -s, s),
                jax.random.uniform(kb_, shape_b, jnp.float32, -s, s))

    p = {}
    p["c1_w"], p["c1_b"] = lin(ks[0], ks[1], 4 * 8 * 8, (32, 4, 8, 8), (32,))
    p["c2_w"], p["c2_b"] = lin(ks[2], ks[3], 32 * 4 * 4, (64, 32, 4, 4), (64,))
    p["c3_w"], p["c3_b"] = lin(ks[4], ks[5], 64 * 3 * 3, (64, 64, 3, 3), (64,))
    p["fc_w"], p["fc_b"] = lin(ks[6], ks[7], 64 * 7 * 7, (64 * 7 * 7, hidden_size), (hidden_size,))
    p["critic_w"], p["critic_b"] = lin(ks[8], ks[9], hidden_size, (hidden_size, 1), (1,))
    p["actor_w"], p["actor_b"] = lin(ks[10], ks[11], hidden_size, (hidden_size, action_size), (action_size,))
    return p


def prepare_params(p, *, cpad=128):
    """One-time (host/XLA) conversion:
      * conv1 weight refolded for the stride-4 space-to-depth input (2x2 conv
        over 64 channels) with 1/255 folded in,
      * conv weights -> (kh*kw*cin_real, 128) bf16 matrices (N padded to 128
        lanes, K NOT padded),
      * fc rows permuted to the NHWC flatten order of the REAL 64 channels,
      * critic + actor merged into one (hidden, 128) bf16 head weight."""
    hidden = p["fc_w"].shape[1]
    A = p["actor_w"].shape[1]

    def conv_mat(w, b):
        cout, cin, kh, kw = w.shape
        wt = jnp.transpose(w, (2, 3, 1, 0))                          # (kh,kw,cin,cout)
        wt = jnp.pad(wt, ((0, 0), (0, 0), (0, 0), (0, cpad - cout)))
        w_mat = wt.reshape(kh * kw * cin, cpad).astype(jnp.bfloat16)
        b_row = jnp.pad(b, (0, cpad - cout)).reshape(1, cpad).astype(jnp.float32)
        return w_mat, b_row

    q = {}

    # conv1: 8x8/stride-4 over 4 channels  ==  2x2/stride-1 over the
    # space-to-depth input with 64 channels (channel index = p*16 + q*4 + c).
    w1 = jnp.transpose(p["c1_w"], (2, 3, 1, 0)) * (1.0 / 255.0)      # (8,8,4,32)
    w1 = w1.reshape(2, 4, 2, 4, 4, 32)                               # (pi,p,pj,q,c,cout)
    w1 = jnp.transpose(w1, (0, 2, 1, 3, 4, 5))                       # (pi,pj,p,q,c,cout)
    w1 = w1.reshape(2, 2, 64, 32)
    w1 = jnp.pad(w1, ((0, 0), (0, 0), (0, 0), (0, cpad - 32)))
    q["c1_w"] = w1.reshape(2 * 2 * 64, cpad).astype(jnp.bfloat16)    # (256,128)
    q["c1_b"] = jnp.pad(p["c1_b"], (0, cpad - 32)).reshape(1, cpad).astype(jnp.float32)

    q["c2_w"], q["c2_b"] = conv_mat(p["c2_w"], p["c2_b"])            # (512,128)
    q["c3_w"], q["c3_b"] = conv_mat(p["c3_w"], p["c3_b"])            # (576,128)

    # fc rows: NCHW flatten order (c*49 + h*7 + w) -> NHWC flatten order of
    # the real 64 channels (h*448 + w*64 + c).  No channel padding.
    fc = p["fc_w"].reshape(64, 7, 7, hidden)
    fc = jnp.transpose(fc, (1, 2, 0, 3))                             # (7,7,64,hidden)
    q["fc_w"] = fc.reshape(7 * 7 * 64, hidden).astype(jnp.bfloat16)  # (3136,512)
    q["fc_b"] = p["fc_b"].reshape(1, hidden).astype(jnp.float32)

    # merged head: cols [0, A) = actor, col A = critic, rest zeros.
    wh = jnp.zeros((hidden, cpad), jnp.float32)
    wh = wh.at[:, :A].set(p["actor_w"]).at[:, A].set(p["critic_w"][:, 0])
    bh = jnp.zeros((1, cpad), jnp.float32)
    bh = bh.at[0, :A].set(p["actor_b"]).at[0, A].set(p["critic_b"][0])
    q["head_w"] = wh.astype(jnp.bfloat16)
    q["head_b"] = bh.astype(jnp.float32)
    return q


# ----------------------------------------------------------------------------
# Forward pass (matches NatureCNN.forward semantics)
# ----------------------------------------------------------------------------
def nature_cnn_forward(params, x, *, action_size=6):
    # x.view(-1, 4, 84, 84).mul(1/255)  -- the 1/255 is folded into c1_w.
    x = x.reshape(-1, 4, 84, 84)
    B = x.shape[0]

    # Space-to-depth by conv1's stride (4): NCHW (B,4,84,84) -> NHWC-ish
    # (B,21,21,64) with channel index p*16 + q*4 + c.  One XLA copy.
    x = x.reshape(B, 4, 21, 4, 21, 4)                 # (b, c, i, p, j, q)
    x = jnp.transpose(x, (0, 2, 4, 3, 5, 1))          # (b, i, j, p, q, c)
    x = x.reshape(B, 21, 21, 64).astype(jnp.bfloat16)

    # NatureFeatures: conv8s4 -> relu -> conv4s2 -> relu -> conv3s1 -> relu -> fc -> relu
    x = conv2d_relu_nhwc(x, params["c1_w"], params["c1_b"],
                         kh=2, kw=2, stride=1, c_in=64)   # (B,20,20,128), 32 real
    x = conv2d_relu_nhwc(x, params["c2_w"], params["c2_b"],
                         kh=4, kw=4, stride=2, c_in=32)   # (B, 9, 9,128), 64 real
    x = conv2d_relu_nhwc(x, params["c3_w"], params["c3_b"],
                         kh=3, kw=3, stride=1, c_in=64)   # (B, 7, 7,128), 64 real
    feats = x[..., :64].reshape(B, 7 * 7 * 64)            # (B, 3136) bf16

    # FC + Critic + Actor + ActionDistribution(use_probs=False) fused:
    # "mass" is returned as normalized log-probabilities of the Categorical.
    value, log_probs = fc_and_heads(
        feats, params["fc_w"], params["fc_b"],
        params["head_w"], params["head_b"], action_size=action_size)
    return log_probs, value


if __name__ == "__main__":
    key = jax.random.PRNGKey(0)
    k_param, k_x = jax.random.split(key)

    ACTION_SIZE = 6
    torch_layout = init_params(k_param, hidden_size=512, action_size=ACTION_SIZE)
    params = prepare_params(torch_layout)

    # batch=2 Atari frames; 84x84 spatial is required by the Nature architecture
    # (the 7x7x64 flatten feeding the 512-unit FC layer).
    x = jax.random.uniform(k_x, (2, 4, 84, 84), jnp.float32, 0.0, 255.0)

    fwd = jax.jit(nature_cnn_forward, static_argnames="action_size")
    mass, value = fwd(params, x, action_size=ACTION_SIZE)
    jax.block_until_ready((mass, value))

    assert mass.shape == (2, ACTION_SIZE)
    assert value.shape == (2, 1)
    # log-probs must normalize per row
    assert jnp.allclose(jnp.sum(jnp.exp(mass.astype(jnp.float32)), axis=-1), 1.0, atol=1e-3)
    print("KERNEL_OK")
</pallas_src>

<mosaic_0001>
module attributes {stable_mosaic.version = 11 : i64} {
  func.func @_matmul_bias_relu_kernel(%arg0: i32, %arg1: memref<160x256xbf16, #tpu.memory_space<vmem>>, %arg2: memref<256x128xbf16, #tpu.memory_space<vmem>>, %arg3: memref<1x128xf32, #tpu.memory_space<vmem>>, %arg4: memref<160x128xbf16, #tpu.memory_space<vmem>>) attributes {dimension_semantics = [#tpu.dimension_semantics<parallel>], iteration_bounds = array<i64: 5>, scalar_prefetch = 0 : i64, scratch_operands = 0 : i64, tpu.core_type = #tpu.core_type<tc>, window_params = [{transform_indices = @transform_0, window_bounds = array<i64: 160, 256>}, {pipeline_mode = #tpu.pipeline_mode<synchronous>, transform_indices = @transform_1, window_bounds = array<i64: 256, 128>}, {pipeline_mode = #tpu.pipeline_mode<synchronous>, transform_indices = @transform_2, window_bounds = array<i64: 1, 128>}, {transform_indices = @transform_3, window_bounds = array<i64: 160, 128>}]} {
    %c0 = arith.constant 0 : index
    %c0_0 = arith.constant 0 : index
    %0 = vector.load %arg1[%c0, %c0_0] : memref<160x256xbf16, #tpu.memory_space<vmem>>, vector<160x256xbf16>
    %c0_1 = arith.constant 0 : index
    %c0_2 = arith.constant 0 : index
    %1 = vector.load %arg2[%c0_1, %c0_2] : memref<256x128xbf16, #tpu.memory_space<vmem>>, vector<256x128xbf16>
    %cst = arith.constant dense<0.000000e+00> : vector<160x128xf32>
    %2 = tpu.matmul %0, %1, %cst {dimension_numbers = #tpu.dot_dimension_numbers<[1], [0], [0], [1], [0, 0, 1, 1], [], []>} : vector<160x256xbf16>, vector<256x128xbf16>, vector<160x128xf32> -> vector<160x128xf32>
    %c0_3 = arith.constant 0 : index
    %c0_4 = arith.constant 0 : index
    %3 = vector.load %arg3[%c0_3, %c0_4] : memref<1x128xf32, #tpu.memory_space<vmem>>, vector<1x128xf32>
    %4 = vector.broadcast %3 : vector<1x128xf32> to vector<160x128xf32>
    %5 = arith.addf %2, %4 : vector<160x128xf32>
    %cst_5 = arith.constant 0.000000e+00 : f32
    %6 = vector.broadcast %cst_5 : f32 to vector<160x128xf32>
    %7 = arith.maximumf %5, %6 : vector<160x128xf32>
    %8 = arith.truncf %7 : vector<160x128xf32> to vector<160x128xbf16>
    %c0_6 = arith.constant 0 : index
    %c0_7 = arith.constant 0 : index
    %9 = vector.load %arg4[%c0_6, %c0_7] : memref<160x128xbf16, #tpu.memory_space<vmem>>, vector<160x128xbf16>
    tpu.vector_store %arg4[%c0_6, %c0_7], %8 {strides = array<i32>} : memref<160x128xbf16, #tpu.memory_space<vmem>>, vector<160x128xbf16>,
    return
  }
  func.func @transform_0(%arg0: i32) -> (i32, i32) {
    %c0_i32 = arith.constant 0 : i32
    %c0_i32_0 = arith.constant 0 : i32
    return %arg0, %c0_i32 : i32, i32
  }
  func.func @transform_1(%arg0: i32) -> (i32, i32) {
    %c0_i32 = arith.constant 0 : i32
    %c0_i32_0 = arith.constant 0 : i32
    %c0_i32_1 = arith.constant 0 : i32
    return %c0_i32, %c0_i32_0 : i32, i32
  }
  func.func @transform_2(%arg0: i32) -> (i32, i32) {
    %c0_i32 = arith.constant 0 : i32
    %c0_i32_0 = arith.constant 0 : i32
    %c0_i32_1 = arith.constant 0 : i32
    return %c0_i32, %c0_i32_0 : i32, i32
  }
  func.func @transform_3(%arg0: i32) -> (i32, i32) {
    %c0_i32 = arith.constant 0 : i32
    %c0_i32_0 = arith.constant 0 : i32
    return %arg0, %c0_i32 : i32, i32
  }
}

module attributes {stable_mosaic.version = 11 : i64} {
  func.func @_matmul_bias_relu_kernel(%arg0: i32, %arg1: memref<96x512xbf16, #tpu.memory_space<vmem>>, %arg2: memref<512x128xbf16, #tpu.memory_space<vmem>>, %arg3: memref<1x128xf32, #tpu.memory_space<vmem>>, %arg4: memref<96x128xbf16, #tpu.memory_space<vmem>>) attributes {dimension_semantics = [#tpu.dimension_semantics<parallel>], iteration_bounds = array<i64: 2>, scalar_prefetch = 0 : i64, scratch_operands = 0 : i64, tpu.core_type = #tpu.core_type<tc>, window_params = [{transform_indices = @transform_0, window_bounds = array<i64: 96, 512>}, {pipeline_mode = #tpu.pipeline_mode<synchronous>, transform_indices = @transform_1, window_bounds = array<i64: 512, 128>}, {pipeline_mode = #tpu.pipeline_mode<synchronous>, transform_indices = @transform_2, window_bounds = array<i64: 1, 128>}, {transform_indices = @transform_3, window_bounds = array<i64: 96, 128>}]} {
    %c0 = arith.constant 0 : index
    %c0_0 = arith.constant 0 : index
    %0 = vector.load %arg1[%c0, %c0_0] : memref<96x512xbf16, #tpu.memory_space<vmem>>, vector<96x512xbf16>
    %c0_1 = arith.constant 0 : index
    %c0_2 = arith.constant 0 : index
    %1 = vector.load %arg2[%c0_1, %c0_2] : memref<512x128xbf16, #tpu.memory_space<vmem>>, vector<512x128xbf16>
    %cst = arith.constant dense<0.000000e+00> : vector<96x128xf32>
    %2 = tpu.matmul %0, %1, %cst {dimension_numbers = #tpu.dot_dimension_numbers<[1], [0], [0], [1], [0, 0, 1, 1], [], []>} : vector<96x512xbf16>, vector<512x128xbf16>, vector<96x128xf32> -> vector<96x128xf32>
    %c0_3 = arith.constant 0 : index
    %c0_4 = arith.constant 0 : index
    %3 = vector.load %arg3[%c0_3, %c0_4] : memref<1x128xf32, #tpu.memory_space<vmem>>, vector<1x128xf32>
    %4 = vector.broadcast %3 : vector<1x128xf32> to vector<96x128xf32>
    %5 = arith.addf %2, %4 : vector<96x128xf32>
    %cst_5 = arith.constant 0.000000e+00 : f32
    %6 = vector.broadcast %cst_5 : f32 to vector<96x128xf32>
    %7 = arith.maximumf %5, %6 : vector<96x128xf32>
    %8 = arith.truncf %7 : vector<96x128xf32> to vector<96x128xbf16>
    %c0_6 = arith.constant 0 : index
    %c0_7 = arith.constant 0 : index
    %9 = vector.load %arg4[%c0_6, %c0_7] : memref<96x128xbf16, #tpu.memory_space<vmem>>, vector<96x128xbf16>
    tpu.vector_store %arg4[%c0_6, %c0_7], %8 {strides = array<i32>} : memref<96x128xbf16, #tpu.memory_space<vmem>>, vector<96x128xbf16>,
    return
  }
  func.func @transform_0(%arg0: i32) -> (i32, i32) {
    %c0_i32 = arith.constant 0 : i32
    %c0_i32_0 = arith.constant 0 : i32
    return %arg0, %c0_i32 : i32, i32
  }
  func.func @transform_1(%arg0: i32) -> (i32, i32) {
    %c0_i32 = arith.constant 0 : i32
    %c0_i32_0 = arith.constant 0 : i32
    %c0_i32_1 = arith.constant 0 : i32
    return %c0_i32, %c0_i32_0 : i32, i32
  }
  func.func @transform_2(%arg0: i32) -> (i32, i32) {
    %c0_i32 = arith.constant 0 : i32
    %c0_i32_0 = arith.constant 0 : i32
    %c0_i32_1 = arith.constant 0 : i32
    return %c0_i32, %c0_i32_0 : i32, i32
  }
  func.func @transform_3(%arg0: i32) -> (i32, i32) {
    %c0_i32 = arith.constant 0 : i32
    %c0_i32_0 = arith.constant 0 : i32
    return %arg0, %c0_i32 : i32, i32
  }
}

module attributes {stable_mosaic.version = 11 : i64} {
  func.func @_matmul_bias_relu_kernel(%arg0: i32, %arg1: memref<64x576xbf16, #tpu.memory_space<vmem>>, %arg2: memref<576x128xbf16, #tpu.memory_space<vmem>>, %arg3: memref<1x128xf32, #tpu.memory_space<vmem>>, %arg4: memref<64x128xbf16, #tpu.memory_space<vmem>>) attributes {dimension_semantics = [#tpu.dimension_semantics<parallel>], iteration_bounds = array<i64: 2>, scalar_prefetch = 0 : i64, scratch_operands = 0 : i64, tpu.core_type = #tpu.core_type<tc>, window_params = [{transform_indices = @transform_0, window_bounds = array<i64: 64, 576>}, {pipeline_mode = #tpu.pipeline_mode<synchronous>, transform_indices = @transform_1, window_bounds = array<i64: 576, 128>}, {pipeline_mode = #tpu.pipeline_mode<synchronous>, transform_indices = @transform_2, window_bounds = array<i64: 1, 128>}, {transform_indices = @transform_3, window_bounds = array<i64: 64, 128>}]} {
    %c0 = arith.constant 0 : index
    %c0_0 = arith.constant 0 : index
    %0 = vector.load %arg1[%c0, %c0_0] : memref<64x576xbf16, #tpu.memory_space<vmem>>, vector<64x576xbf16>
    %c0_1 = arith.constant 0 : index
    %c0_2 = arith.constant 0 : index
    %1 = vector.load %arg2[%c0_1, %c0_2] : memref<576x128xbf16, #tpu.memory_space<vmem>>, vector<576x128xbf16>
    %cst = arith.constant dense<0.000000e+00> : vector<64x128xf32>
    %2 = tpu.matmul %0, %1, %cst {dimension_numbers = #tpu.dot_dimension_numbers<[1], [0], [0], [1], [0, 0, 1, 1], [], []>} : vector<64x576xbf16>, vector<576x128xbf16>, vector<64x128xf32> -> vector<64x128xf32>
    %c0_3 = arith.constant 0 : index
    %c0_4 = arith.constant 0 : index
    %3 = vector.load %arg3[%c0_3, %c0_4] : memref<1x128xf32, #tpu.memory_space<vmem>>, vector<1x128xf32>
    %4 = vector.broadcast %3 : vector<1x128xf32> to vector<64x128xf32>
    %5 = arith.addf %2, %4 : vector<64x128xf32>
    %cst_5 = arith.constant 0.000000e+00 : f32
    %6 = vector.broadcast %cst_5 : f32 to vector<64x128xf32>
    %7 = arith.maximumf %5, %6 : vector<64x128xf32>
    %8 = arith.truncf %7 : vector<64x128xf32> to vector<64x128xbf16>
    %c0_6 = arith.constant 0 : index
    %c0_7 = arith.constant 0 : index
    %9 = vector.load %arg4[%c0_6, %c0_7] : memref<64x128xbf16, #tpu.memory_space<vmem>>, vector<64x128xbf16>
    tpu.vector_store %arg4[%c0_6, %c0_7], %8 {strides = array<i32>} : memref<64x128xbf16, #tpu.memory_space<vmem>>, vector<64x128xbf16>,
    return
  }
  func.func @transform_0(%arg0: i32) -> (i32, i32) {
    %c0_i32 = arith.constant 0 : i32
    %c0_i32_0 = arith.constant 0 : i32
    return %arg0, %c0_i32 : i32, i32
  }
  func.func @transform_1(%arg0: i32) -> (i32, i32) {
    %c0_i32 = arith.constant 0 : i32
    %c0_i32_0 = arith.constant 0 : i32
    %c0_i32_1 = arith.constant 0 : i32
    return %c0_i32, %c0_i32_0 : i32, i32
  }
  func.func @transform_2(%arg0: i32) -> (i32, i32) {
    %c0_i32 = arith.constant 0 : i32
    %c0_i32_0 = arith.constant 0 : i32
    %c0_i32_1 = arith.constant 0 : i32
    return %c0_i32, %c0_i32_0 : i32, i32
  }
  func.func @transform_3(%arg0: i32) -> (i32, i32) {
    %c0_i32 = arith.constant 0 : i32
    %c0_i32_0 = arith.constant 0 : i32
    return %arg0, %c0_i32 : i32, i32
  }
}

module attributes {stable_mosaic.version = 11 : i64} {
  func.func @_fc_heads_kernel(%arg0: i32, %arg1: memref<2x3136xbf16, #tpu.memory_space<vmem>>, %arg2: memref<3136x512xbf16, #tpu.memory_space<vmem>>, %arg3: memref<1x512xf32, #tpu.memory_space<vmem>>, %arg4: memref<512x128xbf16, #tpu.memory_space<vmem>>, %arg5: memref<1x128xf32, #tpu.memory_space<vmem>>, %arg6: memref<2x1xf32, #tpu.memory_space<vmem>>, %arg7: memref<2x6xf32, #tpu.memory_space<vmem>>) attributes {dimension_semantics = [#tpu.dimension_semantics<parallel>], iteration_bounds = array<i64: 1>, scalar_prefetch = 0 : i64, scratch_operands = 0 : i64, tpu.core_type = #tpu.core_type<tc>, window_params = [{transform_indices = @transform_0, window_bounds = array<i64: 2, 3136>}, {pipeline_mode = #tpu.pipeline_mode<synchronous>, transform_indices = @transform_1, window_bounds = array<i64: 3136, 512>}, {pipeline_mode = #tpu.pipeline_mode<synchronous>, transform_indices = @transform_2, window_bounds = array<i64: 1, 512>}, {pipeline_mode = #tpu.pipeline_mode<synchronous>, transform_indices = @transform_3, window_bounds = array<i64: 512, 128>}, {pipeline_mode = #tpu.pipeline_mode<synchronous>, transform_indices = @transform_4, window_bounds = array<i64: 1, 128>}, {transform_indices = @transform_5, window_bounds = array<i64: 2, 1>}, {transform_indices = @transform_6, window_bounds = array<i64: 2, 6>}]} {
    %c0 = arith.constant 0 : index
    %c0_0 = arith.constant 0 : index
    %0 = vector.load %arg1[%c0, %c0_0] : memref<2x3136xbf16, #tpu.memory_space<vmem>>, vector<2x3136xbf16>
    %c0_1 = arith.constant 0 : index
    %c0_2 = arith.constant 0 : index
    %1 = vector.load %arg2[%c0_1, %c0_2] : memref<3136x512xbf16, #tpu.memory_space<vmem>>, vector<3136x512xbf16>
    %cst = arith.constant dense<0.000000e+00> : vector<2x512xf32>
    %2 = tpu.matmul %0, %1, %cst {dimension_numbers = #tpu.dot_dimension_numbers<[1], [0], [0], [1], [0, 0, 1, 1], [], []>} : vector<2x3136xbf16>, vector<3136x512xbf16>, vector<2x512xf32> -> vector<2x512xf32>
    %c0_3 = arith.constant 0 : index
    %c0_4 = arith.constant 0 : index
    %3 = vector.load %arg3[%c0_3, %c0_4] : memref<1x512xf32, #tpu.memory_space<vmem>>, vector<1x512xf32>
    %4 = vector.broadcast %3 : vector<1x512xf32> to vector<2x512xf32>
    %5 = arith.addf %2, %4 : vector<2x512xf32>
    %cst_5 = arith.constant 0.000000e+00 : f32
    %6 = vector.broadcast %cst_5 : f32 to vector<2x512xf32>
    %7 = arith.maximumf %5, %6 : vector<2x512xf32>
    %8 = arith.truncf %7 : vector<2x512xf32> to vector<2x512xbf16>
    %c0_6 = arith.constant 0 : index
    %c0_7 = arith.constant 0 : index
    %9 = vector.load %arg4[%c0_6, %c0_7] : memref<512x128xbf16, #tpu.memory_space<vmem>>, vector<512x128xbf16>
    %cst_8 = arith.constant dense<0.000000e+00> : vector<2x128xf32>
    %10 = tpu.matmul %8, %9, %cst_8 {dimension_numbers = #tpu.dot_dimension_numbers<[1], [0], [0], [1], [0, 0, 1, 1], [], []>} : vector<2x512xbf16>, vector<512x128xbf16>, vector<2x128xf32> -> vector<2x128xf32>
    %c0_9 = arith.constant 0 : index
    %c0_10 = arith.constant 0 : index
    %11 = vector.load %arg5[%c0_9, %c0_10] : memref<1x128xf32, #tpu.memory_space<vmem>>, vector<1x128xf32>
    %12 = vector.broadcast %11 : vector<1x128xf32> to vector<2x128xf32>
    %13 = arith.addf %10, %12 : vector<2x128xf32>
    %14 = vector.extract_strided_slice %13 {offsets = [0, 6], sizes = [2, 1], strides = [1, 1]} : vector<2x128xf32> to vector<2x1xf32>
    %c0_11 = arith.constant 0 : index
    %c0_12 = arith.constant 0 : index
    %15 = vector.load %arg6[%c0_11, %c0_12] : memref<2x1xf32, #tpu.memory_space<vmem>>, vector<2x1xf32>
    tpu.vector_store %arg6[%c0_11, %c0_12], %14 {strides = array<i32>} : memref<2x1xf32, #tpu.memory_space<vmem>>, vector<2x1xf32>,
    %16 = vector.extract_strided_slice %13 {offsets = [0, 0], sizes = [2, 6], strides = [1, 1]} : vector<2x128xf32> to vector<2x6xf32>
    %cst_13 = arith.constant dense<0xFF800000> : vector<2xf32>
    %17 = vector.multi_reduction <maximumf>, %16, %cst_13 [1] : vector<2x6xf32> to vector<2xf32>
    %18 = vector.shape_cast %17 : vector<2xf32> to vector<2x1xf32>
    %19 = vector.broadcast %18 : vector<2x1xf32> to vector<2x6xf32>
    %20 = arith.subf %16, %19 : vector<2x6xf32>
    %21 = math.exp %20 : vector<2x6xf32>
    %cst_14 = arith.constant dense<0.000000e+00> : vector<2xf32>
    %22 = vector.multi_reduction <add>, %21, %cst_14 [1] : vector<2x6xf32> to vector<2xf32>
    %23 = vector.shape_cast %22 : vector<2xf32> to vector<2x1xf32>
    %24 = math.log %23 : vector<2x1xf32>
    %25 = vector.broadcast %24 : vector<2x1xf32> to vector<2x6xf32>
    %26 = arith.subf %20, %25 : vector<2x6xf32>
    %c0_15 = arith.constant 0 : index
    %c0_16 = arith.constant 0 : index
    %27 = vector.load %arg7[%c0_15, %c0_16] : memref<2x6xf32, #tpu.memory_space<vmem>>, vector<2x6xf32>
    tpu.vector_store %arg7[%c0_15, %c0_16], %26 {strides = array<i32>} : memref<2x6xf32, #tpu.memory_space<vmem>>, vector<2x6xf32>,
    return
  }
  func.func @transform_0(%arg0: i32) -> (i32, i32) {
    %c0_i32 = arith.constant 0 : i32
    %c0_i32_0 = arith.constant 0 : i32
    return %arg0, %c0_i32 : i32, i32
  }
  func.func @transform_1(%arg0: i32) -> (i32, i32) {
    %c0_i32 = arith.constant 0 : i32
    %c0_i32_0 = arith.constant 0 : i32
    %c0_i32_1 = arith.constant 0 : i32
    return %c0_i32, %c0_i32_0 : i32, i32
  }
  func.func @transform_2(%arg0: i32) -> (i32, i32) {
    %c0_i32 = arith.constant 0 : i32
    %c0_i32_0 = arith.constant 0 : i32
    %c0_i32_1 = arith.constant 0 : i32
    return %c0_i32, %c0_i32_0 : i32, i32
  }
  func.func @transform_3(%arg0: i32) -> (i32, i32) {
    %c0_i32 = arith.constant 0 : i32
    %c0_i32_0 = arith.constant 0 : i32
    %c0_i32_1 = arith.constant 0 : i32
    return %c0_i32, %c0_i32_0 : i32, i32
  }
  func.func @transform_4(%arg0: i32) -> (i32, i32) {
    %c0_i32 = arith.constant 0 : i32
    %c0_i32_0 = arith.constant 0 : i32
    %c0_i32_1 = arith.constant 0 : i32
    return %c0_i32, %c0_i32_0 : i32, i32
  }
  func.func @transform_5(%arg0: i32) -> (i32, i32) {
    %c0_i32 = arith.constant 0 : i32
    %c0_i32_0 = arith.constant 0 : i32
    return %arg0, %c0_i32 : i32, i32
  }
  func.func @transform_6(%arg0: i32) -> (i32, i32) {
    %c0_i32 = arith.constant 0 : i32
    %c0_i32_0 = arith.constant 0 : i32
    return %arg0, %c0_i32 : i32, i32
  }
}

</mosaic_0001>

<bundles_post_ra>
// kernel: nature_cnn_forward.4
= control target key start
LH: loop header
LB: loop body
LE: loop exit
PB: predicated region body
PF: predicated region fallthrough
CT: control target
= control target key end

     0   :  { %s1043_s12 = smov 0   ;;  %s1171_s0 = inlined_call_operand.vmem [shape: bf16[800,256], index: 0, kind: input, shape index: {}]   ;;  %s1172_s1 = inlined_call_operand.vmem [shape: bf16[256,128], index: 1, kind: input, shape index: {}]   ;;  %s1173_s2 = inlined_call_operand.vmem [shape: f32[1,128], index: 2, kind: input, shape index: {}]   ;;  %s1174_s3 = inlined_call_operand.vmem [shape: bf16[800,128], index: 3, kind: output, shape index: {}]  }
   0x1 LB: > { %s722_s13 = sadd.s32 4294967295, %s1021_s12   ;;  %p726_p0 = scmp.ge.s32.totalorder %s1021_s12, 1  ;;  %s1021_s12 = sphi %s1043_s12, %s13_s12  }
   0x2   : > { %p139_p1 = scmp.lt.s32.totalorder %s1021_s12, 6 }
   0x4   : > { %p140_p2 = pnand %p726_p0, %p139_p1 }
   0x5   : > { %v969_v0 = vld [vmem:[%s1172_s1 + $0x40] sm:$0xff] (!%p140_p2)   ;;  %s164_s16 = smul.u32 (!%p140_p2), 20, %s722_s13  ;;  %v971_v2 = vld [vmem:[%s1172_s1 + $0x48] sm:$0xff] (!%p140_p2)   ;;  %v973_v4 = vld [vmem:[%s1172_s1 + $0x50] sm:$0xff] (!%p140_p2)  }
   0x6   : > { %143 = sbr.rel (%p140_p2) target bundleno = 294 (0x126), region = 32  ;;  %v970_v1 = vld [vmem:[%s1172_s1] sm:$0xff] (!%p140_p2)   ;;  %869 = vmatprep.subr.bf16.mxu0 (!%p140_p2), %v969_v0  ;;  %945 = vmatprep.subr.bf16.mxu1 (!%p140_p2), %v969_v0  ;;  %v972_v3 = vld [vmem:[%s1172_s1 + $0x8] sm:$0xff] (!%p140_p2)   ;;  %v974_v5 = vld [vmem:[%s1172_s1 + $0x10] sm:$0xff] (!%p140_p2)  }
   0x7   : > { %870 = vmatpush3.bf16.msra.mxu0 (!%p140_p2), %v970_v1  ;;  %953 = vmatpush3.bf16.msra.mxu1 (!%p140_p2), %v970_v1  ;;  %p165_p3 = scmp.lt.s32.totalorder (!%p140_p2), %s164_s16, 99  ;;  %v975_v6 = vld [vmem:[%s1172_s1 + $0x58] sm:$0xff] (!%p140_p2)   ;;  %v977_v8 = vld [vmem:[%s1172_s1 + $0x60] sm:$0xff] (!%p140_p2)   ;;  %v979_v10 = vld [vmem:[%s1172_s1 + $0x68] sm:$0xff] (!%p140_p2)  }
   0x8   : > { %871 = vmatprep.subr.bf16.mxu0 (!%p140_p2), %v971_v2  ;;  %946 = vmatprep.subr.bf16.mxu1 (!%p140_p2), %v971_v2  ;;  %v976_v7 = vld [vmem:[%s1172_s1 + $0x18] sm:$0xff] (!%p140_p2)   ;;  %v978_v9 = vld [vmem:[%s1172_s1 + $0x20] sm:$0xff] (!%p140_p2)   ;;  %v980_v13 = vld [vmem:[%s1172_s1 + $0x28] sm:$0xff] (!%p140_p2)  }
   0x9   : > { %v981_v14 = vld [vmem:[%s1172_s1 + $0x70] sm:$0xff] (!%p140_p2)   ;;  %v983_v16 = vld [vmem:[%s1172_s1 + $0x78] sm:$0xff] (!%p140_p2)   ;;  %v1130_v38 = vld [vmem:[%s1173_s2] ss:$0 sm:$0xff] (!%p140_p2) }
   0xa   : > { %v982_v15 = vld [vmem:[%s1172_s1 + $0x30] sm:$0xff] (!%p140_p2)   ;;  %v984_v17 = vld [vmem:[%s1172_s1 + $0x38] sm:$0xff] (!%p140_p2)  }
   0xb   : > { %872 = vmatpush3.bf16.msra.mxu0 (!%p140_p2), %v972_v3  ;;  %954 = vmatpush3.bf16.msra.mxu1 (!%p140_p2), %v972_v3 }
   0xc   : > { %873 = vmatprep.subr.bf16.mxu0 (!%p140_p2), %v973_v4  ;;  %947 = vmatprep.subr.bf16.mxu1 (!%p140_p2), %v973_v4 }
   0xd   : > { %s1176_s16 = smov (!%p165_p3, %s164_s16), 99 }
   0xe   : > { %s789_s4 = sshll.u32 %s1176_s16, 3  ;;  %s729_s28 = sshll.u32 %s1176_s16, 2 }
   0xf   : > { %874 = vmatpush3.bf16.msra.mxu0 %v974_v5  ;;  %955 = vmatpush3.bf16.msra.mxu1 %v974_v5  ;;  %s1084_s9 = scalar_lea.vmem %s1171_s0, %s789_s4  ;;  %s1140_s4 = scalar_lea.vmem %s1174_s3, %s729_s28 }
  0x10   : > { %875 = vmatprep.subr.bf16.mxu0 %v975_v6  ;;  %948 = vmatprep.subr.bf16.mxu1 %v975_v6  ;;  %v987_v11 = vld [vmem:[%s1084_s9 + $0x4] ss:$8 sps:$4 sm:$0xff]   ;;  %v990_v12 = vld [vmem:[%s1084_s9 + $0x54] ss:$8 sps:$4 sm:$0xff]   ;;  %v985_v18 = vld [vmem:[%s1084_s9] ss:$8 sps:$4 sm:$0xff]  }
  0x11   : > { %465 = vmatprep.mubr.bf16.mxu0 %v987_v11  ;;  %505 = vmatprep.mubr.bf16.mxu1 %v990_v12  ;;  %v988_v19 = vld [vmem:[%s1084_s9 + $0x50] ss:$8 sps:$4 sm:$0xff]   ;;  %v991_v20 = vld [vmem:[%s1084_s9 + $0x14] ss:$8 sps:$4 sm:$0xff]   ;;  %v993_v21 = vld [vmem:[%s1084_s9 + $0x64] ss:$8 sps:$4 sm:$0xff]  }
  0x12   : > { %v995_v22 = vld [vmem:[%s1084_s9 + $0x10] ss:$8 sps:$4 sm:$0xff]   ;;  %v996_v23 = vld [vmem:[%s1084_s9 + $0x60] ss:$8 sps:$4 sm:$0xff]   ;;  %v997_v24 = vld [vmem:[%s1084_s9 + $0x24] ss:$8 sps:$4 sm:$0xff]  }
  0x13   : > { %876 = vmatpush3.bf16.msra.mxu0 %v976_v7  ;;  %956 = vmatpush3.bf16.msra.mxu1 %v976_v7  ;;  %v999_v25 = vld [vmem:[%s1084_s9 + $0x74] ss:$8 sps:$4 sm:$0xff]   ;;  %v1001_v26 = vld [vmem:[%s1084_s9 + $0x20] ss:$8 sps:$4 sm:$0xff]   ;;  %v1002_v27 = vld [vmem:[%s1084_s9 + $0x70] ss:$8 sps:$4 sm:$0xff]  }
  0x14   : > { %877 = vmatprep.subr.bf16.mxu0 %v977_v8  ;;  %949 = vmatprep.subr.bf16.mxu1 %v977_v8  ;;  %v1003_v28 = vld [vmem:[%s1084_s9 + $0x34] ss:$8 sps:$4 sm:$0xff]   ;;  %v1005_v29 = vld [vmem:[%s1084_s9 + $0x84] ss:$8 sps:$4 sm:$0xff]   ;;  %v1007_v30 = vld [vmem:[%s1084_s9 + $0x30] ss:$8 sps:$4 sm:$0xff]  }
  0x15   : > { %v1008_v31 = vld [vmem:[%s1084_s9 + $0x80] ss:$8 sps:$4 sm:$0xff]   ;;  %v1009_v32 = vld [vmem:[%s1084_s9 + $0x44] ss:$8 sps:$4 sm:$0xff]   ;;  %v1011_v33 = vld [vmem:[%s1084_s9 + $0x94] ss:$8 sps:$4 sm:$0xff]  }
  0x16   : > { %v1013_v34 = vld [vmem:[%s1084_s9 + $0x40] ss:$8 sps:$4 sm:$0xff]   ;;  %v1014_v35 = vld [vmem:[%s1084_s9 + $0x90] ss:$8 sps:$4 sm:$0xff]  }
  0x17   : > { %878 = vmatpush3.bf16.msra.mxu0 %v978_v9  ;;  %957 = vmatpush3.bf16.msra.mxu1 %v978_v9 }
  0x18   : > { %879 = vmatprep.subr.bf16.mxu0 %v979_v10  ;;  %950 = vmatprep.subr.bf16.mxu1 %v979_v10 }
  0x1b   : > { %880 = vmatpush3.bf16.msra.mxu0 %v980_v13  ;;  %958 = vmatpush3.bf16.msra.mxu1 %v980_v13 }
  0x1c   : > { %881 = vmatprep.subr.bf16.mxu0 %v981_v14  ;;  %951 = vmatprep.subr.bf16.mxu1 %v981_v14 }
  0x1f   : > { %882 = vmatpush3.bf16.msra.mxu0 %v982_v15  ;;  %959 = vmatpush3.bf16.msra.mxu1 %v982_v15 }
  0x20   : > { %883 = vmatprep.subr.bf16.mxu0 %v983_v16  ;;  %952 = vmatprep.subr.bf16.mxu1 %v983_v16 }
  0x23   : > { %884 = vmatpush3.bf16.msra.mxu0 %v984_v17  ;;  %960 = vmatpush3.bf16.msra.mxu1 %v984_v17 }
  0x26   : > { %466 = vmatmul.mubr.bf16.vlgmr.msra.gmra.mrb[0].mxu0 %v985_v18  ;;  %506 = vmatmul.mubr.bf16.vlgmr.msra.gmra.mrb[0].mxu1 %v988_v19 }
  0x27   : > { %473 = vmatprep.mubr.bf16.mxu0 %v991_v20  ;;  %513 = vmatprep.mubr.bf16.mxu1 %v993_v21 }
  0x2e   : > { %474 = vmatmul.mubr.bf16.gmra.mrb[4].mxu0 %v995_v22  ;;  %514 = vmatmul.mubr.bf16.gmra.mrb[4].mxu1 %v996_v23 }
  0x2f   : > { %481 = vmatprep.mubr.bf16.mxu0 %v997_v24  ;;  %521 = vmatprep.mubr.bf16.mxu1 %v999_v25 }
  0x36   : > { %482 = vmatmul.mubr.bf16.gmra.mrb[8].mxu0 %v1001_v26  ;;  %522 = vmatmul.mubr.bf16.gmra.mrb[8].mxu1 %v1002_v27 }
  0x37   : > { %489 = vmatprep.mubr.bf16.mxu0 %v1003_v28  ;;  %529 = vmatprep.mubr.bf16.mxu1 %v1005_v29 }
  0x3e   : > { %490 = vmatmul.mubr.bf16.gmra.mrb[12].mxu0 %v1007_v30  ;;  %530 = vmatmul.mubr.bf16.gmra.mrb[12].mxu1 %v1008_v31 }
  0x3f   : > { %497 = vmatprep.mubr.bf16.mxu0 %v1009_v32  ;;  %537 = vmatprep.mubr.bf16.mxu1 %v1011_v33 }
  0x46   : > { %498 = vmatmul.mubr.bf16.gmra.mrb[16].mxu0 %v1013_v34  ;;  %538 = vmatmul.mubr.bf16.gmra.mrb[16].mxu1 %v1014_v35 }
  0xf9   : > { %v885_v36 = vpop.f32.mrb[0].mxu0  ;;  %v915_v37 = vpop.f32.mrb[0].mxu1 }
  0xfa   : > { %v886_v39 = vpop.f32.mrb[1].mxu0  ;;  %v916_v40 = vpop.f32.mrb[1].mxu1 }
  0xfb   : > { %v887_v41 = vadd.f32 %v886_v39, %v885_v36  ;;  %v917_v42 = vadd.f32 %v916_v40, %v915_v37  ;;  %v888_v43 = vpop.f32.mrb[2].mxu0  ;;  %v918_v44 = vpop.f32.mrb[2].mxu1 }
  0xfc   : > { %v889_v45 = vpop.f32.mrb[3].mxu0  ;;  %v919_v46 = vpop.f32.mrb[3].mxu1 }
  0xfd   : > { %v468_v47 = vadd.f32 %v887_v41, %v1130_v38  ;;  %v508_v48 = vadd.f32 %v917_v42, %v1130_v38  ;;  %v890_v49 = vadd.f32 %v889_v45, %v888_v43  ;;  %v920_v50 = vadd.f32 %v919_v46, %v918_v44 }
  0xff   : > { %v471_v51 = vadd.f32 %v890_v49, %v1130_v38  ;;  %v511_v52 = vadd.f32 %v920_v50, %v1130_v38  ;;  %v546_v53 = vmax.f32 %v468_v47, 0.0  ;;  %v556_v54 = vmax.f32 %v508_v48, 0.0 }
 0x101   : > { %v547_v55 = vmax.f32 %v471_v51, 0.0  ;;  %v557_v56 = vmax.f32 %v511_v52, 0.0  ;;  %v891_v57 = vpop.f32.mrb[4].mxu0  ;;  %v921_v58 = vpop.f32.mrb[4].mxu1 }
 0x102   : > { %v892_v59 = vpop.f32.mrb[5].mxu0  ;;  %v922_v60 = vpop.f32.mrb[5].mxu1 }
 0x103   : > { %v813_v61 = vpack.c.bf16 %v547_v55, %v546_v53  ;;  %v838_v62 = vpack.c.bf16 %v557_v56, %v556_v54  ;;  %v893_v63 = vadd.f32 %v892_v59, %v891_v57  ;;  %v923_v0 = vadd.f32 %v922_v60, %v921_v58  ;;  %v894_v1 = vpop.f32.mrb[6].mxu0  ;;  %v924_v2 = vpop.f32.mrb[6].mxu1 }
 0x104   : > { %v895_v3 = vpop.f32.mrb[7].mxu0  ;;  %v925_v4 = vpop.f32.mrb[7].mxu1 }
 0x105   : > { %814 = vst [vmem:[%s1140_s4] sm:$0xff] %v813_v61   ;;  %864 = vst [vmem:[%s1140_s4 + $0x28] sm:$0xff] %v838_v62   ;;  %v476_v5 = vadd.f32 %v893_v63, %v1130_v38  ;;  %v516_v6 = vadd.f32 %v923_v0, %v1130_v38  ;;  %v896_v7 = vadd.f32 %v895_v3, %v894_v1 }
 0x106   : > { %v926_v8 = vadd.f32 %v925_v4, %v924_v2 }
 0x107   : > { %v479_v9 = vadd.f32 %v896_v7, %v1130_v38  ;;  %v548_v11 = vmax.f32 %v476_v5, 0.0  ;;  %v558_v12 = vmax.f32 %v516_v6, 0.0 }
 0x108   : > { %v519_v10 = vadd.f32 %v926_v8, %v1130_v38 }
 0x109   : > { %v549_v13 = vmax.f32 %v479_v9, 0.0  ;;  %v897_v15 = vpop.f32.mrb[8].mxu0  ;;  %v927_v16 = vpop.f32.mrb[8].mxu1 }
 0x10a   : > { %v559_v14 = vmax.f32 %v519_v10, 0.0  ;;  %v898_v17 = vpop.f32.mrb[9].mxu0  ;;  %v928_v18 = vpop.f32.mrb[9].mxu1 }
 0x10b   : > { %v818_v19 = vpack.c.bf16 %v549_v13, %v548_v11  ;;  %v899_v21 = vadd.f32 %v898_v17, %v897_v15  ;;  %v929_v22 = vadd.f32 %v928_v18, %v927_v16  ;;  %v900_v23 = vpop.f32.mrb[10].mxu0  ;;  %v930_v24 = vpop.f32.mrb[10].mxu1 }
 0x10c   : > { %v843_v20 = vpack.c.bf16 %v559_v14, %v558_v12  ;;  %v901_v25 = vpop.f32.mrb[11].mxu0  ;;  %v931_v26 = vpop.f32.mrb[11].mxu1 }
 0x10d   : > { %860 = vst [vmem:[%s1140_s4 + $0x8] sm:$0xff] %v818_v19   ;;  %v484_v27 = vadd.f32 %v899_v21, %v1130_v38  ;;  %v524_v28 = vadd.f32 %v929_v22, %v1130_v38  ;;  %v902_v29 = vadd.f32 %v901_v25, %v900_v23  ;;  %v932_v30 = vadd.f32 %v931_v26, %v930_v24 }
 0x10e   : > { %865 = vst [vmem:[%s1140_s4 + $0x30] sm:$0xff] %v843_v20  }
 0x10f   : > { %v487_v31 = vadd.f32 %v902_v29, %v1130_v38  ;;  %v527_v32 = vadd.f32 %v932_v30, %v1130_v38  ;;  %v550_v33 = vmax.f32 %v484_v27, 0.0  ;;  %v560_v34 = vmax.f32 %v524_v28, 0.0 }
 0x111   : > { %v551_v35 = vmax.f32 %v487_v31, 0.0  ;;  %v561_v36 = vmax.f32 %v527_v32, 0.0  ;;  %v903_v37 = vpop.f32.mrb[12].mxu0  ;;  %v933_v39 = vpop.f32.mrb[12].mxu1 }
 0x112   : > { %v904_v40 = vpop.f32.mrb[13].mxu0  ;;  %v934_v41 = vpop.f32.mrb[13].mxu1 }
 0x113   : > { %v823_v42 = vpack.c.bf16 %v551_v35, %v550_v33  ;;  %v848_v43 = vpack.c.bf16 %v561_v36, %v560_v34  ;;  %v905_v44 = vadd.f32 %v904_v40, %v903_v37  ;;  %v935_v45 = vadd.f32 %v934_v41, %v933_v39  ;;  %v906_v46 = vpop.f32.mrb[14].mxu0  ;;  %v936_v47 = vpop.f32.mrb[14].mxu1 }
 0x114   : > { %v907_v48 = vpop.f32.mrb[15].mxu0  ;;  %v937_v49 = vpop.f32.mrb[15].mxu1 }
 0x115   : > { %861 = vst [vmem:[%s1140_s4 + $0x10] sm:$0xff] %v823_v42   ;;  %866 = vst [vmem:[%s1140_s4 + $0x38] sm:$0xff] %v848_v43   ;;  %v492_v50 = vadd.f32 %v905_v44, %v1130_v38  ;;  %v532_v51 = vadd.f32 %v935_v45, %v1130_v38  ;;  %v908_v52 = vadd.f32 %v907_v48, %v906_v46 }
 0x116   : > { %v938_v53 = vadd.f32 %v937_v49, %v936_v47 }
 0x117   : > { %v495_v54 = vadd.f32 %v908_v52, %v1130_v38  ;;  %v552_v56 = vmax.f32 %v492_v50, 0.0  ;;  %v562_v57 = vmax.f32 %v532_v51, 0.0 }
 0x118   : > { %v535_v55 = vadd.f32 %v938_v53, %v1130_v38 }
 0x119   : > { %v553_v58 = vmax.f32 %v495_v54, 0.0  ;;  %v909_v60 = vpop.f32.mrb[16].mxu0  ;;  %v939_v61 = vpop.f32.mrb[16].mxu1 }
 0x11a   : > { %v563_v59 = vmax.f32 %v535_v55, 0.0  ;;  %v910_v62 = vpop.f32.mrb[17].mxu0  ;;  %v940_v63 = vpop.f32.mrb[17].mxu1 }
 0x11b   : > { %v828_v0 = vpack.c.bf16 %v553_v58, %v552_v56  ;;  %v911_v2 = vadd.f32 %v910_v62, %v909_v60  ;;  %v941_v3 = vadd.f32 %v940_v63, %v939_v61  ;;  %v912_v4 = vpop.f32.mrb[18].mxu0  ;;  %v942_v5 = vpop.f32.mrb[18].mxu1 }
 0x11c   : > { %v853_v1 = vpack.c.bf16 %v563_v59, %v562_v57  ;;  %v913_v6 = vpop.f32.mrb[19].mxu0  ;;  %v943_v7 = vpop.f32.mrb[19].mxu1 }
 0x11d   : > { %862 = vst [vmem:[%s1140_s4 + $0x18] sm:$0xff] %v828_v0   ;;  %v500_v8 = vadd.f32 %v911_v2, %v1130_v38  ;;  %v540_v9 = vadd.f32 %v941_v3, %v1130_v38  ;;  %v914_v10 = vadd.f32 %v913_v6, %v912_v4  ;;  %v944_v11 = vadd.f32 %v943_v7, %v942_v5 }
 0x11e   : > { %867 = vst [vmem:[%s1140_s4 + $0x40] sm:$0xff] %v853_v1  }
 0x11f   : > { %v503_v12 = vadd.f32 %v914_v10, %v1130_v38  ;;  %v543_v13 = vadd.f32 %v944_v11, %v1130_v38  ;;  %v554_v14 = vmax.f32 %v500_v8, 0.0  ;;  %v564_v15 = vmax.f32 %v540_v9, 0.0 }
 0x121   : > { %v555_v16 = vmax.f32 %v503_v12, 0.0  ;;  %v565_v17 = vmax.f32 %v543_v13, 0.0 }
 0x123   : > { %v833_v18 = vpack.c.bf16 %v555_v16, %v554_v14  ;;  %v858_v19 = vpack.c.bf16 %v565_v17, %v564_v15 }
 0x125   : > { %863 = vst [vmem:[%s1140_s4 + $0x20] sm:$0xff] %v833_v18   ;;  %868 = vst [vmem:[%s1140_s4 + $0x48] sm:$0xff] %v858_v19  }
 0x126 PF: > { %s13_s12 = sadd.s32 1, %s1021_s12  }
 0x127   : > { %p10_p4 = scmp.ge.s32.totalorder %s13_s12, 7  }
 0x129   :  { %12 = sbr.rel (!%p10_p4) target bundleno = 1 (0x1), region = 62 }

// kernel: nature_cnn_forward.5
= control target key start
LH: loop header
LB: loop body
LE: loop exit
PB: predicated region body
PF: predicated region fallthrough
CT: control target
= control target key end

     0   :  { %s1612_s12 = smov 0   ;;  %s1614_s13 = smov 0   ;;  %s1856_s0 = inlined_call_operand.vmem [shape: bf16[162,512], index: 0, kind: input, shape index: {}]   ;;  %s1857_s1 = inlined_call_operand.vmem [shape: bf16[512,128], index: 1, kind: input, shape index: {}]   ;;  %s1858_s2 = inlined_call_operand.vmem [shape: f32[1,128], index: 2, kind: input, shape index: {}]   ;;  %s1859_s3 = inlined_call_operand.vmem [shape: bf16[162,128], index: 3, kind: output, shape index: {}]  }
   0x1   :  { %s1616_s14 = smov 0  }
   0x2 LB: > { %s1625_s15 = sadd.s32 4294967295, %s1558_s14   ;;  %s1627_s16 = sadd.s32 1, %s1558_s14   ;;  %s1558_s14 = sphi %s1616_s14, %s1866_s14   ;;  %s1554_s13 = sphi %s1614_s13, %s1865_s13   ;;  %s1550_s12 = sphi %s1612_s12, %s1864_s12  }
   0x3   : > { %s85_s17 = ssub.s32 %s1558_s14, %s1627_s16  ;;  %s88_s18 = sadd.s32 1, %s1554_s13 }
   0x4   : > { %p86_p0 = scmp.eq.s32.totalorder %s85_s17, 0  ;;  %p98_p1 = scmp.ne.s32.totalorder %s1554_s13, %s1550_s12 }
   0x5   : > { %p99_p2 = scmp.eq.s32.totalorder %s1625_s15, 1  ;;  %p1105_p3 = scmp.ge.s32.totalorder %s1558_s14, 1 }
   0x6   : > { %s1635_s19 = scalar_select %p86_p0, %s1554_s13, %s88_s18  }
   0x7   : > { %p1637_p4 = por %p99_p2, %p98_p1  ;;  %p149_p5 = scmp.lt.s32.totalorder %s1558_s14, 3 }
   0x9   : > { %p150_p6 = pnand %p1105_p3, %p149_p5 }
   0xa   : > { %v1432_v0 = vld [vmem:[%s1857_s1 + $0x40] sm:$0xff] (!%p150_p6)   ;;  %v1436_v4 = vld [vmem:[%s1857_s1 + $0x48] sm:$0xff] (!%p150_p6)   ;;  %v1440_v8 = vld [vmem:[%s1857_s1 + $0x50] sm:$0xff] (!%p150_p6)   ;;  %s1687_s30 = smul.u32 (!%p150_p6), 12, %s1625_s15  ;;  %s175_s5 = sand.u32 (!%p150_p6), 1, %s1550_s12  }
   0xb   : > { %153 = sbr.rel (%p150_p6) target bundleno = 379 (0x17b), region = 32  ;;  %v1433_v1 = vld [vmem:[%s1857_s1 + $0xc0] sm:$0xff] (!%p150_p6)   ;;  %1238 = vmatprep.subr.bf16.mxu0 (!%p150_p6), %v1432_v0  ;;  %v1437_v5 = vld [vmem:[%s1857_s1 + $0xc8] sm:$0xff] (!%p150_p6)   ;;  %v1441_v9 = vld [vmem:[%s1857_s1 + $0xd0] sm:$0xff] (!%p150_p6)  }
   0xc   : > { %v1434_v2 = vld [vmem:[%s1857_s1] sm:$0xff] (!%p150_p6)   ;;  %1290 = vmatprep.subr.bf16.mxu1 (!%p150_p6), %v1433_v1  ;;  %v1438_v6 = vld [vmem:[%s1857_s1 + $0x8] sm:$0xff] (!%p150_p6)   ;;  %v1442_v10 = vld [vmem:[%s1857_s1 + $0x10] sm:$0xff] (!%p150_p6)   ;;  %p184_p7 = scmp.lt.s32.totalorder (!%p150_p6), %s1687_s30, 20  ;;  %s1342_s6 = smul.u32 (!%p150_p6), 48, %s175_s5 }
   0xd   : > { %v1435_v3 = vld [vmem:[%s1857_s1 + $0x80] sm:$0xff] (!%p150_p6)   ;;  %1239 = vmatpush3.bf16.msra.mxu0 (!%p150_p6), %v1434_v2  ;;  %v1439_v7 = vld [vmem:[%s1857_s1 + $0x88] sm:$0xff] (!%p150_p6)   ;;  %v1443_v11 = vld [vmem:[%s1857_s1 + $0x90] sm:$0xff] (!%p150_p6)  }
   0xe   : > { %1291 = vmatpush3.bf16.msra.mxu1 (!%p150_p6), %v1435_v3  ;;  %1240 = vmatprep.subr.bf16.mxu0 (!%p150_p6), %v1436_v4  ;;  %v1444_v12 = vld [vmem:[%s1857_s1 + $0x58] sm:$0xff] (!%p150_p6)   ;;  %v1448_v16 = vld [vmem:[%s1857_s1 + $0x60] sm:$0xff] (!%p150_p6)   ;;  %v1452_v20 = vld [vmem:[%s1857_s1 + $0x68] sm:$0xff] (!%p150_p6)   ;;  %s1780_s12 = scalar_lea.vmem (!%p150_p6), [#allocation2], %s1342_s6  }
   0xf   : > { %1292 = vmatprep.subr.bf16.mxu1 (!%p150_p6), %v1437_v5  ;;  %v1445_v13 = vld [vmem:[%s1857_s1 + $0xd8] sm:$0xff] (!%p150_p6)   ;;  %v1449_v17 = vld [vmem:[%s1857_s1 + $0xe0] sm:$0xff] (!%p150_p6)   ;;  %v1453_v21 = vld [vmem:[%s1857_s1 + $0xe8] sm:$0xff] (!%p150_p6)  }
  0x10   : > { %v1446_v14 = vld [vmem:[%s1857_s1 + $0x18] sm:$0xff] (!%p150_p6)   ;;  %v1450_v18 = vld [vmem:[%s1857_s1 + $0x20] sm:$0xff] (!%p150_p6)   ;;  %v1454_v22 = vld [vmem:[%s1857_s1 + $0x28] sm:$0xff] (!%p150_p6)  }
  0x11   : > { %1241 = vmatpush3.bf16.msra.mxu0 (!%p150_p6), %v1438_v6  ;;  %v1447_v15 = vld [vmem:[%s1857_s1 + $0x98] sm:$0xff] (!%p150_p6)   ;;  %v1451_v19 = vld [vmem:[%s1857_s1 + $0xa0] sm:$0xff] (!%p150_p6)   ;;  %v1455_v23 = vld [vmem:[%s1857_s1 + $0xa8] sm:$0xff] (!%p150_p6)  }
  0x12   : > { %1293 = vmatpush3.bf16.msra.mxu1 %v1439_v7  ;;  %1242 = vmatprep.subr.bf16.mxu0 %v1440_v8  ;;  %s185_s26 = scalar_select %p184_p7, %s1687_s30, 20  ;;  %v1456_v24 = vld [vmem:[%s1857_s1 + $0x70] sm:$0xff]   ;;  %v1460_v28 = vld [vmem:[%s1857_s1 + $0x78] sm:$0xff]   ;;  %v1774_v58 = vld [vmem:[%s1858_s2] ss:$0 sm:$0xff] }
  0x13   : > { %1294 = vmatprep.subr.bf16.mxu1 %v1441_v9  ;;  %v1457_v25 = vld [vmem:[%s1857_s1 + $0xf0] sm:$0xff]   ;;  %v1461_v29 = vld [vmem:[%s1857_s1 + $0xf8] sm:$0xff]   ;;  %s850_s7 = ssub.s32 (%p1637_p4), 21, %s1687_s30  ;;  %s1202_s8 = smul.u32 (%p1637_p4), 48, %s1625_s15 }
  0x14   : > { %v1458_v26 = vld [vmem:[%s1857_s1 + $0x30] sm:$0xff]   ;;  %s1189_s9 = sshll.u32 %s185_s26, 4  ;;  %v1462_v30 = vld [vmem:[%s1857_s1 + $0x38] sm:$0xff]   ;;  %p851_p8 = scmp.lt.s32.totalorder (%p1637_p4), %s850_s7, 12 }
  0x15   : > { %1243 = vmatpush3.bf16.msra.mxu0 %v1442_v10  ;;  %v1459_v27 = vld [vmem:[%s1857_s1 + $0xb0] sm:$0xff]   ;;  %s1739_s24 = scalar_lea.vmem %s1856_s0, %s1189_s9  ;;  %v1463_v31 = vld [vmem:[%s1857_s1 + $0xb8] sm:$0xff]   ;;  %s1804_s11 = scalar_lea.vmem (%p1637_p4), %s1859_s3, %s1202_s8  }
  0x16   : > { %1295 = vmatpush3.bf16.msra.mxu1 %v1443_v11  ;;  %1244 = vmatprep.subr.bf16.mxu0 %v1444_v12  ;;  %v1464_v32 = vld [vmem:[%s1739_s24] ss:$16 sps:$4 sm:$0xff]   ;;  %v1466_v33 = vld [vmem:[%s1739_s24 + $0x4] ss:$16 sps:$4 sm:$0xff]   ;;  %v1467_v34 = vld [vmem:[%s1739_s24 + $0x8] ss:$16 sps:$4 sm:$0xff]  }
  0x17   : > { %1296 = vmatprep.subr.bf16.mxu1 %v1445_v13  ;;  %v1469_v35 = vld [vmem:[%s1739_s24 + $0xc] ss:$16 sps:$4 sm:$0xff]   ;;  %640 = vmatprep.mubr.bf16.mxu0 %v1466_v33  ;;  %v1470_v36 = vld [vmem:[%s1739_s24 + $0x24] ss:$16 sps:$4 sm:$0xff]   ;;  %v1474_v38 = vld [vmem:[%s1739_s24 + $0x20] ss:$16 sps:$4 sm:$0xff]  }
  0x18   : > { %721 = vmatprep.mubr.bf16.mxu1 %v1469_v35  ;;  %v1472_v37 = vld [vmem:[%s1739_s24 + $0x2c] ss:$16 sps:$4 sm:$0xff]   ;;  %v1475_v39 = vld [vmem:[%s1739_s24 + $0x28] ss:$16 sps:$4 sm:$0xff]   ;;  %v1476_v40 = vld [vmem:[%s1739_s24 + $0x44] ss:$16 sps:$4 sm:$0xff]  }
  0x19   : > { %1245 = vmatpush3.bf16.msra.mxu0 %v1446_v14  ;;  %v1478_v41 = vld [vmem:[%s1739_s24 + $0x4c] ss:$16 sps:$4 sm:$0xff]   ;;  %v1480_v42 = vld [vmem:[%s1739_s24 + $0x40] ss:$16 sps:$4 sm:$0xff]   ;;  %v1481_v43 = vld [vmem:[%s1739_s24 + $0x48] ss:$16 sps:$4 sm:$0xff]  }
  0x1a   : > { %1297 = vmatpush3.bf16.msra.mxu1 %v1447_v15  ;;  %1246 = vmatprep.subr.bf16.mxu0 %v1448_v16  ;;  %v1482_v44 = vld [vmem:[%s1739_s24 + $0x64] ss:$16 sps:$4 sm:$0xff]   ;;  %v1484_v45 = vld [vmem:[%s1739_s24 + $0x6c] ss:$16 sps:$4 sm:$0xff]   ;;  %v1486_v46 = vld [vmem:[%s1739_s24 + $0x60] ss:$16 sps:$4 sm:$0xff]  }
  0x1b   : > { %1298 = vmatprep.subr.bf16.mxu1 %v1449_v17  ;;  %v1487_v47 = vld [vmem:[%s1739_s24 + $0x68] ss:$16 sps:$4 sm:$0xff]   ;;  %v1488_v48 = vld [vmem:[%s1739_s24 + $0x84] ss:$16 sps:$4 sm:$0xff]   ;;  %v1490_v49 = vld [vmem:[%s1739_s24 + $0x8c] ss:$16 sps:$4 sm:$0xff]  }
  0x1c   : > { %v1492_v50 = vld [vmem:[%s1739_s24 + $0x80] ss:$16 sps:$4 sm:$0xff]   ;;  %v1493_v51 = vld [vmem:[%s1739_s24 + $0x88] ss:$16 sps:$4 sm:$0xff]   ;;  %v1494_v52 = vld [vmem:[%s1739_s24 + $0xa4] ss:$16 sps:$4 sm:$0xff]  }
  0x1d   : > { %1247 = vmatpush3.bf16.msra.mxu0 %v1450_v18  ;;  %v1496_v53 = vld [vmem:[%s1739_s24 + $0xac] ss:$16 sps:$4 sm:$0xff]   ;;  %v1498_v54 = vld [vmem:[%s1739_s24 + $0xa0] ss:$16 sps:$4 sm:$0xff]   ;;  %v1499_v55 = vld [vmem:[%s1739_s24 + $0xa8] ss:$16 sps:$4 sm:$0xff]  }
  0x1e   : > { %1299 = vmatpush3.bf16.msra.mxu1 %v1451_v19  ;;  %1248 = vmatprep.subr.bf16.mxu0 %v1452_v20 }
  0x1f   : > { %1300 = vmatprep.subr.bf16.mxu1 %v1453_v21 }
  0x21   : > { %1249 = vmatpush3.bf16.msra.mxu0 %v1454_v22 }
  0x22   : > { %1301 = vmatpush3.bf16.msra.mxu1 %v1455_v23  ;;  %1250 = vmatprep.subr.bf16.mxu0 %v1456_v24 }
  0x23   : > { %1302 = vmatprep.subr.bf16.mxu1 %v1457_v25 }
  0x25   : > { %1251 = vmatpush3.bf16.msra.mxu0 %v1458_v26 }
  0x26   : > { %1303 = vmatpush3.bf16.msra.mxu1 %v1459_v27  ;;  %1252 = vmatprep.subr.bf16.mxu0 %v1460_v28 }
  0x27   : > { %1304 = vmatprep.subr.bf16.mxu1 %v1461_v29 }
  0x29   : > { %1253 = vmatpush3.bf16.msra.mxu0 %v1462_v30 }
  0x2a   : > { %1305 = vmatpush3.bf16.msra.mxu1 %v1463_v31 }
  0x2c   : > { %641 = vmatmul.mubr.bf16.vlgmr.msra.gmra.mrb[0].mxu0 %v1464_v32 }
  0x2d   : > { %722 = vmatmul.mubr.bf16.vlgmr.msra.gmra.mrb[0].mxu1 %v1467_v34  ;;  %648 = vmatprep.mubr.bf16.mxu0 %v1470_v36 }
  0x2e   : > { %729 = vmatprep.mubr.bf16.mxu1 %v1472_v37 }
  0x34   : > { %649 = vmatmul.mubr.bf16.gmra.mrb[4].mxu0 %v1474_v38 }
  0x35   : > { %730 = vmatmul.mubr.bf16.gmra.mrb[4].mxu1 %v1475_v39  ;;  %656 = vmatprep.mubr.bf16.mxu0 %v1476_v40 }
  0x36   : > { %737 = vmatprep.mubr.bf16.mxu1 %v1478_v41 }
  0x3c   : > { %657 = vmatmul.mubr.bf16.gmra.mrb[8].mxu0 %v1480_v42 }
  0x3d   : > { %738 = vmatmul.mubr.bf16.gmra.mrb[8].mxu1 %v1481_v43  ;;  %664 = vmatprep.mubr.bf16.mxu0 %v1482_v44 }
  0x3e   : > { %745 = vmatprep.mubr.bf16.mxu1 %v1484_v45 }
  0x44   : > { %665 = vmatmul.mubr.bf16.gmra.mrb[12].mxu0 %v1486_v46 }
  0x45   : > { %746 = vmatmul.mubr.bf16.gmra.mrb[12].mxu1 %v1487_v47  ;;  %672 = vmatprep.mubr.bf16.mxu0 %v1488_v48 }
  0x46   : > { %753 = vmatprep.mubr.bf16.mxu1 %v1490_v49 }
  0x4c   : > { %673 = vmatmul.mubr.bf16.gmra.mrb[16].mxu0 %v1492_v50 }
  0x4d   : > { %754 = vmatmul.mubr.bf16.gmra.mrb[16].mxu1 %v1493_v51  ;;  %680 = vmatprep.mubr.bf16.mxu0 %v1494_v52 }
  0x4e   : > { %761 = vmatprep.mubr.bf16.mxu1 %v1496_v53 }
  0x54   : > { %681 = vmatmul.mubr.bf16.gmra.mrb[20].mxu0 %v1498_v54 }
  0x55   : > { %762 = vmatmul.mubr.bf16.gmra.mrb[20].mxu1 %v1499_v55 }
  0xff   : > { %v1254_v56 = vpop.f32.mrb[0].mxu0 }
 0x100   : > { %v1306_v57 = vpop.f32.mrb[0].mxu1  ;;  %v1255_v59 = vpop.f32.mrb[1].mxu0 }
 0x101   : > { %v1256_v60 = vadd.f32 %v1255_v59, %v1254_v56  ;;  %v1307_v61 = vpop.f32.mrb[1].mxu1  ;;  %v1257_v62 = vpop.f32.mrb[2].mxu0 }
 0x102   : > { %v1308_v63 = vadd.f32 %v1307_v61, %v1306_v57  ;;  %v1309_v0 = vpop.f32.mrb[2].mxu1  ;;  %v1258_v1 = vpop.f32.mrb[3].mxu0 }
 0x103   : > { %v643_v2 = vadd.f32 %v1256_v60, %v1774_v58  ;;  %v1259_v3 = vadd.f32 %v1258_v1, %v1257_v62  ;;  %v1310_v4 = vpop.f32.mrb[3].mxu1 }
 0x104   : > { %v1311_v5 = vadd.f32 %v1310_v4, %v1309_v0 }
 0x105   : > { %v724_v6 = vadd.f32 %v1308_v63, %v643_v2  ;;  %v646_v7 = vadd.f32 %v1259_v3, %v1774_v58 }
 0x107   : > { %v727_v8 = vadd.f32 %v1311_v5, %v646_v7  ;;  %v1260_v9 = vpop.f32.mrb[4].mxu0  ;;  %v770_v12 = vmax.f32 %v724_v6, 0.0 }
 0x108   : > { %v1312_v10 = vpop.f32.mrb[4].mxu1  ;;  %v1261_v11 = vpop.f32.mrb[5].mxu0 }
 0x109   : > { %v771_v13 = vmax.f32 %v727_v8, 0.0  ;;  %v1262_v14 = vadd.f32 %v1261_v11, %v1260_v9  ;;  %v1313_v15 = vpop.f32.mrb[5].mxu1  ;;  %v1263_v16 = vpop.f32.mrb[6].mxu0 }
 0x10a   : > { %v1314_v17 = vadd.f32 %v1313_v15, %v1312_v10  ;;  %v1315_v18 = vpop.f32.mrb[6].mxu1  ;;  %v1264_v19 = vpop.f32.mrb[7].mxu0 }
 0x10b   : > { %v1206_v20 = vpack.c.bf16 %v771_v13, %v770_v12  ;;  %v651_v21 = vadd.f32 %v1262_v14, %v1774_v58  ;;  %v1265_v22 = vadd.f32 %v1264_v19, %v1263_v16  ;;  %v1316_v23 = vpop.f32.mrb[7].mxu1 }
 0x10c   : > { %v1317_v24 = vadd.f32 %v1316_v23, %v1315_v18 }
 0x10d   : > { %1207 = vst [vmem:[%s1780_s12] sm:$0xff] %v1206_v20   ;;  %v732_v25 = vadd.f32 %v1314_v17, %v651_v21  ;;  %v654_v26 = vadd.f32 %v1265_v22, %v1774_v58 }
 0x10f   : > { %v735_v27 = vadd.f32 %v1317_v24, %v654_v26  ;;  %v1266_v28 = vpop.f32.mrb[8].mxu0  ;;  %v772_v31 = vmax.f32 %v732_v25, 0.0 }
 0x110   : > { %v1318_v29 = vpop.f32.mrb[8].mxu1  ;;  %v1267_v30 = vpop.f32.mrb[9].mxu0 }
 0x111   : > { %v773_v32 = vmax.f32 %v735_v27, 0.0  ;;  %v1268_v33 = vadd.f32 %v1267_v30, %v1266_v28  ;;  %v1319_v34 = vpop.f32.mrb[9].mxu1  ;;  %v1269_v35 = vpop.f32.mrb[10].mxu0 }
 0x112   : > { %v1320_v36 = vadd.f32 %v1319_v34, %v1318_v29  ;;  %v1321_v37 = vpop.f32.mrb[10].mxu1  ;;  %v1270_v38 = vpop.f32.mrb[11].mxu0 }
 0x113   : > { %v1211_v39 = vpack.c.bf16 %v773_v32, %v772_v31  ;;  %v659_v40 = vadd.f32 %v1268_v33, %v1774_v58  ;;  %v1271_v41 = vadd.f32 %v1270_v38, %v1269_v35  ;;  %v1322_v42 = vpop.f32.mrb[11].mxu1 }
 0x114   : > { %v1323_v43 = vadd.f32 %v1322_v42, %v1321_v37 }
 0x115   : > { %1233 = vst [vmem:[%s1780_s12 + $0x8] sm:$0xff] %v1211_v39   ;;  %v740_v44 = vadd.f32 %v1320_v36, %v659_v40  ;;  %v662_v45 = vadd.f32 %v1271_v41, %v1774_v58 }
 0x117   : > { %v743_v46 = vadd.f32 %v1323_v43, %v662_v45  ;;  %v1272_v47 = vpop.f32.mrb[12].mxu0  ;;  %v774_v50 = vmax.f32 %v740_v44, 0.0 }
 0x118   : > { %v1324_v48 = vpop.f32.mrb[12].mxu1  ;;  %v1273_v49 = vpop.f32.mrb[13].mxu0 }
 0x119   : > { %v775_v51 = vmax.f32 %v743_v46, 0.0  ;;  %v1274_v52 = vadd.f32 %v1273_v49, %v1272_v47  ;;  %v1325_v53 = vpop.f32.mrb[13].mxu1  ;;  %v1275_v54 = vpop.f32.mrb[14].mxu0 }
 0x11a   : > { %v1326_v55 = vadd.f32 %v1325_v53, %v1324_v48  ;;  %v1327_v56 = vpop.f32.mrb[14].mxu1  ;;  %v1276_v57 = vpop.f32.mrb[15].mxu0 }
 0x11b   : > { %v1216_v59 = vpack.c.bf16 %v775_v51, %v774_v50  ;;  %v667_v60 = vadd.f32 %v1274_v52, %v1774_v58  ;;  %v1277_v61 = vadd.f32 %v1276_v57, %v1275_v54  ;;  %v1328_v62 = vpop.f32.mrb[15].mxu1 }
 0x11c   : > { %v1329_v63 = vadd.f32 %v1328_v62, %v1327_v56 }
 0x11d   : > { %1234 = vst [vmem:[%s1780_s12 + $0x10] sm:$0xff] %v1216_v59   ;;  %v748_v0 = vadd.f32 %v1326_v55, %v667_v60  ;;  %v670_v1 = vadd.f32 %v1277_v61, %v1774_v58 }
 0x11f   : > { %v751_v2 = vadd.f32 %v1329_v63, %v670_v1  ;;  %v1278_v3 = vpop.f32.mrb[16].mxu0  ;;  %v776_v6 = vmax.f32 %v748_v0, 0.0 }
 0x120   : > { %v1330_v4 = vpop.f32.mrb[16].mxu1  ;;  %v1279_v5 = vpop.f32.mrb[17].mxu0 }
 0x121   : > { %v777_v7 = vmax.f32 %v751_v2, 0.0  ;;  %v1280_v8 = vadd.f32 %v1279_v5, %v1278_v3  ;;  %v1331_v9 = vpop.f32.mrb[17].mxu1  ;;  %v1281_v10 = vpop.f32.mrb[18].mxu0 }
 0x122   : > { %v1332_v11 = vadd.f32 %v1331_v9, %v1330_v4  ;;  %v1333_v12 = vpop.f32.mrb[18].mxu1  ;;  %v1282_v13 = vpop.f32.mrb[19].mxu0 }
 0x123   : > { %v1221_v14 = vpack.c.bf16 %v777_v7, %v776_v6  ;;  %v675_v15 = vadd.f32 %v1280_v8, %v1774_v58  ;;  %v1283_v16 = vadd.f32 %v1282_v13, %v1281_v10  ;;  %v1334_v17 = vpop.f32.mrb[19].mxu1 }
 0x124   : > { %v1335_v18 = vadd.f32 %v1334_v17, %v1333_v12 }
 0x125   : > { %1235 = vst [vmem:[%s1780_s12 + $0x18] sm:$0xff] %v1221_v14   ;;  %v756_v19 = vadd.f32 %v1332_v11, %v675_v15  ;;  %v678_v20 = vadd.f32 %v1283_v16, %v1774_v58 }
 0x127   : > { %v759_v21 = vadd.f32 %v1335_v18, %v678_v20  ;;  %v1284_v22 = vpop.f32.mrb[20].mxu0  ;;  %v778_v25 = vmax.f32 %v756_v19, 0.0 }
 0x128   : > { %v1336_v23 = vpop.f32.mrb[20].mxu1  ;;  %v1285_v24 = vpop.f32.mrb[21].mxu0 }
 0x129   : > { %v779_v26 = vmax.f32 %v759_v21, 0.0  ;;  %v1286_v27 = vadd.f32 %v1285_v24, %v1284_v22  ;;  %v1337_v28 = vpop.f32.mrb[21].mxu1  ;;  %v1287_v29 = vpop.f32.mrb[22].mxu0 }
 0x12a   : > { %v1338_v30 = vadd.f32 %v1337_v28, %v1336_v23  ;;  %v1339_v31 = vpop.f32.mrb[22].mxu1  ;;  %v1288_v32 = vpop.f32.mrb[23].mxu0 }
 0x12b   : > { %v1226_v33 = vpack.c.bf16 %v779_v26, %v778_v25  ;;  %v683_v34 = vadd.f32 %v1286_v27, %v1774_v58  ;;  %v1289_v35 = vadd.f32 %v1288_v32, %v1287_v29  ;;  %v1340_v36 = vpop.f32.mrb[23].mxu1 }
 0x12c   : > { %v1341_v37 = vadd.f32 %v1340_v36, %v1339_v31 }
 0x12d   : > { %1236 = vst [vmem:[%s1780_s12 + $0x20] sm:$0xff] %v1226_v33   ;;  %v764_v38 = vadd.f32 %v1338_v30, %v683_v34  ;;  %v686_v39 = vadd.f32 %v1289_v35, %v1774_v58 }
 0x12f   : > { %v767_v40 = vadd.f32 %v1341_v37, %v686_v39  ;;  %v780_v41 = vmax.f32 %v764_v38, 0.0  ;;  %848 = sbr.rel (!%p1637_p4) target bundleno = 379 (0x17b), region = 36 }
 0x131   : > { %v781_v42 = vmax.f32 %v767_v40, 0.0 }
 0x133   : > { %v1231_v43 = vpack.c.bf16 %v781_v42, %v780_v41 }
 0x135   : > { %1237 = vst [vmem:[%s1780_s12 + $0x28] sm:$0xff] %v1231_v43  }
 0x136   : > { %s1868_s7 = smov (!%p851_p8, %s850_s7), 12 }
 0x137   : > { %s1177_s14 = sshll.u32 %s1868_s7, 6 }
 0x138   : > { %p1180_p9 = scmp.eq.s32.totalorder %s1177_s14, 0 }
 0x139   : > { %1500 = sdivrem.u32 (!%p1180_p9), %s1868_s7, 12 }
 0x13a   : > { %859 = sbr.rel (%p1180_p9) target bundleno = 379 (0x17b), region = 40 }
 0x142   : > { %s1810_s20 = spop.drf %1500 }
 0x143   : > { %p1181_p10 = scmp.le.s32.totalorder %s1810_s20, 0 }
 0x144   : > { %s1861_s15 = smov (!%p1181_p10), %s1804_s11  ;;  %s1862_s30 = smov (!%p1181_p10), %s1780_s12 }
 0x145   : > { %1058 = sbr.rel (%p1181_p10) target bundleno = 350 (0x15e), region = 112  ;;  %s1819_s17 = smov (!%p1181_p10), 0  }
 0x146   : > { %s1821_s18 = smov (!%p1181_p10), 0  }
 0x14c LB: >> { %v876_v58 = vld [vmem:[%s1566_s30] sm:$0xf]  ;;  %v878_v44 = vld [vmem:[%s1566_s30 + $0x4] sm:$0xf]  ;;  %v880_v45 = vld [vmem:[%s1566_s30 + $0x8] sm:$0xf]  ;;  %s1574_s18 = sphi %s1821_s18, %s870_s18   ;;  %s1570_s17 = sphi %s1819_s17, %s1863_s17   ;;  %s1566_s30 = sphi %s1862_s30, %s905_s30   ;;  %s1562_s15 = sphi %s1861_s15, %s906_s15  }
 0x14d   : >> { %877 = vst [vmem:[%s1562_s15] sm:$0xf] %v876_v58  ;;  %879 = vst [vmem:[%s1562_s15 + $0x4] sm:$0xf] %v878_v44  ;;  %v882_v46 = vld [vmem:[%s1566_s30 + $0xc] sm:$0xf]  ;;  %s900_s21 = sadd.s32 1, %s1570_s17 }
 0x14e   : >> { %881 = vst [vmem:[%s1562_s15 + $0x8] sm:$0xf] %v880_v45  ;;  %v884_v47 = vld [vmem:[%s1566_s30 + $0x10] sm:$0xf]  ;;  %v886_v48 = vld [vmem:[%s1566_s30 + $0x14] sm:$0xf]  ;;  %p901_p11 = scmp.ge.s32.totalorder %s900_s21, %s1810_s20 }
 0x14f   : >> { %883 = vst [vmem:[%s1562_s15 + $0xc] sm:$0xf] %v882_v46  ;;  %885 = vst [vmem:[%s1562_s15 + $0x10] sm:$0xf] %v884_v47  ;;  %v888_v49 = vld [vmem:[%s1566_s30 + $0x18] sm:$0xf] }
 0x150   : >> { %887 = vst [vmem:[%s1562_s15 + $0x14] sm:$0xf] %v886_v48  ;;  %v890_v50 = vld [vmem:[%s1566_s30 + $0x1c] sm:$0xf]  ;;  %v892_v51 = vld [vmem:[%s1566_s30 + $0x20] sm:$0xf] }
 0x151   : >> { %889 = vst [vmem:[%s1562_s15 + $0x18] sm:$0xf] %v888_v49  ;;  %891 = vst [vmem:[%s1562_s15 + $0x1c] sm:$0xf] %v890_v50  ;;  %v894_v52 = vld [vmem:[%s1566_s30 + $0x24] sm:$0xf] }
 0x152   : >> { %893 = vst [vmem:[%s1562_s15 + $0x20] sm:$0xf] %v892_v51  ;;  %v896_v53 = vld [vmem:[%s1566_s30 + $0x28] sm:$0xf]  ;;  %v898_v54 = vld [vmem:[%s1566_s30 + $0x2c] sm:$0xf] }
 0x153   : >> { %895 = vst [vmem:[%s1562_s15 + $0x24] sm:$0xf] %v894_v52  ;;  %897 = vst [vmem:[%s1562_s15 + $0x28] sm:$0xf] %v896_v53  ;;  %s1870_s21 = smov (%p901_p11, %s900_s21), 0  ;;  %s870_s18 = sadd.s32 1, %s1574_s18  }
 0x154   : >> { %899 = vst [vmem:[%s1562_s15 + $0x2c] sm:$0xf] %v898_v54  ;;  %s903_s22 = smul.u32 48, %s1870_s21  ;;  %p869_p12 = scmp.ge.s32.totalorder %s870_s18, %s1810_s20 }
 0x155   : >> { %s1863_s17 = smov %s1870_s21 }
 0x156   : >> { %s905_s30 = scalar_lea.vmem %s1780_s12, %s903_s22 [#allocation2]   ;;  %s906_s15 = scalar_lea.vmem %s1804_s11, %s903_s22  }
 0x157   : > { %872 = sbr.rel (!%p869_p12) target bundleno = 332 (0x14c), region = 118 }
 0x15e PF: > { %1502 = sdivrem.u32 %s1868_s7, 12 }
 0x15f   : > { %s1182_s23 = smul.u32 48, %s1810_s20 }
 0x161   : > { %s911_s24 = scalar_lea.vmem %s1780_s12, %s1182_s23 [#allocation2]   ;;  %s913_s25 = scalar_lea.vmem %s1804_s11, %s1182_s23  }
 0x167   : > { %s1503_s26 = spop.drf %1502 }
 0x168   : > { %p1184_p13 = scmp.le.s32.totalorder %s1503_s26, 0 }
 0x169   : > { %s1576_s27 = smov (!%p1184_p13), %s913_s25   ;;  %s1580_s28 = smov (!%p1184_p13), %s911_s24  }
 0x16a   : > { %1072 = sbr.rel (%p1184_p13) target bundleno = 379 (0x17b), region = 123  ;;  %s1584_s29 = smov (!%p1184_p13), 0  }
 0x16b   : > { %s1588_s4 = smov (!%p1184_p13), 0  }
 0x171 LB: >> { %v923_v55 = vld [vmem:[%s1582_s28] sm:$0xf]  ;;  %s925_s5 = sadd.s32 1, %s1586_s29  ;;  %s917_s4 = sadd.s32 1, %s1590_s4   ;;  %s1590_s4 = sphi %s1588_s4, %s917_s4   ;;  %s1586_s29 = sphi %s1584_s29, %s1585_s29   ;;  %s1582_s28 = sphi %s1580_s28, %s930_s28   ;;  %s1578_s27 = sphi %s1576_s27, %s931_s27  }
 0x172   : >> { %924 = vst [vmem:[%s1578_s27] sm:$0xf] %v923_v55  ;;  %p926_p0 = scmp.ge.s32.totalorder %s925_s5, %s1503_s26  ;;  %p916_p1 = scmp.ge.s32.totalorder %s917_s4, %s1503_s26 }
 0x174   : >> { %s1872_s5 = smov (%p926_p0, %s925_s5), 0  ;;  %919 = sbr.rel (!%p916_p1) target bundleno = 369 (0x171), region = 129 }
 0x175   : >> { %s1185_s6 = sshll.u32 %s1872_s5, 2  ;;  %s1585_s29 = smov %s1872_s5  }
 0x176   : >> { %s930_s28 = scalar_lea.vmem %s911_s24, %s1185_s6 [#allocation2]   ;;  %s931_s27 = scalar_lea.vmem %s913_s25, %s1185_s6  }
 0x17b PF: > { %p10_p2 = scmp.ge.s32.totalorder %s1627_s16, 4   ;;  %s1864_s12 = smov %s1554_s13 }
 0x17c   : > { %s1865_s13 = smov %s1635_s19  ;;  %s1866_s14 = smov %s1627_s16 }
 0x17d   :  { %12 = sbr.rel (!%p10_p2) target bundleno = 2 (0x2), region = 140 }

// kernel: nature_cnn_forward.6
= control target key start
LH: loop header
LB: loop body
LE: loop exit
PB: predicated region body
PF: predicated region fallthrough
CT: control target
= control target key end

     0   :  { %s1618_s12 = smov 0   ;;  %s1620_s13 = smov 0   ;;  %s1859_s0 = inlined_call_operand.vmem [shape: bf16[98,576], index: 0, kind: input, shape index: {}]   ;;  %s1860_s1 = inlined_call_operand.vmem [shape: bf16[576,128], index: 1, kind: input, shape index: {}]   ;;  %s1861_s2 = inlined_call_operand.vmem [shape: f32[1,128], index: 2, kind: input, shape index: {}]   ;;  %s1862_s3 = inlined_call_operand.vmem [shape: bf16[98,128], index: 3, kind: output, shape index: {}]  }
   0x1   :  { %s1622_s14 = smov 0  }
   0x2 LB: > { %s1631_s15 = sadd.s32 4294967295, %s1564_s14   ;;  %s1633_s16 = sadd.s32 1, %s1564_s14   ;;  %s1564_s14 = sphi %s1622_s14, %s1869_s14   ;;  %s1560_s13 = sphi %s1620_s13, %s1868_s13   ;;  %s1556_s12 = sphi %s1618_s12, %s1867_s12  }
   0x3   : > { %s85_s17 = ssub.s32 %s1564_s14, %s1633_s16  ;;  %s88_s18 = sadd.s32 1, %s1560_s13 }
   0x4   : > { %p86_p0 = scmp.eq.s32.totalorder %s85_s17, 0  ;;  %p98_p1 = scmp.ne.s32.totalorder %s1560_s13, %s1556_s12 }
   0x5   : > { %p99_p2 = scmp.eq.s32.totalorder %s1631_s15, 1  ;;  %p1121_p3 = scmp.ge.s32.totalorder %s1564_s14, 1 }
   0x6   : > { %s1641_s19 = scalar_select %p86_p0, %s1560_s13, %s88_s18  }
   0x7   : > { %p1643_p4 = por %p99_p2, %p98_p1  ;;  %p149_p5 = scmp.lt.s32.totalorder %s1564_s14, 3 }
   0x9   : > { %p150_p6 = pnand %p1121_p3, %p149_p5 }
   0xa   : > { %v1446_v0 = vld [vmem:[%s1860_s1 + $0x40] sm:$0xff] (!%p150_p6)   ;;  %v1450_v4 = vld [vmem:[%s1860_s1 + $0x48] sm:$0xff] (!%p150_p6)   ;;  %v1454_v8 = vld [vmem:[%s1860_s1 + $0x50] sm:$0xff] (!%p150_p6)   ;;  %s1693_s30 = sshll.u32 (!%p150_p6), %s1631_s15, 3  ;;  %vm620_vm0 = vcmask (!%p150_p6), 523264   ;;  %s175_s17 = sand.u32 (!%p150_p6), 1, %s1556_s12  }
   0xb   : > { %153 = sbr.rel (%p150_p6) target bundleno = 353 (0x161), region = 32  ;;  %v1447_v1 = vld [vmem:[%s1860_s1 + $0xc0] sm:$0xff] (!%p150_p6)   ;;  %1245 = vmatprep.subr.bf16.mxu0 (!%p150_p6), %v1446_v0  ;;  %v1451_v5 = vld [vmem:[%s1860_s1 + $0xc8] sm:$0xff] (!%p150_p6)   ;;  %v1455_v9 = vld [vmem:[%s1860_s1 + $0xd0] sm:$0xff] (!%p150_p6)   ;;  %p184_p7 = scmp.lt.s32.totalorder (!%p150_p6), %s1693_s30, 12 }
   0xc   : > { %v1448_v2 = vld [vmem:[%s1860_s1] sm:$0xff] (!%p150_p6)   ;;  %1285 = vmatprep.subr.bf16.mxu1 (!%p150_p6), %v1447_v1  ;;  %v1452_v6 = vld [vmem:[%s1860_s1 + $0x8] sm:$0xff] (!%p150_p6)   ;;  %v1456_v10 = vld [vmem:[%s1860_s1 + $0x10] sm:$0xff] (!%p150_p6)   ;;  %s1122_s18 = sshll.u32 (!%p150_p6), %s175_s17, 5 }
   0xd   : > { %v1449_v3 = vld [vmem:[%s1860_s1 + $0x80] sm:$0xff] (!%p150_p6)   ;;  %1246 = vmatpush3.bf16.msra.mxu0 (!%p150_p6), %v1448_v2  ;;  %v1453_v7 = vld [vmem:[%s1860_s1 + $0x88] sm:$0xff] (!%p150_p6)   ;;  %v1457_v11 = vld [vmem:[%s1860_s1 + $0x90] sm:$0xff] (!%p150_p6)   ;;  %s1792_s12 = scalar_lea.vmem (!%p150_p6), [#allocation2], %s1122_s18  }
   0xe   : > { %1286 = vmatpush3.bf16.msra.mxu1 (!%p150_p6), %v1449_v3  ;;  %1247 = vmatprep.subr.bf16.mxu0 (!%p150_p6), %v1450_v4  ;;  %v1458_v12 = vld [vmem:[%s1860_s1 + $0x58] sm:$0xff] (!%p150_p6)   ;;  %v1462_v16 = vld [vmem:[%s1860_s1 + $0x60] sm:$0xff] (!%p150_p6)   ;;  %v1466_v20 = vld [vmem:[%s1860_s1 + $0x68] sm:$0xff] (!%p150_p6)  }
   0xf   : > { %1287 = vmatprep.subr.bf16.mxu1 (!%p150_p6), %v1451_v5  ;;  %v1459_v13 = vld [vmem:[%s1860_s1 + $0xd8] sm:$0xff] (!%p150_p6)   ;;  %v1463_v17 = vld [vmem:[%s1860_s1 + $0xe0] sm:$0xff] (!%p150_p6)   ;;  %v1467_v21 = vld [vmem:[%s1860_s1 + $0xe8] sm:$0xff] (!%p150_p6)  }
  0x10   : > { %v1460_v14 = vld [vmem:[%s1860_s1 + $0x18] sm:$0xff] (!%p150_p6)   ;;  %v1464_v18 = vld [vmem:[%s1860_s1 + $0x20] sm:$0xff] (!%p150_p6)   ;;  %v1468_v22 = vld [vmem:[%s1860_s1 + $0x28] sm:$0xff] (!%p150_p6)  }
  0x11   : > { %1248 = vmatpush3.bf16.msra.mxu0 (!%p150_p6), %v1452_v6  ;;  %v1461_v15 = vld [vmem:[%s1860_s1 + $0x98] sm:$0xff] (!%p150_p6)   ;;  %v1465_v19 = vld [vmem:[%s1860_s1 + $0xa0] sm:$0xff] (!%p150_p6)   ;;  %v1469_v23 = vld [vmem:[%s1860_s1 + $0xa8] sm:$0xff] (!%p150_p6)  }
  0x12   : > { %1288 = vmatpush3.bf16.msra.mxu1 %v1453_v7  ;;  %1249 = vmatprep.subr.bf16.mxu0 %v1454_v8  ;;  %s185_s24 = scalar_select %p184_p7, %s1693_s30, 12  ;;  %v1470_v24 = vld [vmem:[%s1860_s1 + $0x70] sm:$0xff]   ;;  %v1474_v28 = vld [vmem:[%s1860_s1 + $0x78] sm:$0xff]   ;;  %v1484_v36 = vld [vmem:[%s1860_s1 + $0x100] sm:$0xff]  }
  0x13   : > { %1289 = vmatprep.subr.bf16.mxu1 %v1455_v9  ;;  %v1471_v25 = vld [vmem:[%s1860_s1 + $0xf0] sm:$0xff]   ;;  %v1475_v29 = vld [vmem:[%s1860_s1 + $0xf8] sm:$0xff]   ;;  %v1491_v39 = vld [vmem:[%s1860_s1 + $0x108] sm:$0xff]   ;;  %s884_s21 = ssub.s32 (%p1643_p4), 13, %s1693_s30  ;;  %s1219_s22 = sshll.u32 (%p1643_p4), %s1631_s15, 5 }
  0x14   : > { %s1357_s7 = smul.u32 20, %s185_s24  ;;  %v1472_v26 = vld [vmem:[%s1860_s1 + $0x30] sm:$0xff]   ;;  %v1476_v30 = vld [vmem:[%s1860_s1 + $0x38] sm:$0xff]   ;;  %v1125_v58 = vld [vmem:[%s1861_s2] ss:$0 sm:$0xff]  ;;  %p885_p8 = scmp.lt.s32.totalorder (%p1643_p4), %s884_s21, 8 }
  0x15   : > { %1250 = vmatpush3.bf16.msra.mxu0 %v1456_v10  ;;  %v1473_v27 = vld [vmem:[%s1860_s1 + $0xb0] sm:$0xff]   ;;  %v1477_v31 = vld [vmem:[%s1860_s1 + $0xb8] sm:$0xff]   ;;  %s1805_s25 = scalar_lea.vmem (%p1643_p4), %s1862_s3, %s1219_s22  }
  0x16   : > { %1290 = vmatpush3.bf16.msra.mxu1 %v1457_v11  ;;  %1251 = vmatprep.subr.bf16.mxu0 %v1458_v12  ;;  %s1745_s24 = scalar_lea.vmem %s1859_s0, %s1357_s7  ;;  %v1498_v44 = vld [vmem:[%s1860_s1 + $0x110] sm:$0xff]   ;;  %v1505_v45 = vld [vmem:[%s1860_s1 + $0x118] sm:$0xff]  }
  0x17   : > { %1291 = vmatprep.subr.bf16.mxu1 %v1459_v13  ;;  %v1478_v32 = vld [vmem:[%s1745_s24] ss:$20 sps:$4 sm:$0xff]   ;;  %v1480_v33 = vld [vmem:[%s1745_s24 + $0x4] ss:$20 sps:$4 sm:$0xff]   ;;  %v1481_v34 = vld [vmem:[%s1745_s24 + $0x8] ss:$20 sps:$4 sm:$0xff]  }
  0x18   : > { %v1483_v35 = vld [vmem:[%s1745_s24 + $0xc] ss:$20 sps:$4 sm:$0xff]   ;;  %665 = vmatprep.mubr.bf16.mxu0 %v1480_v33  ;;  %v1487_v38 = vld [vmem:[%s1745_s24 + $0x34] ss:$20 sps:$4 sm:$0xff]   ;;  %v1490_v41 = vld [vmem:[%s1745_s24 + $0x30] ss:$20 sps:$4 sm:$0xff]  }
  0x19   : > { %1252 = vmatpush3.bf16.msra.mxu0 %v1460_v14  ;;  %730 = vmatprep.mubr.bf16.mxu1 %v1483_v35  ;;  %v1485_v37 = vld [vmem:[%s1745_s24 + $0x2c] ss:$20 sps:$4 sm:$0xff]   ;;  %v1489_v40 = vld [vmem:[%s1745_s24 + $0x28] ss:$20 sps:$4 sm:$0xff]   ;;  %v1496_v46 = vld [vmem:[%s1745_s24 + $0x50] ss:$20 sps:$4 sm:$0xff]  }
  0x1a   : > { %1292 = vmatpush3.bf16.msra.mxu1 %v1461_v15  ;;  %1253 = vmatprep.subr.bf16.mxu0 %v1462_v16  ;;  %v1492_v42 = vld [vmem:[%s1745_s24 + $0x54] ss:$20 sps:$4 sm:$0xff]   ;;  %v1494_v43 = vld [vmem:[%s1745_s24 + $0x5c] ss:$20 sps:$4 sm:$0xff]   ;;  %v1497_v47 = vld [vmem:[%s1745_s24 + $0x58] ss:$20 sps:$4 sm:$0xff]  }
  0x1b   : > { %1293 = vmatprep.subr.bf16.mxu1 %v1463_v17  ;;  %v1499_v48 = vld [vmem:[%s1745_s24 + $0x7c] ss:$20 sps:$4 sm:$0xff]   ;;  %v1501_v49 = vld [vmem:[%s1745_s24 + $0x84] ss:$20 sps:$4 sm:$0xff]   ;;  %v1504_v51 = vld [vmem:[%s1745_s24 + $0x80] ss:$20 sps:$4 sm:$0xff]  }
  0x1c   : > { %v1503_v50 = vld [vmem:[%s1745_s24 + $0x78] ss:$20 sps:$4 sm:$0xff]   ;;  %v1506_v52 = vld [vmem:[%s1745_s24 + $0x10] ss:$20 sps:$4 sm:$0xff]   ;;  %v1507_v53 = vld [vmem:[%s1745_s24 + $0x60] ss:$20 sps:$4 sm:$0xff]  }
  0x1d   : > { %1254 = vmatpush3.bf16.msra.mxu0 %v1464_v18  ;;  %v1508_v54 = vld [vmem:[%s1745_s24 + $0x38] ss:$20 sps:$4 sm:$0xff]   ;;  %v1509_v55 = vld [vmem:[%s1745_s24 + $0x88] ss:$20 sps:$4 sm:$0xff]  }
  0x1e   : > { %1294 = vmatpush3.bf16.msra.mxu1 %v1465_v19  ;;  %1255 = vmatprep.subr.bf16.mxu0 %v1466_v20 }
  0x1f   : > { %1295 = vmatprep.subr.bf16.mxu1 %v1467_v21 }
  0x21   : > { %1256 = vmatpush3.bf16.msra.mxu0 %v1468_v22 }
  0x22   : > { %1296 = vmatpush3.bf16.msra.mxu1 %v1469_v23  ;;  %1257 = vmatprep.subr.bf16.mxu0 %v1470_v24 }
  0x23   : > { %1297 = vmatprep.subr.bf16.mxu1 %v1471_v25 }
  0x25   : > { %1258 = vmatpush3.bf16.msra.mxu0 %v1472_v26 }
  0x26   : > { %1298 = vmatpush3.bf16.msra.mxu1 %v1473_v27  ;;  %1259 = vmatprep.subr.bf16.mxu0 %v1474_v28 }
  0x27   : > { %1299 = vmatprep.subr.bf16.mxu1 %v1475_v29 }
  0x29   : > { %1260 = vmatpush3.bf16.msra.mxu0 %v1476_v30 }
  0x2a   : > { %1300 = vmatpush3.bf16.msra.mxu1 %v1477_v31  ;;  %1333 = vmatprep.subr.bf16.mxu0 %v1484_v36 }
  0x2b   : > { %1349 = vmatprep.subr.bf16.mxu1 %v1484_v36 }
  0x2c   : > { %666 = vmatmul.mubr.bf16.vlgmr.msra.gmra.mrb[0].mxu0 %v1478_v32 }
  0x2d   : > { %731 = vmatmul.mubr.bf16.vlgmr.msra.gmra.mrb[0].mxu1 %v1481_v34  ;;  %1334 = vmatpush3.bf16.msra.mxu0 %v1484_v36 }
  0x2e   : > { %1353 = vmatpush3.bf16.msra.mxu1 %v1484_v36  ;;  %673 = vmatprep.mubr.bf16.mxu0 %v1485_v37 }
  0x2f   : > { %738 = vmatprep.mubr.bf16.mxu1 %v1487_v38  ;;  %1335 = vmatprep.subr.bf16.mxu0 %v1491_v39 }
  0x30   : > { %1350 = vmatprep.subr.bf16.mxu1 %v1491_v39 }
  0x31   : > { %1336 = vmatpush3.bf16.msra.mxu0 %v1491_v39 }
  0x32   : > { %1354 = vmatpush3.bf16.msra.mxu1 %v1491_v39  ;;  %1337 = vmatprep.subr.bf16.mxu0 %v1498_v44 }
  0x33   : > { %1351 = vmatprep.subr.bf16.mxu1 %v1498_v44 }
  0x34   : > { %674 = vmatmul.mubr.bf16.gmra.mrb[4].mxu0 %v1489_v40 }
  0x35   : > { %739 = vmatmul.mubr.bf16.gmra.mrb[4].mxu1 %v1490_v41  ;;  %681 = vmatprep.mubr.bf16.mxu0 %v1492_v42 }
  0x36   : > { %746 = vmatprep.mubr.bf16.mxu1 %v1494_v43  ;;  %1338 = vmatpush3.bf16.msra.mxu0 %v1498_v44 }
  0x37   : > { %1355 = vmatpush3.bf16.msra.mxu1 %v1498_v44  ;;  %1339 = vmatprep.subr.bf16.mxu0 %v1505_v45 }
  0x38   : > { %1352 = vmatprep.subr.bf16.mxu1 %v1505_v45 }
  0x3a   : > { %1340 = vmatpush3.bf16.msra.mxu0 %v1505_v45 }
  0x3b   : > { %1356 = vmatpush3.bf16.msra.mxu1 %v1505_v45 }
  0x3c   : > { %682 = vmatmul.mubr.bf16.gmra.mrb[8].mxu0 %v1496_v46 }
  0x3d   : > { %747 = vmatmul.mubr.bf16.gmra.mrb[8].mxu1 %v1497_v47  ;;  %689 = vmatprep.mubr.bf16.mxu0 %v1499_v48 }
  0x3e   : > { %754 = vmatprep.mubr.bf16.mxu1 %v1501_v49 }
  0x44   : > { %690 = vmatmul.mubr.bf16.gmra.mrb[12].mxu0 %v1503_v50 }
  0x45   : > { %755 = vmatmul.mubr.bf16.gmra.mrb[12].mxu1 %v1504_v51  ;;  %1341 = vmatprep.mubr.msk.bf16.mxu0 %vm620_vm0, %v1506_v52 }
  0x46   : > { %1345 = vmatprep.mubr.msk.bf16.mxu1 %vm620_vm0, %v1507_v53 }
  0x4c   : > { %1342 = vmatmul.mubr.msk.bf16.vlgmr.msra.gmra.mrb[16].mxu0 %vm620_vm0, %v1508_v54 }
  0x4d   : > { %1346 = vmatmul.mubr.msk.bf16.vlgmr.msra.gmra.mrb[16].mxu1 %vm620_vm0, %v1509_v55 }
  0xff   : > { %v1261_v56 = vpop.f32.mrb[0].mxu0 }
 0x100   : > { %v1301_v57 = vpop.f32.mrb[0].mxu1  ;;  %v1262_v59 = vpop.f32.mrb[1].mxu0 }
 0x101   : > { %v1263_v60 = vadd.f32 %v1262_v59, %v1261_v56  ;;  %v1302_v61 = vpop.f32.mrb[1].mxu1  ;;  %v1264_v62 = vpop.f32.mrb[2].mxu0 }
 0x102   : > { %v1303_v63 = vadd.f32 %v1302_v61, %v1301_v57  ;;  %v1304_v0 = vpop.f32.mrb[2].mxu1  ;;  %v1265_v1 = vpop.f32.mrb[3].mxu0 }
 0x103   : > { %v668_v2 = vadd.f32 %v1263_v60, %v1125_v58  ;;  %v1266_v3 = vadd.f32 %v1265_v1, %v1264_v62  ;;  %v1305_v4 = vpop.f32.mrb[3].mxu1 }
 0x104   : > { %v1306_v5 = vadd.f32 %v1305_v4, %v1304_v0 }
 0x105   : > { %v671_v6 = vadd.f32 %v1266_v3, %v1125_v58  ;;  %v733_v7 = vadd.f32 %v1303_v63, %v668_v2 }
 0x107   : > { %v1267_v8 = vpop.f32.mrb[4].mxu0  ;;  %v1788_v9 = vadd.f32 %v1306_v5, %v671_v6 }
 0x108   : > { %v1307_v10 = vpop.f32.mrb[4].mxu1  ;;  %v1268_v11 = vpop.f32.mrb[5].mxu0 }
 0x109   : > { %v1269_v12 = vadd.f32 %v1268_v11, %v1267_v8  ;;  %v1308_v13 = vpop.f32.mrb[5].mxu1  ;;  %v1270_v14 = vpop.f32.mrb[6].mxu0 }
 0x10a   : > { %v1309_v15 = vadd.f32 %v1308_v13, %v1307_v10  ;;  %v1310_v16 = vpop.f32.mrb[6].mxu1  ;;  %v1271_v17 = vpop.f32.mrb[7].mxu0 }
 0x10b   : > { %v676_v18 = vadd.f32 %v1269_v12, %v1125_v58  ;;  %v1272_v19 = vadd.f32 %v1271_v17, %v1270_v14  ;;  %v1311_v20 = vpop.f32.mrb[7].mxu1 }
 0x10c   : > { %v1312_v21 = vadd.f32 %v1311_v20, %v1310_v16 }
 0x10d   : > { %v679_v22 = vadd.f32 %v1272_v19, %v1125_v58  ;;  %v741_v23 = vadd.f32 %v1309_v15, %v676_v18 }
 0x10f   : > { %v1273_v24 = vpop.f32.mrb[8].mxu0  ;;  %v744_v25 = vadd.f32 %v1312_v21, %v679_v22 }
 0x110   : > { %v1313_v26 = vpop.f32.mrb[8].mxu1  ;;  %v1274_v27 = vpop.f32.mrb[9].mxu0 }
 0x111   : > { %v1275_v28 = vadd.f32 %v1274_v27, %v1273_v24  ;;  %v1314_v29 = vpop.f32.mrb[9].mxu1  ;;  %v1276_v30 = vpop.f32.mrb[10].mxu0 }
 0x112   : > { %v1315_v31 = vadd.f32 %v1314_v29, %v1313_v26  ;;  %v1316_v32 = vpop.f32.mrb[10].mxu1  ;;  %v1277_v33 = vpop.f32.mrb[11].mxu0 }
 0x113   : > { %v684_v34 = vadd.f32 %v1275_v28, %v1125_v58  ;;  %v1278_v35 = vadd.f32 %v1277_v33, %v1276_v30  ;;  %v1317_v36 = vpop.f32.mrb[11].mxu1 }
 0x114   : > { %v1318_v37 = vadd.f32 %v1317_v36, %v1316_v32 }
 0x115   : > { %v687_v38 = vadd.f32 %v1278_v35, %v1125_v58  ;;  %v749_v39 = vadd.f32 %v1315_v31, %v684_v34 }
 0x117   : > { %v1279_v40 = vpop.f32.mrb[12].mxu0  ;;  %v752_v41 = vadd.f32 %v1318_v37, %v687_v38 }
 0x118   : > { %v1319_v42 = vpop.f32.mrb[12].mxu1  ;;  %v1280_v43 = vpop.f32.mrb[13].mxu0 }
 0x119   : > { %v1281_v44 = vadd.f32 %v1280_v43, %v1279_v40  ;;  %v1320_v45 = vpop.f32.mrb[13].mxu1  ;;  %v1282_v46 = vpop.f32.mrb[14].mxu0 }
 0x11a   : > { %v1321_v47 = vadd.f32 %v1320_v45, %v1319_v42  ;;  %v1322_v48 = vpop.f32.mrb[14].mxu1  ;;  %v1283_v49 = vpop.f32.mrb[15].mxu0 }
 0x11b   : > { %v692_v50 = vadd.f32 %v1281_v44, %v1125_v58  ;;  %v1284_v51 = vadd.f32 %v1283_v49, %v1282_v46  ;;  %v1323_v52 = vpop.f32.mrb[15].mxu1 }
 0x11c   : > { %v1324_v53 = vadd.f32 %v1323_v52, %v1322_v48 }
 0x11d   : > { %v695_v54 = vadd.f32 %v1284_v51, %v1125_v58  ;;  %v757_v55 = vadd.f32 %v1321_v47, %v692_v50 }
 0x11f   : > { %v1343_v56 = vpop.f32.mrb[16].mxu0  ;;  %v760_v57 = vadd.f32 %v1324_v53, %v695_v54 }
 0x120   : > { %v806_v59 = vadd.f32 %v1343_v56, %v741_v23  ;;  %v1347_v60 = vpop.f32.mrb[16].mxu1  ;;  %v797_v61 = vpop.f32.mrb[17].mxu0 }
 0x121   : > { %v822_v62 = vadd.f32 %v1347_v60, %v757_v55  ;;  %v798_v63 = vadd.f32 %v797_v61, %v733_v7  ;;  %v813_v0 = vpop.f32.mrb[17].mxu1  ;;  %v1344_v1 = vpop.f32.mrb[18].mxu0 }
 0x122   : > { %v814_v2 = vadd.f32 %v813_v0, %v749_v39  ;;  %v809_v3 = vadd.f32 %v1344_v1, %v744_v25  ;;  %v1348_v4 = vpop.f32.mrb[18].mxu1  ;;  %v800_v5 = vpop.f32.mrb[19].mxu0  ;;  %v830_v10 = vmax.f32 %v806_v59, 0.0 }
 0x123   : > { %v825_v6 = vadd.f32 %v1348_v4, %v760_v57  ;;  %v801_v8 = vadd.f32 %v800_v5, %v1788_v9  ;;  %v816_v58 = vpop.f32.mrb[19].mxu1  ;;  %v834_v13 = vmax.f32 %v822_v62, 0.0  ;;  %v828_v14 = vmax.f32 %v798_v63, 0.0 }
 0x124   : > { %v831_v11 = vmax.f32 %v809_v3, 0.0  ;;  %v817_v12 = vadd.f32 %v816_v58, %v752_v41  ;;  %v832_v17 = vmax.f32 %v814_v2, 0.0  ;;  %882 = sbr.rel (!%p1643_p4) target bundleno = 353 (0x161), region = 36 }
 0x125   : > { %v835_v15 = vmax.f32 %v825_v6, 0.0  ;;  %v829_v16 = vmax.f32 %v801_v8, 0.0 }
 0x126   : > { %v1230_v7 = vpack.c.bf16 %v831_v11, %v830_v10  ;;  %v833_v18 = vmax.f32 %v817_v12, 0.0 }
 0x127   : > { %v1240_v19 = vpack.c.bf16 %v835_v15, %v834_v13  ;;  %v1225_v20 = vpack.c.bf16 %v829_v16, %v828_v14 }
 0x128   : > { %1242 = vst [vmem:[%s1792_s12 + $0x8] sm:$0xff] %v1230_v7   ;;  %v1235_v9 = vpack.c.bf16 %v833_v18, %v832_v17 }
 0x129   : > { %1244 = vst [vmem:[%s1792_s12 + $0x18] sm:$0xff] %v1240_v19   ;;  %1226 = vst [vmem:[%s1792_s12] sm:$0xff] %v1225_v20  }
 0x12a   : > { %1243 = vst [vmem:[%s1792_s12 + $0x10] sm:$0xff] %v1235_v9  }
 0x12b   : > { %s1871_s21 = smov (!%p885_p8, %s884_s21), 8 }
 0x12c   : > { %s1196_s26 = sshll.u32 %s1871_s21, 6 }
 0x12d   : > { %p1199_p9 = scmp.eq.s32.totalorder %s1196_s26, 0 }
 0x12e   : > { %s1811_s27 = sshrl.u32 (!%p1199_p9), %s1871_s21, 3 }
 0x12f   : > { %893 = sbr.rel (%p1199_p9) target bundleno = 353 (0x161), region = 40  ;;  %p1200_p10 = scmp.le.s32.totalorder (!%p1199_p9), %s1811_s27, 0 }
 0x136   : > { %1074 = sbr.rel (%p1200_p10) target bundleno = 332 (0x14c), region = 112  ;;  %s1864_s15 = smov (!%p1200_p10), %s1805_s25 }
 0x137   : > { %s1865_s20 = smov (!%p1200_p10), %s1792_s12  ;;  %s1820_s30 = smov (!%p1200_p10), 0  }
 0x138   : > { %s1822_s28 = smov (!%p1200_p10), 0  }
 0x13d LB: >> { %v909_v21 = vld [vmem:[%s1572_s20] sm:$0xf]  ;;  %v911_v22 = vld [vmem:[%s1572_s20 + $0x4] sm:$0xf]  ;;  %v913_v23 = vld [vmem:[%s1572_s20 + $0x8] sm:$0xf]  ;;  %s1580_s28 = sphi %s1822_s28, %s903_s28   ;;  %s1576_s30 = sphi %s1820_s30, %s1866_s30   ;;  %s1572_s20 = sphi %s1865_s20, %s930_s20   ;;  %s1568_s15 = sphi %s1864_s15, %s931_s15  }
 0x13e   : >> { %910 = vst [vmem:[%s1568_s15] sm:$0xf] %v909_v21  ;;  %912 = vst [vmem:[%s1568_s15 + $0x4] sm:$0xf] %v911_v22  ;;  %v915_v24 = vld [vmem:[%s1572_s20 + $0xc] sm:$0xf]  ;;  %s925_s29 = sadd.s32 1, %s1576_s30 }
 0x13f   : >> { %914 = vst [vmem:[%s1568_s15 + $0x8] sm:$0xf] %v913_v23  ;;  %v917_v25 = vld [vmem:[%s1572_s20 + $0x10] sm:$0xf]  ;;  %v919_v26 = vld [vmem:[%s1572_s20 + $0x14] sm:$0xf]  ;;  %p926_p11 = scmp.ge.s32.totalorder %s925_s29, %s1811_s27 }
 0x140   : >> { %916 = vst [vmem:[%s1568_s15 + $0xc] sm:$0xf] %v915_v24  ;;  %918 = vst [vmem:[%s1568_s15 + $0x10] sm:$0xf] %v917_v25  ;;  %v921_v27 = vld [vmem:[%s1572_s20 + $0x18] sm:$0xf] }
 0x141   : >> { %920 = vst [vmem:[%s1568_s15 + $0x14] sm:$0xf] %v919_v26  ;;  %v923_v28 = vld [vmem:[%s1572_s20 + $0x1c] sm:$0xf]  ;;  %922 = vst [vmem:[%s1568_s15 + $0x18] sm:$0xf] %v921_v27 }
 0x142   : >> { %924 = vst [vmem:[%s1568_s15 + $0x1c] sm:$0xf] %v923_v28  ;;  %s1873_s29 = smov (%p926_p11, %s925_s29), 0  ;;  %s903_s28 = sadd.s32 1, %s1580_s28  }
 0x143   : >> { %s1201_s4 = sshll.u32 %s1873_s29, 5  ;;  %p902_p12 = scmp.ge.s32.totalorder %s903_s28, %s1811_s27 }
 0x144   : >> { %s930_s20 = scalar_lea.vmem %s1792_s12, %s1201_s4 [#allocation2]   ;;  %s931_s15 = scalar_lea.vmem %s1805_s25, %s1201_s4  }
 0x145   : >> { %s1866_s30 = smov %s1873_s29  ;;  %905 = sbr.rel (!%p902_p12) target bundleno = 317 (0x13d), region = 118 }
 0x14c PF: > { %s1841_s5 = sand.u32 7, %s1871_s21   ;;  %s1220_s6 = sshll.u32 %s1811_s27, 5 }
 0x14d   : > { %s936_s7 = scalar_lea.vmem %s1792_s12, %s1220_s6 [#allocation2]   ;;  %s938_s8 = scalar_lea.vmem %s1805_s25, %s1220_s6  }
 0x14e   : > { %p1206_p13 = scmp.le.s32.totalorder %s1841_s5, 0 }
 0x14f   : > { %s1582_s9 = smov (!%p1206_p13), %s938_s8   ;;  %s1586_s10 = smov (!%p1206_p13), %s936_s7  }
 0x150   : > { %1088 = sbr.rel (%p1206_p13) target bundleno = 353 (0x161), region = 123  ;;  %s1590_s11 = smov (!%p1206_p13), 0  }
 0x151   : > { %s1594_s14 = smov (!%p1206_p13), 0  }
 0x157 LB: >> { %v948_v29 = vld [vmem:[%s1588_s10] sm:$0xf]  ;;  %s950_s17 = sadd.s32 1, %s1592_s11  ;;  %s942_s14 = sadd.s32 1, %s1596_s14   ;;  %s1596_s14 = sphi %s1594_s14, %s942_s14   ;;  %s1592_s11 = sphi %s1590_s11, %s1591_s11   ;;  %s1588_s10 = sphi %s1586_s10, %s955_s10   ;;  %s1584_s9 = sphi %s1582_s9, %s956_s9  }
 0x158   : >> { %949 = vst [vmem:[%s1584_s9] sm:$0xf] %v948_v29  ;;  %p951_p0 = scmp.ge.s32.totalorder %s950_s17, %s1841_s5  ;;  %p941_p1 = scmp.ge.s32.totalorder %s942_s14, %s1841_s5 }
 0x15a   : >> { %s1875_s17 = smov (%p951_p0, %s950_s17), 0  ;;  %944 = sbr.rel (!%p941_p1) target bundleno = 343 (0x157), region = 129 }
 0x15b   : >> { %s1207_s18 = sshll.u32 %s1875_s17, 2  ;;  %s1591_s11 = smov %s1875_s17  }
 0x15c   : >> { %s955_s10 = scalar_lea.vmem %s936_s7, %s1207_s18 [#allocation2]   ;;  %s956_s9 = scalar_lea.vmem %s938_s8, %s1207_s18  }
 0x161 PF: > { %p10_p2 = scmp.ge.s32.totalorder %s1633_s16, 4   ;;  %s1867_s12 = smov %s1560_s13 }
 0x162   : > { %s1868_s13 = smov %s1641_s19  ;;  %s1869_s14 = smov %s1633_s16 }
 0x163   :  { %12 = sbr.rel (!%p10_p2) target bundleno = 2 (0x2), region = 140 }

// kernel: nature_cnn_forward.7
= control target key start
LH: loop header
LB: loop body
LE: loop exit
PB: predicated region body
PF: predicated region fallthrough
CT: control target
= control target key end

     0   :  { %v814_v36 = vlaneseq  ;;  %v8611_v37 = vmov 1966171168   ;;  %s11265_s0 = inlined_call_operand.vmem [shape: bf16[2,3136], index: 0, kind: input, shape index: {}]   ;;  %s11266_s1 = inlined_call_operand.vmem [shape: bf16[3136,512], index: 1, kind: input, shape index: {}]   ;;  %s11267_s2 = inlined_call_operand.vmem [shape: f32[1,512], index: 2, kind: input, shape index: {}]   ;;  %s11268_s3 = inlined_call_operand.vmem [shape: bf16[512,128], index: 3, kind: input, shape index: {}]   ;;  %s11269_s4 = inlined_call_operand.vmem [shape: f32[1,128], index: 4, kind: input, shape index: {}]   ;;  %s11270_s5 = inlined_call_operand.vmem [shape: f32[2,1], index: 5, kind: output, shape index: {0}]   ;;  %s11271_s6 = inlined_call_operand.hbm [shape: f32[2,6], index: 6, kind: output, shape index: {1}]  }
   0x1   :  { %v7370_v0 = vld [vmem:[%s11266_s1 + $0x4] ss:$16 sps:$4 sm:$0xff]   ;;  %v7372_v1 = vld [vmem:[%s11266_s1 + $0xc] ss:$16 sps:$4 sm:$0xff]   ;;  %v7374_v2 = vld [vmem:[%s11266_s1] ss:$16 sps:$4 sm:$0xff]   ;;  %v840_v38 = vunpack.c.l.s4 %v8611_v37 }
   0x2   :  { %4947 = vmatprep.subr.bf16.mxu0 %v7370_v0  ;;  %v7375_v3 = vld [vmem:[%s11266_s1 + $0x8] ss:$16 sps:$4 sm:$0xff]   ;;  %5480 = vmatprep.subr.bf16.mxu1 %v7372_v1  ;;  %v7376_v4 = vld [vmem:[%s11266_s1 + $0x24] ss:$16 sps:$4 sm:$0xff]   ;;  %v7378_v5 = vld [vmem:[%s11266_s1 + $0x2c] ss:$16 sps:$4 sm:$0xff]  }
   0x3   :  { %4948 = vmatpush1.bf16.msra.mxu0 %v7374_v2  ;;  %5481 = vmatpush1.bf16.msra.mxu1 %v7375_v3  ;;  %v7380_v6 = vld [vmem:[%s11266_s1 + $0x20] ss:$16 sps:$4 sm:$0xff]   ;;  %v7381_v7 = vld [vmem:[%s11266_s1 + $0x28] ss:$16 sps:$4 sm:$0xff]   ;;  %v7382_v8 = vld [vmem:[%s11266_s1 + $0x44] ss:$16 sps:$4 sm:$0xff]   ;;  %v841_v43 = vunpack.c.0.s8 %v840_v38 }
   0x4   :  { %4949 = vmatprep.subr.bf16.mxu0 %v7376_v4  ;;  %5482 = vmatprep.subr.bf16.mxu1 %v7378_v5  ;;  %v7384_v9 = vld [vmem:[%s11266_s1 + $0x4c] ss:$16 sps:$4 sm:$0xff]   ;;  %v7386_v10 = vld [vmem:[%s11266_s1 + $0x40] ss:$16 sps:$4 sm:$0xff]   ;;  %v7387_v11 = vld [vmem:[%s11266_s1 + $0x48] ss:$16 sps:$4 sm:$0xff]  }
   0x5   :  { %v7388_v12 = vld [vmem:[%s11266_s1 + $0x64] ss:$16 sps:$4 sm:$0xff]   ;;  %v7390_v13 = vld [vmem:[%s11266_s1 + $0x6c] ss:$16 sps:$4 sm:$0xff]   ;;  %v7392_v14 = vld [vmem:[%s11266_s1 + $0x60] ss:$16 sps:$4 sm:$0xff]  }
   0x6   :  { %v7393_v15 = vld [vmem:[%s11266_s1 + $0x68] ss:$16 sps:$4 sm:$0xff]   ;;  %v7394_v16 = vld [vmem:[%s11266_s1 + $0x84] ss:$16 sps:$4 sm:$0xff]   ;;  %v7396_v17 = vld [vmem:[%s11266_s1 + $0x8c] ss:$16 sps:$4 sm:$0xff]  }
   0x7   :  { %4950 = vmatpush1.bf16.msra.mxu0 %v7380_v6  ;;  %5483 = vmatpush1.bf16.msra.mxu1 %v7381_v7  ;;  %v7398_v18 = vld [vmem:[%s11266_s1 + $0x80] ss:$16 sps:$4 sm:$0xff]   ;;  %v7399_v19 = vld [vmem:[%s11266_s1 + $0x88] ss:$16 sps:$4 sm:$0xff]   ;;  %v7400_v20 = vld [vmem:[%s11266_s1 + $0xa4] ss:$16 sps:$4 sm:$0xff]  }
   0x8   :  { %4951 = vmatprep.subr.bf16.mxu0 %v7382_v8  ;;  %5484 = vmatprep.subr.bf16.mxu1 %v7384_v9  ;;  %v7402_v21 = vld [vmem:[%s11266_s1 + $0xac] ss:$16 sps:$4 sm:$0xff]   ;;  %v7404_v22 = vld [vmem:[%s11266_s1 + $0xa0] ss:$16 sps:$4 sm:$0xff]   ;;  %v7405_v23 = vld [vmem:[%s11266_s1 + $0xa8] ss:$16 sps:$4 sm:$0xff]  }
   0x9   :  { %v7406_v24 = vld [vmem:[%s11266_s1 + $0xc4] ss:$16 sps:$4 sm:$0xff]   ;;  %v7408_v25 = vld [vmem:[%s11266_s1 + $0xcc] ss:$16 sps:$4 sm:$0xff]   ;;  %v7410_v26 = vld [vmem:[%s11266_s1 + $0xc0] ss:$16 sps:$4 sm:$0xff]  }
   0xa   :  { %v7411_v27 = vld [vmem:[%s11266_s1 + $0xc8] ss:$16 sps:$4 sm:$0xff]   ;;  %v7412_v28 = vld [vmem:[%s11266_s1 + $0xe4] ss:$16 sps:$4 sm:$0xff]   ;;  %v7414_v29 = vld [vmem:[%s11266_s1 + $0xec] ss:$16 sps:$4 sm:$0xff]  }
   0xb   :  { %4952 = vmatpush1.bf16.msra.mxu0 %v7386_v10  ;;  %5485 = vmatpush1.bf16.msra.mxu1 %v7387_v11  ;;  %v7416_v30 = vld [vmem:[%s11266_s1 + $0xe0] ss:$16 sps:$4 sm:$0xff]   ;;  %v7417_v31 = vld [vmem:[%s11266_s1 + $0xe8] ss:$16 sps:$4 sm:$0xff]   ;;  %v7418_v32 = vld [vmem:[%s11266_s1 + $0x104] ss:$16 sps:$4 sm:$0xff]  }
   0xc   :  { %4953 = vmatprep.subr.bf16.mxu0 %v7388_v12  ;;  %5486 = vmatprep.subr.bf16.mxu1 %v7390_v13  ;;  %v7420_v33 = vld [vmem:[%s11266_s1 + $0x10c] ss:$16 sps:$4 sm:$0xff]   ;;  %v7422_v34 = vld [vmem:[%s11266_s1 + $0x100] ss:$16 sps:$4 sm:$0xff]   ;;  %v7423_v35 = vld [vmem:[%s11266_s1 + $0x108] ss:$16 sps:$4 sm:$0xff]  }
   0xd   :  { %v7424_v39 = vld [vmem:[%s11266_s1 + $0x124] ss:$16 sps:$4 sm:$0xff]   ;;  %v7426_v40 = vld [vmem:[%s11266_s1 + $0x12c] ss:$16 sps:$4 sm:$0xff]   ;;  %v7428_v41 = vld [vmem:[%s11266_s1 + $0x120] ss:$16 sps:$4 sm:$0xff]  }
   0xe   :  { %v8767_v42 = vshrl.u32 %v814_v36, 7  ;;  %v7429_v44 = vld [vmem:[%s11266_s1 + $0x128] ss:$16 sps:$4 sm:$0xff]   ;;  %v7430_v45 = vld [vmem:[%s11266_s1 + $0x144] ss:$16 sps:$4 sm:$0xff]  }
   0xf   :  { %4954 = vmatpush1.bf16.msra.mxu0 %v7392_v14  ;;  %5487 = vmatpush1.bf16.msra.mxu1 %v7393_v15  ;;  %v7432_v46 = vld [vmem:[%s11266_s1 + $0x14c] ss:$16 sps:$4 sm:$0xff]   ;;  %v7434_v47 = vld [vmem:[%s11266_s1 + $0x140] ss:$16 sps:$4 sm:$0xff]   ;;  %v7435_v48 = vld [vmem:[%s11266_s1 + $0x148] ss:$16 sps:$4 sm:$0xff]  }
  0x10   :  { %4955 = vmatprep.subr.bf16.mxu0 %v7394_v16  ;;  %5488 = vmatprep.subr.bf16.mxu1 %v7396_v17  ;;  %v8785_v49 = vsub.s32 %v841_v43, %v8767_v42  ;;  %v7436_v50 = vld [vmem:[%s11266_s1 + $0x164] ss:$16 sps:$4 sm:$0xff]   ;;  %v7438_v51 = vld [vmem:[%s11266_s1 + $0x16c] ss:$16 sps:$4 sm:$0xff]   ;;  %v7440_v53 = vld [vmem:[%s11266_s1 + $0x160] ss:$16 sps:$4 sm:$0xff]  }
  0x11   :  { %v8796_v52 = vld [vmem:[%s11265_s0] sm:$0xff]  ;;  %v7441_v55 = vld [vmem:[%s11266_s1 + $0x168] ss:$16 sps:$4 sm:$0xff]   ;;  %v7444_v57 = vld [vmem:[%s11266_s1 + $0x18c] ss:$16 sps:$4 sm:$0xff]  }
  0x12   :  { %v845_v54 = vrot.slane %v8796_v52, %v8785_v49  ;;  %v7442_v56 = vld [vmem:[%s11266_s1 + $0x184] ss:$16 sps:$4 sm:$0xff]   ;;  %v7446_v59 = vld [vmem:[%s11266_s1 + $0x180] ss:$16 sps:$4 sm:$0xff]   ;;  %v7447_v61 = vld [vmem:[%s11266_s1 + $0x188] ss:$16 sps:$4 sm:$0xff]  }
  0x13   :  { %4956 = vmatpush1.bf16.msra.mxu0 %v7398_v18  ;;  %5489 = vmatpush1.bf16.msra.mxu1 %v7399_v19  ;;  %v7448_v62 = vld [vmem:[%s11266_s1 + $0x1a4] ss:$16 sps:$4 sm:$0xff]   ;;  %v7450_v63 = vld [vmem:[%s11266_s1 + $0x1ac] ss:$16 sps:$4 sm:$0xff]   ;;  %v7452_v0 = vld [vmem:[%s11266_s1 + $0x1a0] ss:$16 sps:$4 sm:$0xff]  }
  0x14   :  { %4957 = vmatprep.subr.bf16.mxu0 %v7400_v20  ;;  %5490 = vmatprep.subr.bf16.mxu1 %v7402_v21  ;;  %v853_v58 = vcombine.high %v845_v54, %v845_v54  ;;  %v7453_v1 = vld [vmem:[%s11266_s1 + $0x1a8] ss:$16 sps:$4 sm:$0xff]   ;;  %v7454_v2 = vld [vmem:[%s11266_s1 + $0x1c4] ss:$16 sps:$4 sm:$0xff]   ;;  %v7456_v3 = vld [vmem:[%s11266_s1 + $0x1cc] ss:$16 sps:$4 sm:$0xff]   ;;  %v8865_v13 = vrot.slane %v845_v54, %v8785_v49 }
  0x15   :  { %v7458_v4 = vld [vmem:[%s11266_s1 + $0x1c0] ss:$16 sps:$4 sm:$0xff]   ;;  %v7459_v5 = vld [vmem:[%s11266_s1 + $0x1c8] ss:$16 sps:$4 sm:$0xff]   ;;  %v7460_v6 = vld [vmem:[%s11266_s1 + $0x1e4] ss:$16 sps:$4 sm:$0xff]  }
  0x16   :  { %v875_v60 = vrot.slane %v853_v58, %v8785_v49  ;;  %v7462_v7 = vld [vmem:[%s11266_s1 + $0x1ec] ss:$16 sps:$4 sm:$0xff]   ;;  %v7464_v8 = vld [vmem:[%s11266_s1 + $0x1e0] ss:$16 sps:$4 sm:$0xff]   ;;  %v7465_v9 = vld [vmem:[%s11266_s1 + $0x1e8] ss:$16 sps:$4 sm:$0xff]  }
  0x17   :  { %4958 = vmatpush1.bf16.msra.mxu0 %v7404_v22  ;;  %5491 = vmatpush1.bf16.msra.mxu1 %v7405_v23  ;;  %v7468_v10 = vld [vmem:[%s11266_s1 + $0x204] ss:$16 sps:$4 sm:$0xff]   ;;  %v7471_v11 = vld [vmem:[%s11266_s1 + $0x20c] ss:$16 sps:$4 sm:$0xff]   ;;  %v7466_v12 = vld [vmem:[%s11266_s1 + $0x200] ss:$16 sps:$4 sm:$0xff]  }
  0x18   :  { %4959 = vmatprep.subr.bf16.mxu0 %v7406_v24  ;;  %5492 = vmatprep.subr.bf16.mxu1 %v7408_v25  ;;  %v7469_v14 = vld [vmem:[%s11266_s1 + $0x208] ss:$16 sps:$4 sm:$0xff]   ;;  %v7474_v15 = vld [vmem:[%s11266_s1 + $0x224] ss:$16 sps:$4 sm:$0xff]   ;;  %v7477_v16 = vld [vmem:[%s11266_s1 + $0x22c] ss:$16 sps:$4 sm:$0xff]   ;;  %v885_v17 = vcombine.high %v875_v60, %v875_v60 }
  0x19   :  { %4979 = vmatprep.mubr.bf16.mxu0 %v875_v60  ;;  %5512 = vmatprep.mubr.bf16.mxu1 %v875_v60  ;;  %v7472_v18 = vld [vmem:[%s11266_s1 + $0x220] ss:$16 sps:$4 sm:$0xff]   ;;  %v7475_v19 = vld [vmem:[%s11266_s1 + $0x228] ss:$16 sps:$4 sm:$0xff]   ;;  %v7480_v20 = vld [vmem:[%s11266_s1 + $0x244] ss:$16 sps:$4 sm:$0xff]  }
  0x1a   :  { %v7483_v21 = vld [vmem:[%s11266_s1 + $0x24c] ss:$16 sps:$4 sm:$0xff]   ;;  %v7478_v22 = vld [vmem:[%s11266_s1 + $0x240] ss:$16 sps:$4 sm:$0xff]   ;;  %v7481_v23 = vld [vmem:[%s11266_s1 + $0x248] ss:$16 sps:$4 sm:$0xff]  }
  0x1b   :  { %4960 = vmatpush1.bf16.msra.mxu0 %v7410_v26  ;;  %5493 = vmatpush1.bf16.msra.mxu1 %v7411_v27  ;;  %v7486_v24 = vld [vmem:[%s11266_s1 + $0x264] ss:$16 sps:$4 sm:$0xff]   ;;  %v7489_v25 = vld [vmem:[%s11266_s1 + $0x26c] ss:$16 sps:$4 sm:$0xff]   ;;  %v7484_v26 = vld [vmem:[%s11266_s1 + $0x260] ss:$16 sps:$4 sm:$0xff]  }
  0x1c   :  { %4961 = vmatprep.subr.bf16.mxu0 %v7412_v28  ;;  %5494 = vmatprep.subr.bf16.mxu1 %v7414_v29  ;;  %v7487_v27 = vld [vmem:[%s11266_s1 + $0x268] ss:$16 sps:$4 sm:$0xff]   ;;  %v7492_v28 = vld [vmem:[%s11266_s1 + $0x284] ss:$16 sps:$4 sm:$0xff]   ;;  %v7495_v29 = vld [vmem:[%s11266_s1 + $0x28c] ss:$16 sps:$4 sm:$0xff]  }
  0x1d   :  { %v7504_v36 = vld [vmem:[%s11266_s1 + $0x2c4] ss:$16 sps:$4 sm:$0xff]   ;;  %v7507_v37 = vld [vmem:[%s11266_s1 + $0x2cc] ss:$16 sps:$4 sm:$0xff]   ;;  %v7502_v38 = vld [vmem:[%s11266_s1 + $0x2c0] ss:$16 sps:$4 sm:$0xff]  }
  0x1e   :  { %v7508_v43 = vld [vmem:[%s11266_s1 + $0x2e0] ss:$16 sps:$4 sm:$0xff]   ;;  %v7523_v54 = vld [vmem:[%s11266_s1 + $0x328] ss:$16 sps:$4 sm:$0xff]   ;;  %v7537_v60 = vld [vmem:[%s11266_s1 + $0x36c] ss:$16 sps:$4 sm:$0xff]  }
  0x1f   :  { %4962 = vmatpush1.bf16.msra.mxu0 %v7416_v30  ;;  %5495 = vmatpush1.bf16.msra.mxu1 %v7417_v31  ;;  %v7490_v30 = vld [vmem:[%s11266_s1 + $0x280] ss:$16 sps:$4 sm:$0xff]   ;;  %v7493_v31 = vld [vmem:[%s11266_s1 + $0x288] ss:$16 sps:$4 sm:$0xff]  }
  0x20   :  { %4963 = vmatprep.subr.bf16.mxu0 %v7418_v32  ;;  %5496 = vmatprep.subr.bf16.mxu1 %v7420_v33  ;;  %v7498_v32 = vld [vmem:[%s11266_s1 + $0x2a4] ss:$16 sps:$4 sm:$0xff]   ;;  %v7501_v33 = vld [vmem:[%s11266_s1 + $0x2ac] ss:$16 sps:$4 sm:$0xff]   ;;  %v7529_v58 = vld [vmem:[%s11266_s1 + $0x348] ss:$16 sps:$4 sm:$0xff]  }
  0x23   :  { %4964 = vmatpush1.bf16.msra.mxu0 %v7422_v34  ;;  %5497 = vmatpush1.bf16.msra.mxu1 %v7423_v35  ;;  %v7496_v34 = vld [vmem:[%s11266_s1 + $0x2a0] ss:$16 sps:$4 sm:$0xff]   ;;  %v7499_v35 = vld [vmem:[%s11266_s1 + $0x2a8] ss:$16 sps:$4 sm:$0xff]  }
  0x24   :  { %4965 = vmatprep.subr.bf16.mxu0 %v7424_v39  ;;  %5498 = vmatprep.subr.bf16.mxu1 %v7426_v40  ;;  %v7505_v39 = vld [vmem:[%s11266_s1 + $0x2c8] ss:$16 sps:$4 sm:$0xff]   ;;  %v7510_v40 = vld [vmem:[%s11266_s1 + $0x2e4] ss:$16 sps:$4 sm:$0xff]  }
  0x27   :  { %4966 = vmatpush1.bf16.msra.mxu0 %v7428_v41  ;;  %5499 = vmatpush1.bf16.msra.mxu1 %v7429_v44  ;;  %v7513_v41 = vld [vmem:[%s11266_s1 + $0x2ec] ss:$16 sps:$4 sm:$0xff]   ;;  %v7511_v44 = vld [vmem:[%s11266_s1 + $0x2e8] ss:$16 sps:$4 sm:$0xff]  }
  0x28   :  { %4967 = vmatprep.subr.bf16.mxu0 %v7430_v45  ;;  %5500 = vmatprep.subr.bf16.mxu1 %v7432_v46  ;;  %v7516_v45 = vld [vmem:[%s11266_s1 + $0x304] ss:$16 sps:$4 sm:$0xff]   ;;  %v7519_v46 = vld [vmem:[%s11266_s1 + $0x30c] ss:$16 sps:$4 sm:$0xff]  }
  0x2b   :  { %4968 = vmatpush1.bf16.msra.mxu0 %v7434_v47  ;;  %5501 = vmatpush1.bf16.msra.mxu1 %v7435_v48  ;;  %v7514_v47 = vld [vmem:[%s11266_s1 + $0x300] ss:$16 sps:$4 sm:$0xff]   ;;  %v7517_v48 = vld [vmem:[%s11266_s1 + $0x308] ss:$16 sps:$4 sm:$0xff]  }
  0x2c   :  { %4969 = vmatprep.subr.bf16.mxu0 %v7436_v50  ;;  %5502 = vmatprep.subr.bf16.mxu1 %v7438_v51  ;;  %v7522_v50 = vld [vmem:[%s11266_s1 + $0x324] ss:$16 sps:$4 sm:$0xff]   ;;  %v7525_v51 = vld [vmem:[%s11266_s1 + $0x32c] ss:$16 sps:$4 sm:$0xff]  }
  0x2f   :  { %4970 = vmatpush1.bf16.msra.mxu0 %v7440_v53  ;;  %5503 = vmatpush1.bf16.msra.mxu1 %v7441_v55  ;;  %v7520_v53 = vld [vmem:[%s11266_s1 + $0x320] ss:$16 sps:$4 sm:$0xff]   ;;  %v7528_v55 = vld [vmem:[%s11266_s1 + $0x344] ss:$16 sps:$4 sm:$0xff]  }
  0x30   :  { %4971 = vmatprep.subr.bf16.mxu0 %v7442_v56  ;;  %5504 = vmatprep.subr.bf16.mxu1 %v7444_v57  ;;  %v7531_v56 = vld [vmem:[%s11266_s1 + $0x34c] ss:$16 sps:$4 sm:$0xff]   ;;  %v7526_v57 = vld [vmem:[%s11266_s1 + $0x340] ss:$16 sps:$4 sm:$0xff]  }
  0x33   :  { %4972 = vmatpush1.bf16.msra.mxu0 %v7446_v59  ;;  %5505 = vmatpush1.bf16.msra.mxu1 %v7447_v61  ;;  %v7534_v59 = vld [vmem:[%s11266_s1 + $0x364] ss:$16 sps:$4 sm:$0xff]   ;;  %v7532_v61 = vld [vmem:[%s11266_s1 + $0x360] ss:$16 sps:$4 sm:$0xff]  }
  0x34   :  { %4973 = vmatprep.subr.bf16.mxu0 %v7448_v62  ;;  %5506 = vmatprep.subr.bf16.mxu1 %v7450_v63  ;;  %v7535_v62 = vld [vmem:[%s11266_s1 + $0x368] ss:$16 sps:$4 sm:$0xff]   ;;  %v7540_v63 = vld [vmem:[%s11266_s1 + $0x384] ss:$16 sps:$4 sm:$0xff]  }
  0x37   :  { %4974 = vmatpush1.bf16.msra.mxu0 %v7452_v0  ;;  %5507 = vmatpush1.bf16.msra.mxu1 %v7453_v1  ;;  %v7543_v0 = vld [vmem:[%s11266_s1 + $0x38c] ss:$16 sps:$4 sm:$0xff]   ;;  %v7538_v1 = vld [vmem:[%s11266_s1 + $0x380] ss:$16 sps:$4 sm:$0xff]  }
  0x38   :  { %4975 = vmatprep.subr.bf16.mxu0 %v7454_v2  ;;  %5508 = vmatprep.subr.bf16.mxu1 %v7456_v3  ;;  %v7541_v2 = vld [vmem:[%s11266_s1 + $0x388] ss:$16 sps:$4 sm:$0xff]   ;;  %v7546_v3 = vld [vmem:[%s11266_s1 + $0x3a4] ss:$16 sps:$4 sm:$0xff]  }
  0x3b   :  { %4976 = vmatpush1.bf16.msra.mxu0 %v7458_v4  ;;  %5509 = vmatpush1.bf16.msra.mxu1 %v7459_v5  ;;  %v7549_v4 = vld [vmem:[%s11266_s1 + $0x3ac] ss:$16 sps:$4 sm:$0xff]   ;;  %v7544_v5 = vld [vmem:[%s11266_s1 + $0x3a0] ss:$16 sps:$4 sm:$0xff]  }
  0x3c   :  { %4977 = vmatprep.subr.bf16.mxu0 %v7460_v6  ;;  %5510 = vmatprep.subr.bf16.mxu1 %v7462_v7  ;;  %v7547_v6 = vld [vmem:[%s11266_s1 + $0x3a8] ss:$16 sps:$4 sm:$0xff]   ;;  %v7552_v7 = vld [vmem:[%s11266_s1 + $0x3c4] ss:$16 sps:$4 sm:$0xff]  }
  0x3f   :  { %4978 = vmatpush1.bf16.msra.mxu0 %v7464_v8  ;;  %5511 = vmatpush1.bf16.msra.mxu1 %v7465_v9  ;;  %v7555_v8 = vld [vmem:[%s11266_s1 + $0x3cc] ss:$16 sps:$4 sm:$0xff]   ;;  %v838_v9 = vcombine.high %v8796_v52, %v8796_v52 }
  0x40   :  { %4988 = vmatprep.subr.bf16.mxu0 %v7468_v10  ;;  %5521 = vmatprep.subr.bf16.mxu1 %v7471_v11  ;;  %v7550_v10 = vld [vmem:[%s11266_s1 + $0x3c0] ss:$16 sps:$4 sm:$0xff]   ;;  %v7553_v11 = vld [vmem:[%s11266_s1 + $0x3c8] ss:$16 sps:$4 sm:$0xff]   ;;  %v7561_v52 = vld [vmem:[%s11266_s1 + $0x3ec] ss:$16 sps:$4 sm:$0xff]  }
  0x42   :  { %4980 = vmatmul.mubr.bf16.vlgmr.msra.gmra.mrb[0].mxu0 %v8865_v13  ;;  %5513 = vmatmul.mubr.bf16.vlgmr.msra.gmra.mrb[0].mxu1 %v8865_v13 }
  0x43   :  { %4989 = vmatpush1.bf16.msra.mxu0 %v7466_v12  ;;  %5522 = vmatpush1.bf16.msra.mxu1 %v7469_v14  ;;  %v7558_v12 = vld [vmem:[%s11266_s1 + $0x3e4] ss:$16 sps:$4 sm:$0xff]   ;;  %v9049_v14 = vrot.slane %v838_v9, %v8785_v49  ;;  %v7637_v9 = vld [vmem:[%s11266_s1 + $0x588] ss:$16 sps:$4 sm:$0xff]  }
  0x44   :  { %4990 = vmatprep.subr.bf16.mxu0 %v7474_v15  ;;  %5523 = vmatprep.subr.bf16.mxu1 %v7477_v16  ;;  %v7556_v15 = vld [vmem:[%s11266_s1 + $0x3e0] ss:$16 sps:$4 sm:$0xff]   ;;  %v7559_v16 = vld [vmem:[%s11266_s1 + $0x3e8] ss:$16 sps:$4 sm:$0xff]  }
  0x45   :  { %5020 = vmatprep.mubr.bf16.mxu0 %v885_v17  ;;  %5553 = vmatprep.mubr.bf16.mxu1 %v885_v17  ;;  %v7564_v17 = vld [vmem:[%s11266_s1 + $0x404] ss:$16 sps:$4 sm:$0xff]  }
  0x47   :  { %4991 = vmatpush1.bf16.msra.mxu0 %v7472_v18  ;;  %5524 = vmatpush1.bf16.msra.mxu1 %v7475_v19  ;;  %v7567_v18 = vld [vmem:[%s11266_s1 + $0x40c] ss:$16 sps:$4 sm:$0xff]   ;;  %v854_v19 = vcombine.high %v9049_v14, %v9049_v14 }
  0x48   :  { %4992 = vmatprep.subr.bf16.mxu0 %v7480_v20  ;;  %5525 = vmatprep.subr.bf16.mxu1 %v7483_v21  ;;  %v7562_v20 = vld [vmem:[%s11266_s1 + $0x400] ss:$16 sps:$4 sm:$0xff]   ;;  %v883_v21 = vcombine.high %v8865_v13, %v8865_v13 }
  0x49   :  { %v7568_v13 = vld [vmem:[%s11266_s1 + $0x420] ss:$16 sps:$4 sm:$0xff]  }
  0x4b   :  { %4993 = vmatpush1.bf16.msra.mxu0 %v7478_v22  ;;  %5526 = vmatpush1.bf16.msra.mxu1 %v7481_v23  ;;  %v7565_v22 = vld [vmem:[%s11266_s1 + $0x408] ss:$16 sps:$4 sm:$0xff]   ;;  %v7570_v23 = vld [vmem:[%s11266_s1 + $0x424] ss:$16 sps:$4 sm:$0xff]  }
  0x4c   :  { %4994 = vmatprep.subr.bf16.mxu0 %v7486_v24  ;;  %5527 = vmatprep.subr.bf16.mxu1 %v7489_v25  ;;  %v7573_v24 = vld [vmem:[%s11266_s1 + $0x42c] ss:$16 sps:$4 sm:$0xff]   ;;  %v9080_v25 = vrot.slane %v854_v19, %v8785_v49  ;;  %v7654_v19 = vld [vmem:[%s11266_s1 + $0x5e4] ss:$16 sps:$4 sm:$0xff]  }
  0x4f   :  { %4995 = vmatpush1.bf16.msra.mxu0 %v7484_v26  ;;  %5528 = vmatpush1.bf16.msra.mxu1 %v7487_v27  ;;  %v7571_v26 = vld [vmem:[%s11266_s1 + $0x428] ss:$16 sps:$4 sm:$0xff]   ;;  %v7576_v27 = vld [vmem:[%s11266_s1 + $0x444] ss:$16 sps:$4 sm:$0xff]  }
  0x50   :  { %4996 = vmatprep.subr.bf16.mxu0 %v7492_v28  ;;  %5529 = vmatprep.subr.bf16.mxu1 %v7495_v29  ;;  %v7579_v28 = vld [vmem:[%s11266_s1 + $0x44c] ss:$16 sps:$4 sm:$0xff]   ;;  %v7574_v29 = vld [vmem:[%s11266_s1 + $0x440] ss:$16 sps:$4 sm:$0xff]  }
  0x53   :  { %4997 = vmatpush1.bf16.msra.mxu0 %v7490_v30  ;;  %5530 = vmatpush1.bf16.msra.mxu1 %v7493_v31  ;;  %v7577_v30 = vld [vmem:[%s11266_s1 + $0x448] ss:$16 sps:$4 sm:$0xff]   ;;  %v7582_v31 = vld [vmem:[%s11266_s1 + $0x464] ss:$16 sps:$4 sm:$0xff]  }
  0x54   :  { %4998 = vmatprep.subr.bf16.mxu0 %v7498_v32  ;;  %5531 = vmatprep.subr.bf16.mxu1 %v7501_v33  ;;  %v7585_v32 = vld [vmem:[%s11266_s1 + $0x46c] ss:$16 sps:$4 sm:$0xff]   ;;  %v7580_v33 = vld [vmem:[%s11266_s1 + $0x460] ss:$16 sps:$4 sm:$0xff]  }
  0x57   :  { %4999 = vmatpush1.bf16.msra.mxu0 %v7496_v34  ;;  %5532 = vmatpush1.bf16.msra.mxu1 %v7499_v35  ;;  %v7583_v34 = vld [vmem:[%s11266_s1 + $0x468] ss:$16 sps:$4 sm:$0xff]   ;;  %v7588_v35 = vld [vmem:[%s11266_s1 + $0x484] ss:$16 sps:$4 sm:$0xff]  }
  0x58   :  { %5000 = vmatprep.subr.bf16.mxu0 %v7504_v36  ;;  %5533 = vmatprep.subr.bf16.mxu1 %v7507_v37  ;;  %v7591_v36 = vld [vmem:[%s11266_s1 + $0x48c] ss:$16 sps:$4 sm:$0xff]   ;;  %v7586_v37 = vld [vmem:[%s11266_s1 + $0x480] ss:$16 sps:$4 sm:$0xff]  }
  0x5b   :  { %5001 = vmatpush1.bf16.msra.mxu0 %v7502_v38  ;;  %5534 = vmatpush1.bf16.msra.mxu1 %v7505_v39  ;;  %v7589_v38 = vld [vmem:[%s11266_s1 + $0x488] ss:$16 sps:$4 sm:$0xff]   ;;  %v7594_v39 = vld [vmem:[%s11266_s1 + $0x4a4] ss:$16 sps:$4 sm:$0xff]  }
  0x5c   :  { %5002 = vmatprep.subr.bf16.mxu0 %v7510_v40  ;;  %5535 = vmatprep.subr.bf16.mxu1 %v7513_v41  ;;  %v7597_v40 = vld [vmem:[%s11266_s1 + $0x4ac] ss:$16 sps:$4 sm:$0xff]   ;;  %v7592_v41 = vld [vmem:[%s11266_s1 + $0x4a0] ss:$16 sps:$4 sm:$0xff]  }
  0x5f   :  { %5003 = vmatpush1.bf16.msra.mxu0 %v7508_v43  ;;  %5536 = vmatpush1.bf16.msra.mxu1 %v7511_v44  ;;  %v7595_v43 = vld [vmem:[%s11266_s1 + $0x4a8] ss:$16 sps:$4 sm:$0xff]   ;;  %v7600_v44 = vld [vmem:[%s11266_s1 + $0x4c4] ss:$16 sps:$4 sm:$0xff]  }
  0x60   :  { %5004 = vmatprep.subr.bf16.mxu0 %v7516_v45  ;;  %5537 = vmatprep.subr.bf16.mxu1 %v7519_v46  ;;  %v7603_v45 = vld [vmem:[%s11266_s1 + $0x4cc] ss:$16 sps:$4 sm:$0xff]   ;;  %v7598_v46 = vld [vmem:[%s11266_s1 + $0x4c0] ss:$16 sps:$4 sm:$0xff]  }
  0x63   :  { %5005 = vmatpush1.bf16.msra.mxu0 %v7514_v47  ;;  %5538 = vmatpush1.bf16.msra.mxu1 %v7517_v48  ;;  %v7601_v47 = vld [vmem:[%s11266_s1 + $0x4c8] ss:$16 sps:$4 sm:$0xff]   ;;  %v7606_v48 = vld [vmem:[%s11266_s1 + $0x4e4] ss:$16 sps:$4 sm:$0xff]  }
  0x64   :  { %5006 = vmatprep.subr.bf16.mxu0 %v7522_v50  ;;  %5539 = vmatprep.subr.bf16.mxu1 %v7525_v51  ;;  %v7609_v50 = vld [vmem:[%s11266_s1 + $0x4ec] ss:$16 sps:$4 sm:$0xff]   ;;  %v7604_v51 = vld [vmem:[%s11266_s1 + $0x4e0] ss:$16 sps:$4 sm:$0xff]  }
  0x67   :  { %5007 = vmatpush1.bf16.msra.mxu0 %v7520_v53  ;;  %5540 = vmatpush1.bf16.msra.mxu1 %v7523_v54  ;;  %v7607_v53 = vld [vmem:[%s11266_s1 + $0x4e8] ss:$16 sps:$4 sm:$0xff]   ;;  %v7612_v54 = vld [vmem:[%s11266_s1 + $0x504] ss:$16 sps:$4 sm:$0xff]  }
  0x68   :  { %5008 = vmatprep.subr.bf16.mxu0 %v7528_v55  ;;  %5541 = vmatprep.subr.bf16.mxu1 %v7531_v56  ;;  %v7615_v55 = vld [vmem:[%s11266_s1 + $0x50c] ss:$16 sps:$4 sm:$0xff]   ;;  %v7610_v56 = vld [vmem:[%s11266_s1 + $0x500] ss:$16 sps:$4 sm:$0xff]  }
  0x6b   :  { %5009 = vmatpush1.bf16.msra.mxu0 %v7526_v57  ;;  %5542 = vmatpush1.bf16.msra.mxu1 %v7529_v58  ;;  %v7613_v57 = vld [vmem:[%s11266_s1 + $0x508] ss:$16 sps:$4 sm:$0xff]   ;;  %v7618_v58 = vld [vmem:[%s11266_s1 + $0x524] ss:$16 sps:$4 sm:$0xff]  }
  0x6c   :  { %5010 = vmatprep.subr.bf16.mxu0 %v7534_v59  ;;  %5543 = vmatprep.subr.bf16.mxu1 %v7537_v60  ;;  %v7621_v59 = vld [vmem:[%s11266_s1 + $0x52c] ss:$16 sps:$4 sm:$0xff]   ;;  %v7616_v60 = vld [vmem:[%s11266_s1 + $0x520] ss:$16 sps:$4 sm:$0xff]  }
  0x6f   :  { %5011 = vmatpush1.bf16.msra.mxu0 %v7532_v61  ;;  %5544 = vmatpush1.bf16.msra.mxu1 %v7535_v62  ;;  %v7619_v61 = vld [vmem:[%s11266_s1 + $0x528] ss:$16 sps:$4 sm:$0xff]   ;;  %v7624_v62 = vld [vmem:[%s11266_s1 + $0x544] ss:$16 sps:$4 sm:$0xff]  }
  0x70   :  { %5012 = vmatprep.subr.bf16.mxu0 %v7540_v63  ;;  %5545 = vmatprep.subr.bf16.mxu1 %v7543_v0  ;;  %v7627_v63 = vld [vmem:[%s11266_s1 + $0x54c] ss:$16 sps:$4 sm:$0xff]   ;;  %v7622_v0 = vld [vmem:[%s11266_s1 + $0x540] ss:$16 sps:$4 sm:$0xff]  }
  0x73   :  { %5013 = vmatpush1.bf16.msra.mxu0 %v7538_v1  ;;  %5546 = vmatpush1.bf16.msra.mxu1 %v7541_v2  ;;  %v7625_v1 = vld [vmem:[%s11266_s1 + $0x548] ss:$16 sps:$4 sm:$0xff]   ;;  %v7630_v2 = vld [vmem:[%s11266_s1 + $0x564] ss:$16 sps:$4 sm:$0xff]  }
  0x74   :  { %5014 = vmatprep.subr.bf16.mxu0 %v7546_v3  ;;  %5547 = vmatprep.subr.bf16.mxu1 %v7549_v4  ;;  %v7633_v3 = vld [vmem:[%s11266_s1 + $0x56c] ss:$16 sps:$4 sm:$0xff]   ;;  %v7628_v4 = vld [vmem:[%s11266_s1 + $0x560] ss:$16 sps:$4 sm:$0xff]  }
  0x77   :  { %5015 = vmatpush1.bf16.msra.mxu0 %v7544_v5  ;;  %5548 = vmatpush1.bf16.msra.mxu1 %v7547_v6  ;;  %v7631_v5 = vld [vmem:[%s11266_s1 + $0x568] ss:$16 sps:$4 sm:$0xff]   ;;  %v7636_v6 = vld [vmem:[%s11266_s1 + $0x584] ss:$16 sps:$4 sm:$0xff]  }
  0x78   :  { %5016 = vmatprep.subr.bf16.mxu0 %v7552_v7  ;;  %5549 = vmatprep.subr.bf16.mxu1 %v7555_v8  ;;  %v7639_v7 = vld [vmem:[%s11266_s1 + $0x58c] ss:$16 sps:$4 sm:$0xff]   ;;  %v7634_v8 = vld [vmem:[%s11266_s1 + $0x580] ss:$16 sps:$4 sm:$0xff]  }
  0x7b   :  { %5017 = vmatpush1.bf16.msra.mxu0 %v7550_v10  ;;  %5550 = vmatpush1.bf16.msra.mxu1 %v7553_v11  ;;  %v7642_v10 = vld [vmem:[%s11266_s1 + $0x5a4] ss:$16 sps:$4 sm:$0xff]   ;;  %v7645_v11 = vld [vmem:[%s11266_s1 + $0x5ac] ss:$16 sps:$4 sm:$0xff]  }
  0x7c   :  { %5018 = vmatprep.subr.bf16.mxu0 %v7558_v12  ;;  %5551 = vmatprep.subr.bf16.mxu1 %v7561_v52  ;;  %v7640_v12 = vld [vmem:[%s11266_s1 + $0x5a0] ss:$16 sps:$4 sm:$0xff]   ;;  %v7643_v52 = vld [vmem:[%s11266_s1 + $0x5a8] ss:$16 sps:$4 sm:$0xff]  }
  0x7f   :  { %5019 = vmatpush1.bf16.msra.mxu0 %v7556_v15  ;;  %5552 = vmatpush1.bf16.msra.mxu1 %v7559_v16  ;;  %v7648_v15 = vld [vmem:[%s11266_s1 + $0x5c4] ss:$16 sps:$4 sm:$0xff]   ;;  %v7651_v16 = vld [vmem:[%s11266_s1 + $0x5cc] ss:$16 sps:$4 sm:$0xff]  }
  0x80   :  { %5029 = vmatprep.subr.bf16.mxu0 %v7564_v17  ;;  %5562 = vmatprep.subr.bf16.mxu1 %v7567_v18  ;;  %v7646_v17 = vld [vmem:[%s11266_s1 + $0x5c0] ss:$16 sps:$4 sm:$0xff]   ;;  %v7649_v18 = vld [vmem:[%s11266_s1 + $0x5c8] ss:$16 sps:$4 sm:$0xff]  }
  0x82   :  { %5021 = vmatmul.mubr.bf16.vlgmr.msra.gmra.mrb[0].mxu0 %v883_v21  ;;  %5554 = vmatmul.mubr.bf16.vlgmr.msra.gmra.mrb[0].mxu1 %v883_v21  ;;  %v7652_v21 = vld [vmem:[%s11266_s1 + $0x5e0] ss:$16 sps:$4 sm:$0xff]  }
  0x83   :  { %5030 = vmatpush1.bf16.msra.mxu0 %v7562_v20  ;;  %5563 = vmatpush1.bf16.msra.mxu1 %v7565_v22  ;;  %v7657_v20 = vld [vmem:[%s11266_s1 + $0x5ec] ss:$16 sps:$4 sm:$0xff]   ;;  %v7655_v22 = vld [vmem:[%s11266_s1 + $0x5e8] ss:$16 sps:$4 sm:$0xff]  }
  0x84   :  { %5031 = vmatprep.subr.bf16.mxu0 %v7570_v23  ;;  %5564 = vmatprep.subr.bf16.mxu1 %v7573_v24  ;;  %v7661_v23 = vld [vmem:[%s11266_s1 + $0x604] ss:$16 sps:$4 sm:$0xff]   ;;  %v7664_v24 = vld [vmem:[%s11266_s1 + $0x60c] ss:$16 sps:$4 sm:$0xff]  }
  0x85   :  { %5061 = vmatprep.mubr.bf16.mxu0 %v9080_v25  ;;  %5594 = vmatprep.mubr.bf16.mxu1 %v9080_v25 }
  0x87   :  { %5032 = vmatpush1.bf16.msra.mxu0 %v7568_v13  ;;  %5565 = vmatpush1.bf16.msra.mxu1 %v7571_v26  ;;  %v7659_v13 = vld [vmem:[%s11266_s1 + $0x600] ss:$16 sps:$4 sm:$0xff]   ;;  %v9269_v26 = vrot.slane %v9049_v14, %v8785_v49  ;;  %v886_v14 = vcombine.high %v9080_v25, %v9080_v25  ;;  %v7673_v25 = vld [vmem:[%s11266_s1 + $0x644] ss:$16 sps:$4 sm:$0xff]  }
  0x88   :  { %5033 = vmatprep.subr.bf16.mxu0 %v7576_v27  ;;  %5566 = vmatprep.subr.bf16.mxu1 %v7579_v28  ;;  %v7662_v27 = vld [vmem:[%s11266_s1 + $0x608] ss:$16 sps:$4 sm:$0xff]   ;;  %v7667_v28 = vld [vmem:[%s11266_s1 + $0x624] ss:$16 sps:$4 sm:$0xff]  }
  0x8b   :  { %5034 = vmatpush1.bf16.msra.mxu0 %v7574_v29  ;;  %5567 = vmatpush1.bf16.msra.mxu1 %v7577_v30  ;;  %v7670_v29 = vld [vmem:[%s11266_s1 + $0x62c] ss:$16 sps:$4 sm:$0xff]   ;;  %v7665_v30 = vld [vmem:[%s11266_s1 + $0x620] ss:$16 sps:$4 sm:$0xff]  }
  0x8c   :  { %5035 = vmatprep.subr.bf16.mxu0 %v7582_v31  ;;  %5568 = vmatprep.subr.bf16.mxu1 %v7585_v32  ;;  %v7668_v31 = vld [vmem:[%s11266_s1 + $0x628] ss:$16 sps:$4 sm:$0xff]   ;;  %v7676_v32 = vld [vmem:[%s11266_s1 + $0x64c] ss:$16 sps:$4 sm:$0xff]  }
  0x8f   :  { %5036 = vmatpush1.bf16.msra.mxu0 %v7580_v33  ;;  %5569 = vmatpush1.bf16.msra.mxu1 %v7583_v34  ;;  %v7671_v33 = vld [vmem:[%s11266_s1 + $0x640] ss:$16 sps:$4 sm:$0xff]   ;;  %v7674_v34 = vld [vmem:[%s11266_s1 + $0x648] ss:$16 sps:$4 sm:$0xff]  }
  0x90   :  { %5037 = vmatprep.subr.bf16.mxu0 %v7588_v35  ;;  %5570 = vmatprep.subr.bf16.mxu1 %v7591_v36  ;;  %v7679_v35 = vld [vmem:[%s11266_s1 + $0x664] ss:$16 sps:$4 sm:$0xff]   ;;  %v7682_v36 = vld [vmem:[%s11266_s1 + $0x66c] ss:$16 sps:$4 sm:$0xff]  }
  0x93   :  { %5038 = vmatpush1.bf16.msra.mxu0 %v7586_v37  ;;  %5571 = vmatpush1.bf16.msra.mxu1 %v7589_v38  ;;  %v7677_v37 = vld [vmem:[%s11266_s1 + $0x660] ss:$16 sps:$4 sm:$0xff]   ;;  %v7680_v38 = vld [vmem:[%s11266_s1 + $0x668] ss:$16 sps:$4 sm:$0xff]  }
  0x94   :  { %5039 = vmatprep.subr.bf16.mxu0 %v7594_v39  ;;  %5572 = vmatprep.subr.bf16.mxu1 %v7597_v40  ;;  %v7685_v39 = vld [vmem:[%s11266_s1 + $0x684] ss:$16 sps:$4 sm:$0xff]   ;;  %v7688_v40 = vld [vmem:[%s11266_s1 + $0x68c] ss:$16 sps:$4 sm:$0xff]  }
  0x97   :  { %5040 = vmatpush1.bf16.msra.mxu0 %v7592_v41  ;;  %5573 = vmatpush1.bf16.msra.mxu1 %v7595_v43  ;;  %v7683_v41 = vld [vmem:[%s11266_s1 + $0x680] ss:$16 sps:$4 sm:$0xff]   ;;  %v7686_v43 = vld [vmem:[%s11266_s1 + $0x688] ss:$16 sps:$4 sm:$0xff]  }
  0x98   :  { %5041 = vmatprep.subr.bf16.mxu0 %v7600_v44  ;;  %5574 = vmatprep.subr.bf16.mxu1 %v7603_v45  ;;  %v7691_v44 = vld [vmem:[%s11266_s1 + $0x6a4] ss:$16 sps:$4 sm:$0xff]   ;;  %v7694_v45 = vld [vmem:[%s11266_s1 + $0x6ac] ss:$16 sps:$4 sm:$0xff]  }
  0x9b   :  { %5042 = vmatpush1.bf16.msra.mxu0 %v7598_v46  ;;  %5575 = vmatpush1.bf16.msra.mxu1 %v7601_v47  ;;  %v7689_v46 = vld [vmem:[%s11266_s1 + $0x6a0] ss:$16 sps:$4 sm:$0xff]   ;;  %v7692_v47 = vld [vmem:[%s11266_s1 + $0x6a8] ss:$16 sps:$4 sm:$0xff]  }
  0x9c   :  { %5043 = vmatprep.subr.bf16.mxu0 %v7606_v48  ;;  %5576 = vmatprep.subr.bf16.mxu1 %v7609_v50  ;;  %v7697_v48 = vld [vmem:[%s11266_s1 + $0x6c4] ss:$16 sps:$4 sm:$0xff]   ;;  %v7700_v50 = vld [vmem:[%s11266_s1 + $0x6cc] ss:$16 sps:$4 sm:$0xff]  }
  0x9f   :  { %5044 = vmatpush1.bf16.msra.mxu0 %v7604_v51  ;;  %5577 = vmatpush1.bf16.msra.mxu1 %v7607_v53  ;;  %v7695_v51 = vld [vmem:[%s11266_s1 + $0x6c0] ss:$16 sps:$4 sm:$0xff]   ;;  %v7698_v53 = vld [vmem:[%s11266_s1 + $0x6c8] ss:$16 sps:$4 sm:$0xff]  }
  0xa0   :  { %5045 = vmatprep.subr.bf16.mxu0 %v7612_v54  ;;  %5578 = vmatprep.subr.bf16.mxu1 %v7615_v55  ;;  %v7703_v54 = vld [vmem:[%s11266_s1 + $0x6e4] ss:$16 sps:$4 sm:$0xff]   ;;  %v7706_v55 = vld [vmem:[%s11266_s1 + $0x6ec] ss:$16 sps:$4 sm:$0xff]  }
  0xa3   :  { %5046 = vmatpush1.bf16.msra.mxu0 %v7610_v56  ;;  %5579 = vmatpush1.bf16.msra.mxu1 %v7613_v57  ;;  %v7701_v56 = vld [vmem:[%s11266_s1 + $0x6e0] ss:$16 sps:$4 sm:$0xff]   ;;  %v7704_v57 = vld [vmem:[%s11266_s1 + $0x6e8] ss:$16 sps:$4 sm:$0xff]  }
  0xa4   :  { %5047 = vmatprep.subr.bf16.mxu0 %v7618_v58  ;;  %5580 = vmatprep.subr.bf16.mxu1 %v7621_v59  ;;  %v7709_v58 = vld [vmem:[%s11266_s1 + $0x704] ss:$16 sps:$4 sm:$0xff]   ;;  %v7712_v59 = vld [vmem:[%s11266_s1 + $0x70c] ss:$16 sps:$4 sm:$0xff]  }
  0xa7   :  { %5048 = vmatpush1.bf16.msra.mxu0 %v7616_v60  ;;  %5581 = vmatpush1.bf16.msra.mxu1 %v7619_v61  ;;  %v7707_v60 = vld [vmem:[%s11266_s1 + $0x700] ss:$16 sps:$4 sm:$0xff]   ;;  %v7710_v61 = vld [vmem:[%s11266_s1 + $0x708] ss:$16 sps:$4 sm:$0xff]  }
  0xa8   :  { %5049 = vmatprep.subr.bf16.mxu0 %v7624_v62  ;;  %5582 = vmatprep.subr.bf16.mxu1 %v7627_v63  ;;  %v7715_v62 = vld [vmem:[%s11266_s1 + $0x724] ss:$16 sps:$4 sm:$0xff]   ;;  %v7718_v63 = vld [vmem:[%s11266_s1 + $0x72c] ss:$16 sps:$4 sm:$0xff]  }
  0xab   :  { %5050 = vmatpush1.bf16.msra.mxu0 %v7622_v0  ;;  %5583 = vmatpush1.bf16.msra.mxu1 %v7625_v1  ;;  %v7713_v0 = vld [vmem:[%s11266_s1 + $0x720] ss:$16 sps:$4 sm:$0xff]   ;;  %v7716_v1 = vld [vmem:[%s11266_s1 + $0x728] ss:$16 sps:$4 sm:$0xff]  }
  0xac   :  { %5051 = vmatprep.subr.bf16.mxu0 %v7630_v2  ;;  %5584 = vmatprep.subr.bf16.mxu1 %v7633_v3  ;;  %v7721_v2 = vld [vmem:[%s11266_s1 + $0x744] ss:$16 sps:$4 sm:$0xff]   ;;  %v7724_v3 = vld [vmem:[%s11266_s1 + $0x74c] ss:$16 sps:$4 sm:$0xff]  }
  0xaf   :  { %5052 = vmatpush1.bf16.msra.mxu0 %v7628_v4  ;;  %5585 = vmatpush1.bf16.msra.mxu1 %v7631_v5  ;;  %v7719_v4 = vld [vmem:[%s11266_s1 + $0x740] ss:$16 sps:$4 sm:$0xff]   ;;  %v7722_v5 = vld [vmem:[%s11266_s1 + $0x748] ss:$16 sps:$4 sm:$0xff]  }
  0xb0   :  { %5053 = vmatprep.subr.bf16.mxu0 %v7636_v6  ;;  %5586 = vmatprep.subr.bf16.mxu1 %v7639_v7  ;;  %v7727_v6 = vld [vmem:[%s11266_s1 + $0x764] ss:$16 sps:$4 sm:$0xff]   ;;  %v7730_v7 = vld [vmem:[%s11266_s1 + $0x76c] ss:$16 sps:$4 sm:$0xff]  }
  0xb3   :  { %5054 = vmatpush1.bf16.msra.mxu0 %v7634_v8  ;;  %5587 = vmatpush1.bf16.msra.mxu1 %v7637_v9  ;;  %v7725_v8 = vld [vmem:[%s11266_s1 + $0x760] ss:$16 sps:$4 sm:$0xff]   ;;  %v7728_v9 = vld [vmem:[%s11266_s1 + $0x768] ss:$16 sps:$4 sm:$0xff]  }
  0xb4   :  { %5055 = vmatprep.subr.bf16.mxu0 %v7642_v10  ;;  %5588 = vmatprep.subr.bf16.mxu1 %v7645_v11  ;;  %v7733_v10 = vld [vmem:[%s11266_s1 + $0x784] ss:$16 sps:$4 sm:$0xff]   ;;  %v7736_v11 = vld [vmem:[%s11266_s1 + $0x78c] ss:$16 sps:$4 sm:$0xff]  }
  0xb7   :  { %5056 = vmatpush1.bf16.msra.mxu0 %v7640_v12  ;;  %5589 = vmatpush1.bf16.msra.mxu1 %v7643_v52  ;;  %v7731_v12 = vld [vmem:[%s11266_s1 + $0x780] ss:$16 sps:$4 sm:$0xff]   ;;  %v7734_v52 = vld [vmem:[%s11266_s1 + $0x788] ss:$16 sps:$4 sm:$0xff]  }
  0xb8   :  { %5057 = vmatprep.subr.bf16.mxu0 %v7648_v15  ;;  %5590 = vmatprep.subr.bf16.mxu1 %v7651_v16  ;;  %v7739_v15 = vld [vmem:[%s11266_s1 + $0x7a4] ss:$16 sps:$4 sm:$0xff]   ;;  %v7742_v16 = vld [vmem:[%s11266_s1 + $0x7ac] ss:$16 sps:$4 sm:$0xff]  }
  0xbb   :  { %5058 = vmatpush1.bf16.msra.mxu0 %v7646_v17  ;;  %5591 = vmatpush1.bf16.msra.mxu1 %v7649_v18  ;;  %v7737_v17 = vld [vmem:[%s11266_s1 + $0x7a0] ss:$16 sps:$4 sm:$0xff]   ;;  %v7740_v18 = vld [vmem:[%s11266_s1 + $0x7a8] ss:$16 sps:$4 sm:$0xff]  }
  0xbc   :  { %5059 = vmatprep.subr.bf16.mxu0 %v7654_v19  ;;  %5592 = vmatprep.subr.bf16.mxu1 %v7657_v20  ;;  %v7745_v19 = vld [vmem:[%s11266_s1 + $0x7c4] ss:$16 sps:$4 sm:$0xff]   ;;  %v7748_v20 = vld [vmem:[%s11266_s1 + $0x7cc] ss:$16 sps:$4 sm:$0xff]  }
  0xbf   :  { %5060 = vmatpush1.bf16.msra.mxu0 %v7652_v21  ;;  %5593 = vmatpush1.bf16.msra.mxu1 %v7655_v22  ;;  %v9443_v21 = vld.sshfl [vmem:[%s11265_s0 + $0x8] sm:$0xff pattern:$0x75316420]  ;;  %v7743_v22 = vld [vmem:[%s11266_s1 + $0x7c0] ss:$16 sps:$4 sm:$0xff]  }
  0xc0   :  { %5070 = vmatprep.subr.bf16.mxu0 %v7661_v23  ;;  %5603 = vmatprep.subr.bf16.mxu1 %v7664_v24  ;;  %v7746_v23 = vld [vmem:[%s11266_s1 + $0x7c8] ss:$16 sps:$4 sm:$0xff]   ;;  %v7751_v24 = vld [vmem:[%s11266_s1 + $0x7e4] ss:$16 sps:$4 sm:$0xff]  }
  0xc2   :  { %5062 = vmatmul.mubr.bf16.vlgmr.msra.gmra.mrb[0].mxu0 %v9269_v26  ;;  %5595 = vmatmul.mubr.bf16.vlgmr.msra.gmra.mrb[0].mxu1 %v9269_v26 }
  0xc3   :  { %5071 = vmatpush1.bf16.msra.mxu0 %v7659_v13  ;;  %5604 = vmatpush1.bf16.msra.mxu1 %v7662_v27  ;;  %v7754_v13 = vld [vmem:[%s11266_s1 + $0x7ec] ss:$16 sps:$4 sm:$0xff]   ;;  %v7749_v27 = vld [vmem:[%s11266_s1 + $0x7e0] ss:$16 sps:$4 sm:$0xff]  }
  0xc4   :  { %5072 = vmatprep.subr.bf16.mxu0 %v7667_v28  ;;  %5605 = vmatprep.subr.bf16.mxu1 %v7670_v29  ;;  %v7752_v28 = vld [vmem:[%s11266_s1 + $0x7e8] ss:$16 sps:$4 sm:$0xff]   ;;  %v7757_v29 = vld [vmem:[%s11266_s1 + $0x804] ss:$16 sps:$4 sm:$0xff]  }
  0xc5   :  { %5102 = vmatprep.mubr.bf16.mxu0 %v886_v14  ;;  %5635 = vmatprep.mubr.bf16.mxu1 %v886_v14  ;;  %v7760_v14 = vld [vmem:[%s11266_s1 + $0x80c] ss:$16 sps:$4 sm:$0xff]  }
  0xc7   :  { %5073 = vmatpush1.bf16.msra.mxu0 %v7665_v30  ;;  %5606 = vmatpush1.bf16.msra.mxu1 %v7668_v31  ;;  %v902_v30 = vcombine.high %v9443_v21, %v9443_v21  ;;  %v884_v31 = vcombine.high %v9269_v26, %v9269_v26  ;;  %v7766_v26 = vld [vmem:[%s11266_s1 + $0x82c] ss:$16 sps:$4 sm:$0xff]  }
  0xc8   :  { %5074 = vmatprep.subr.bf16.mxu0 %v7673_v25  ;;  %5607 = vmatprep.subr.bf16.mxu1 %v7676_v32  ;;  %v7755_v25 = vld [vmem:[%s11266_s1 + $0x800] ss:$16 sps:$4 sm:$0xff]   ;;  %v7758_v32 = vld [vmem:[%s11266_s1 + $0x808] ss:$16 sps:$4 sm:$0xff]  }
  0xcb   :  { %5075 = vmatpush1.bf16.msra.mxu0 %v7671_v33  ;;  %5608 = vmatpush1.bf16.msra.mxu1 %v7674_v34  ;;  %v7763_v33 = vld [vmem:[%s11266_s1 + $0x824] ss:$16 sps:$4 sm:$0xff]   ;;  %v9486_v34 = vrot.slane %v902_v30, %v8785_v49 }
  0xcc   :  { %5076 = vmatprep.subr.bf16.mxu0 %v7679_v35  ;;  %5609 = vmatprep.subr.bf16.mxu1 %v7682_v36  ;;  %v7761_v35 = vld [vmem:[%s11266_s1 + $0x820] ss:$16 sps:$4 sm:$0xff]   ;;  %v7764_v36 = vld [vmem:[%s11266_s1 + $0x828] ss:$16 sps:$4 sm:$0xff]   ;;  %v7847_v30 = vld [vmem:[%s11266_s1 + $0x9e4] ss:$16 sps:$4 sm:$0xff]  }
  0xcf   :  { %5077 = vmatpush1.bf16.msra.mxu0 %v7677_v37  ;;  %5610 = vmatpush1.bf16.msra.mxu1 %v7680_v38  ;;  %v7769_v37 = vld [vmem:[%s11266_s1 + $0x844] ss:$16 sps:$4 sm:$0xff]   ;;  %v7772_v38 = vld [vmem:[%s11266_s1 + $0x84c] ss:$16 sps:$4 sm:$0xff]  }
  0xd0   :  { %5078 = vmatprep.subr.bf16.mxu0 %v7685_v39  ;;  %5611 = vmatprep.subr.bf16.mxu1 %v7688_v40  ;;  %v7767_v39 = vld [vmem:[%s11266_s1 + $0x840] ss:$16 sps:$4 sm:$0xff]   ;;  %v7770_v40 = vld [vmem:[%s11266_s1 + $0x848] ss:$16 sps:$4 sm:$0xff]  }
  0xd3   :  { %5079 = vmatpush1.bf16.msra.mxu0 %v7683_v41  ;;  %5612 = vmatpush1.bf16.msra.mxu1 %v7686_v43  ;;  %v7775_v41 = vld [vmem:[%s11266_s1 + $0x864] ss:$16 sps:$4 sm:$0xff]   ;;  %v7778_v43 = vld [vmem:[%s11266_s1 + $0x86c] ss:$16 sps:$4 sm:$0xff]  }
  0xd4   :  { %5080 = vmatprep.subr.bf16.mxu0 %v7691_v44  ;;  %5613 = vmatprep.subr.bf16.mxu1 %v7694_v45  ;;  %v7773_v44 = vld [vmem:[%s11266_s1 + $0x860] ss:$16 sps:$4 sm:$0xff]   ;;  %v7776_v45 = vld [vmem:[%s11266_s1 + $0x868] ss:$16 sps:$4 sm:$0xff]  }
  0xd7   :  { %5081 = vmatpush1.bf16.msra.mxu0 %v7689_v46  ;;  %5614 = vmatpush1.bf16.msra.mxu1 %v7692_v47  ;;  %v7781_v46 = vld [vmem:[%s11266_s1 + $0x884] ss:$16 sps:$4 sm:$0xff]   ;;  %v7784_v47 = vld [vmem:[%s11266_s1 + $0x88c] ss:$16 sps:$4 sm:$0xff]  }
  0xd8   :  { %5082 = vmatprep.subr.bf16.mxu0 %v7697_v48  ;;  %5615 = vmatprep.subr.bf16.mxu1 %v7700_v50  ;;  %v7779_v48 = vld [vmem:[%s11266_s1 + $0x880] ss:$16 sps:$4 sm:$0xff]   ;;  %v7782_v50 = vld [vmem:[%s11266_s1 + $0x888] ss:$16 sps:$4 sm:$0xff]  }
  0xdb   :  { %5083 = vmatpush1.bf16.msra.mxu0 %v7695_v51  ;;  %5616 = vmatpush1.bf16.msra.mxu1 %v7698_v53  ;;  %v7787_v51 = vld [vmem:[%s11266_s1 + $0x8a4] ss:$16 sps:$4 sm:$0xff]   ;;  %v7790_v53 = vld [vmem:[%s11266_s1 + $0x8ac] ss:$16 sps:$4 sm:$0xff]  }
  0xdc   :  { %5084 = vmatprep.subr.bf16.mxu0 %v7703_v54  ;;  %5617 = vmatprep.subr.bf16.mxu1 %v7706_v55  ;;  %v7785_v54 = vld [vmem:[%s11266_s1 + $0x8a0] ss:$16 sps:$4 sm:$0xff]   ;;  %v7788_v55 = vld [vmem:[%s11266_s1 + $0x8a8] ss:$16 sps:$4 sm:$0xff]  }
  0xdf   :  { %5085 = vmatpush1.bf16.msra.mxu0 %v7701_v56  ;;  %5618 = vmatpush1.bf16.msra.mxu1 %v7704_v57  ;;  %v7793_v56 = vld [vmem:[%s11266_s1 + $0x8c4] ss:$16 sps:$4 sm:$0xff]   ;;  %v7796_v57 = vld [vmem:[%s11266_s1 + $0x8cc] ss:$16 sps:$4 sm:$0xff]  }
  0xe0   :  { %5086 = vmatprep.subr.bf16.mxu0 %v7709_v58  ;;  %5619 = vmatprep.subr.bf16.mxu1 %v7712_v59  ;;  %v7791_v58 = vld [vmem:[%s11266_s1 + $0x8c0] ss:$16 sps:$4 sm:$0xff]   ;;  %v7794_v59 = vld [vmem:[%s11266_s1 + $0x8c8] ss:$16 sps:$4 sm:$0xff]  }
  0xe3   :  { %5087 = vmatpush1.bf16.msra.mxu0 %v7707_v60  ;;  %5620 = vmatpush1.bf16.msra.mxu1 %v7710_v61  ;;  %v7799_v60 = vld [vmem:[%s11266_s1 + $0x8e4] ss:$16 sps:$4 sm:$0xff]   ;;  %v7802_v61 = vld [vmem:[%s11266_s1 + $0x8ec] ss:$16 sps:$4 sm:$0xff]  }
  0xe4   :  { %5088 = vmatprep.subr.bf16.mxu0 %v7715_v62  ;;  %5621 = vmatprep.subr.bf16.mxu1 %v7718_v63  ;;  %v7797_v62 = vld [vmem:[%s11266_s1 + $0x8e0] ss:$16 sps:$4 sm:$0xff]   ;;  %v7800_v63 = vld [vmem:[%s11266_s1 + $0x8e8] ss:$16 sps:$4 sm:$0xff]  }
  0xe7   :  { %5089 = vmatpush1.bf16.msra.mxu0 %v7713_v0  ;;  %5622 = vmatpush1.bf16.msra.mxu1 %v7716_v1  ;;  %v7805_v0 = vld [vmem:[%s11266_s1 + $0x904] ss:$16 sps:$4 sm:$0xff]   ;;  %v7808_v1 = vld [vmem:[%s11266_s1 + $0x90c] ss:$16 sps:$4 sm:$0xff]  }
  0xe8   :  { %5090 = vmatprep.subr.bf16.mxu0 %v7721_v2  ;;  %5623 = vmatprep.subr.bf16.mxu1 %v7724_v3  ;;  %v7803_v2 = vld [vmem:[%s11266_s1 + $0x900] ss:$16 sps:$4 sm:$0xff]   ;;  %v7806_v3 = vld [vmem:[%s11266_s1 + $0x908] ss:$16 sps:$4 sm:$0xff]  }
  0xeb   :  { %5091 = vmatpush1.bf16.msra.mxu0 %v7719_v4  ;;  %5624 = vmatpush1.bf16.msra.mxu1 %v7722_v5  ;;  %v7811_v4 = vld [vmem:[%s11266_s1 + $0x924] ss:$16 sps:$4 sm:$0xff]   ;;  %v7814_v5 = vld [vmem:[%s11266_s1 + $0x92c] ss:$16 sps:$4 sm:$0xff]  }
  0xec   :  { %5092 = vmatprep.subr.bf16.mxu0 %v7727_v6  ;;  %5625 = vmatprep.subr.bf16.mxu1 %v7730_v7  ;;  %v7809_v6 = vld [vmem:[%s11266_s1 + $0x920] ss:$16 sps:$4 sm:$0xff]   ;;  %v7812_v7 = vld [vmem:[%s11266_s1 + $0x928] ss:$16 sps:$4 sm:$0xff]  }
  0xef   :  { %5093 = vmatpush1.bf16.msra.mxu0 %v7725_v8  ;;  %5626 = vmatpush1.bf16.msra.mxu1 %v7728_v9  ;;  %v7817_v8 = vld [vmem:[%s11266_s1 + $0x944] ss:$16 sps:$4 sm:$0xff]   ;;  %v7820_v9 = vld [vmem:[%s11266_s1 + $0x94c] ss:$16 sps:$4 sm:$0xff]  }
  0xf0   :  { %5094 = vmatprep.subr.bf16.mxu0 %v7733_v10  ;;  %5627 = vmatprep.subr.bf16.mxu1 %v7736_v11  ;;  %v7815_v10 = vld [vmem:[%s11266_s1 + $0x940] ss:$16 sps:$4 sm:$0xff]   ;;  %v7818_v11 = vld [vmem:[%s11266_s1 + $0x948] ss:$16 sps:$4 sm:$0xff]  }
  0xf3   :  { %5095 = vmatpush1.bf16.msra.mxu0 %v7731_v12  ;;  %5628 = vmatpush1.bf16.msra.mxu1 %v7734_v52  ;;  %v7823_v12 = vld [vmem:[%s11266_s1 + $0x964] ss:$16 sps:$4 sm:$0xff]   ;;  %v7826_v52 = vld [vmem:[%s11266_s1 + $0x96c] ss:$16 sps:$4 sm:$0xff]  }
  0xf4   :  { %5096 = vmatprep.subr.bf16.mxu0 %v7739_v15  ;;  %5629 = vmatprep.subr.bf16.mxu1 %v7742_v16  ;;  %v7821_v15 = vld [vmem:[%s11266_s1 + $0x960] ss:$16 sps:$4 sm:$0xff]   ;;  %v7824_v16 = vld [vmem:[%s11266_s1 + $0x968] ss:$16 sps:$4 sm:$0xff]  }
  0xf7   :  { %5097 = vmatpush1.bf16.msra.mxu0 %v7737_v17  ;;  %5630 = vmatpush1.bf16.msra.mxu1 %v7740_v18  ;;  %v7829_v17 = vld [vmem:[%s11266_s1 + $0x984] ss:$16 sps:$4 sm:$0xff]   ;;  %v7832_v18 = vld [vmem:[%s11266_s1 + $0x98c] ss:$16 sps:$4 sm:$0xff]  }
  0xf8   :  { %5098 = vmatprep.subr.bf16.mxu0 %v7745_v19  ;;  %5631 = vmatprep.subr.bf16.mxu1 %v7748_v20  ;;  %v7827_v19 = vld [vmem:[%s11266_s1 + $0x980] ss:$16 sps:$4 sm:$0xff]   ;;  %v7830_v20 = vld [vmem:[%s11266_s1 + $0x988] ss:$16 sps:$4 sm:$0xff]  }
  0xfb   :  { %5099 = vmatpush1.bf16.msra.mxu0 %v7743_v22  ;;  %5632 = vmatpush1.bf16.msra.mxu1 %v7746_v23  ;;  %v7835_v22 = vld [vmem:[%s11266_s1 + $0x9a4] ss:$16 sps:$4 sm:$0xff]   ;;  %v7838_v23 = vld [vmem:[%s11266_s1 + $0x9ac] ss:$16 sps:$4 sm:$0xff]  }
  0xfc   :  { %5100 = vmatprep.subr.bf16.mxu0 %v7751_v24  ;;  %5633 = vmatprep.subr.bf16.mxu1 %v7754_v13  ;;  %v7833_v24 = vld [vmem:[%s11266_s1 + $0x9a0] ss:$16 sps:$4 sm:$0xff]   ;;  %v7836_v13 = vld [vmem:[%s11266_s1 + $0x9a8] ss:$16 sps:$4 sm:$0xff]  }
  0xff   :  { %5101 = vmatpush1.bf16.msra.mxu0 %v7749_v27  ;;  %5634 = vmatpush1.bf16.msra.mxu1 %v7752_v28  ;;  %v7841_v27 = vld [vmem:[%s11266_s1 + $0x9c4] ss:$16 sps:$4 sm:$0xff]   ;;  %v7844_v28 = vld [vmem:[%s11266_s1 + $0x9cc] ss:$16 sps:$4 sm:$0xff]  }
 0x100   :  { %5111 = vmatprep.subr.bf16.mxu0 %v7757_v29  ;;  %5644 = vmatprep.subr.bf16.mxu1 %v7760_v14  ;;  %v7839_v29 = vld [vmem:[%s11266_s1 + $0x9c0] ss:$16 sps:$4 sm:$0xff]   ;;  %v7842_v14 = vld [vmem:[%s11266_s1 + $0x9c8] ss:$16 sps:$4 sm:$0xff]  }
 0x102   :  { %5103 = vmatmul.mubr.bf16.vlgmr.msra.gmra.mrb[0].mxu0 %v884_v31  ;;  %5636 = vmatmul.mubr.bf16.vlgmr.msra.gmra.mrb[0].mxu1 %v884_v31  ;;  %v7850_v31 = vld [vmem:[%s11266_s1 + $0x9ec] ss:$16 sps:$4 sm:$0xff]  }
 0x103   :  { %5112 = vmatpush1.bf16.msra.mxu0 %v7755_v25  ;;  %5645 = vmatpush1.bf16.msra.mxu1 %v7758_v32  ;;  %v7845_v25 = vld [vmem:[%s11266_s1 + $0x9e0] ss:$16 sps:$4 sm:$0xff]   ;;  %v7848_v32 = vld [vmem:[%s11266_s1 + $0x9e8] ss:$16 sps:$4 sm:$0xff]  }
 0x104   :  { %5113 = vmatprep.subr.bf16.mxu0 %v7763_v33  ;;  %5646 = vmatprep.subr.bf16.mxu1 %v7766_v26  ;;  %v7853_v33 = vld [vmem:[%s11266_s1 + $0xa04] ss:$16 sps:$4 sm:$0xff]   ;;  %v7856_v26 = vld [vmem:[%s11266_s1 + $0xa0c] ss:$16 sps:$4 sm:$0xff]  }
 0x105   :  { %5143 = vmatprep.mubr.bf16.mxu0 %v9486_v34  ;;  %5676 = vmatprep.mubr.bf16.mxu1 %v9486_v34 }
 0x107   :  { %5114 = vmatpush1.bf16.msra.mxu0 %v7761_v35  ;;  %5647 = vmatpush1.bf16.msra.mxu1 %v7764_v36  ;;  %v9672_v35 = vrot.slane %v9443_v21, %v8785_v49  ;;  %v7851_v36 = vld [vmem:[%s11266_s1 + $0xa00] ss:$16 sps:$4 sm:$0xff]   ;;  %v7862_v21 = vld [vmem:[%s11266_s1 + $0xa2c] ss:$16 sps:$4 sm:$0xff]  }
 0x108   :  { %5115 = vmatprep.subr.bf16.mxu0 %v7769_v37  ;;  %5648 = vmatprep.subr.bf16.mxu1 %v7772_v38  ;;  %v7854_v37 = vld [vmem:[%s11266_s1 + $0xa08] ss:$16 sps:$4 sm:$0xff]   ;;  %v7859_v38 = vld [vmem:[%s11266_s1 + $0xa24] ss:$16 sps:$4 sm:$0xff]  }
 0x10b   :  { %5116 = vmatpush1.bf16.msra.mxu0 %v7767_v39  ;;  %5649 = vmatpush1.bf16.msra.mxu1 %v7770_v40  ;;  %v934_v39 = vcombine.high %v9486_v34, %v9486_v34  ;;  %v7857_v40 = vld [vmem:[%s11266_s1 + $0xa20] ss:$16 sps:$4 sm:$0xff]   ;;  %v7865_v34 = vld [vmem:[%s11266_s1 + $0xa44] ss:$16 sps:$4 sm:$0xff]  }
 0x10c   :  { %5117 = vmatprep.subr.bf16.mxu0 %v7775_v41  ;;  %5650 = vmatprep.subr.bf16.mxu1 %v7778_v43  ;;  %v7860_v41 = vld [vmem:[%s11266_s1 + $0xa28] ss:$16 sps:$4 sm:$0xff]   ;;  %v7868_v43 = vld [vmem:[%s11266_s1 + $0xa4c] ss:$16 sps:$4 sm:$0xff]  }
 0x10f   :  { %5118 = vmatpush1.bf16.msra.mxu0 %v7773_v44  ;;  %5651 = vmatpush1.bf16.msra.mxu1 %v7776_v45  ;;  %v7863_v44 = vld [vmem:[%s11266_s1 + $0xa40] ss:$16 sps:$4 sm:$0xff]   ;;  %v7866_v45 = vld [vmem:[%s11266_s1 + $0xa48] ss:$16 sps:$4 sm:$0xff]  }
 0x110   :  { %5119 = vmatprep.subr.bf16.mxu0 %v7781_v46  ;;  %5652 = vmatprep.subr.bf16.mxu1 %v7784_v47  ;;  %v7871_v46 = vld [vmem:[%s11266_s1 + $0xa64] ss:$16 sps:$4 sm:$0xff]   ;;  %v7874_v47 = vld [vmem:[%s11266_s1 + $0xa6c] ss:$16 sps:$4 sm:$0xff]  }
 0x113   :  { %5120 = vmatpush1.bf16.msra.mxu0 %v7779_v48  ;;  %5653 = vmatpush1.bf16.msra.mxu1 %v7782_v50  ;;  %v7869_v48 = vld [vmem:[%s11266_s1 + $0xa60] ss:$16 sps:$4 sm:$0xff]   ;;  %v7872_v50 = vld [vmem:[%s11266_s1 + $0xa68] ss:$16 sps:$4 sm:$0xff]  }
 0x114   :  { %5121 = vmatprep.subr.bf16.mxu0 %v7787_v51  ;;  %5654 = vmatprep.subr.bf16.mxu1 %v7790_v53  ;;  %v7877_v51 = vld [vmem:[%s11266_s1 + $0xa84] ss:$16 sps:$4 sm:$0xff]   ;;  %v7880_v53 = vld [vmem:[%s11266_s1 + $0xa8c] ss:$16 sps:$4 sm:$0xff]  }
 0x117   :  { %5122 = vmatpush1.bf16.msra.mxu0 %v7785_v54  ;;  %5655 = vmatpush1.bf16.msra.mxu1 %v7788_v55  ;;  %v7875_v54 = vld [vmem:[%s11266_s1 + $0xa80] ss:$16 sps:$4 sm:$0xff]   ;;  %v7878_v55 = vld [vmem:[%s11266_s1 + $0xa88] ss:$16 sps:$4 sm:$0xff]  }
 0x118   :  { %5123 = vmatprep.subr.bf16.mxu0 %v7793_v56  ;;  %5656 = vmatprep.subr.bf16.mxu1 %v7796_v57  ;;  %v7883_v56 = vld [vmem:[%s11266_s1 + $0xaa4] ss:$16 sps:$4 sm:$0xff]   ;;  %v7886_v57 = vld [vmem:[%s11266_s1 + $0xaac] ss:$16 sps:$4 sm:$0xff]  }
 0x11b   :  { %5124 = vmatpush1.bf16.msra.mxu0 %v7791_v58  ;;  %5657 = vmatpush1.bf16.msra.mxu1 %v7794_v59  ;;  %v7881_v58 = vld [vmem:[%s11266_s1 + $0xaa0] ss:$16 sps:$4 sm:$0xff]   ;;  %v7884_v59 = vld [vmem:[%s11266_s1 + $0xaa8] ss:$16 sps:$4 sm:$0xff]  }
 0x11c   :  { %5125 = vmatprep.subr.bf16.mxu0 %v7799_v60  ;;  %5658 = vmatprep.subr.bf16.mxu1 %v7802_v61  ;;  %v7889_v60 = vld [vmem:[%s11266_s1 + $0xac4] ss:$16 sps:$4 sm:$0xff]   ;;  %v7892_v61 = vld [vmem:[%s11266_s1 + $0xacc] ss:$16 sps:$4 sm:$0xff]  }
 0x11f   :  { %5126 = vmatpush1.bf16.msra.mxu0 %v7797_v62  ;;  %5659 = vmatpush1.bf16.msra.mxu1 %v7800_v63  ;;  %v7887_v62 = vld [vmem:[%s11266_s1 + $0xac0] ss:$16 sps:$4 sm:$0xff]   ;;  %v7890_v63 = vld [vmem:[%s11266_s1 + $0xac8] ss:$16 sps:$4 sm:$0xff]  }
 0x120   :  { %5127 = vmatprep.subr.bf16.mxu0 %v7805_v0  ;;  %5660 = vmatprep.subr.bf16.mxu1 %v7808_v1  ;;  %v7895_v0 = vld [vmem:[%s11266_s1 + $0xae4] ss:$16 sps:$4 sm:$0xff]   ;;  %v7898_v1 = vld [vmem:[%s11266_s1 + $0xaec] ss:$16 sps:$4 sm:$0xff]  }
 0x123   :  { %5128 = vmatpush1.bf16.msra.mxu0 %v7803_v2  ;;  %5661 = vmatpush1.bf16.msra.mxu1 %v7806_v3  ;;  %v7893_v2 = vld [vmem:[%s11266_s1 + $0xae0] ss:$16 sps:$4 sm:$0xff]   ;;  %v7896_v3 = vld [vmem:[%s11266_s1 + $0xae8] ss:$16 sps:$4 sm:$0xff]  }
 0x124   :  { %5129 = vmatprep.subr.bf16.mxu0 %v7811_v4  ;;  %5662 = vmatprep.subr.bf16.mxu1 %v7814_v5  ;;  %v7901_v4 = vld [vmem:[%s11266_s1 + $0xb04] ss:$16 sps:$4 sm:$0xff]   ;;  %v7904_v5 = vld [vmem:[%s11266_s1 + $0xb0c] ss:$16 sps:$4 sm:$0xff]  }
 0x127   :  { %5130 = vmatpush1.bf16.msra.mxu0 %v7809_v6  ;;  %5663 = vmatpush1.bf16.msra.mxu1 %v7812_v7  ;;  %v7899_v6 = vld [vmem:[%s11266_s1 + $0xb00] ss:$16 sps:$4 sm:$0xff]   ;;  %v7902_v7 = vld [vmem:[%s11266_s1 + $0xb08] ss:$16 sps:$4 sm:$0xff]  }
 0x128   :  { %5131 = vmatprep.subr.bf16.mxu0 %v7817_v8  ;;  %5664 = vmatprep.subr.bf16.mxu1 %v7820_v9  ;;  %v7907_v8 = vld [vmem:[%s11266_s1 + $0xb24] ss:$16 sps:$4 sm:$0xff]   ;;  %v7910_v9 = vld [vmem:[%s11266_s1 + $0xb2c] ss:$16 sps:$4 sm:$0xff]  }
 0x12b   :  { %5132 = vmatpush1.bf16.msra.mxu0 %v7815_v10  ;;  %5665 = vmatpush1.bf16.msra.mxu1 %v7818_v11  ;;  %v7905_v10 = vld [vmem:[%s11266_s1 + $0xb20] ss:$16 sps:$4 sm:$0xff]   ;;  %v7908_v11 = vld [vmem:[%s11266_s1 + $0xb28] ss:$16 sps:$4 sm:$0xff]  }
 0x12c   :  { %5133 = vmatprep.subr.bf16.mxu0 %v7823_v12  ;;  %5666 = vmatprep.subr.bf16.mxu1 %v7826_v52  ;;  %v7913_v12 = vld [vmem:[%s11266_s1 + $0xb44] ss:$16 sps:$4 sm:$0xff]   ;;  %v7916_v52 = vld [vmem:[%s11266_s1 + $0xb4c] ss:$16 sps:$4 sm:$0xff]  }
 0x12f   :  { %5134 = vmatpush1.bf16.msra.mxu0 %v7821_v15  ;;  %5667 = vmatpush1.bf16.msra.mxu1 %v7824_v16  ;;  %v7911_v15 = vld [vmem:[%s11266_s1 + $0xb40] ss:$16 sps:$4 sm:$0xff]   ;;  %v7914_v16 = vld [vmem:[%s11266_s1 + $0xb48] ss:$16 sps:$4 sm:$0xff]  }
 0x130   :  { %5135 = vmatprep.subr.bf16.mxu0 %v7829_v17  ;;  %5668 = vmatprep.subr.bf16.mxu1 %v7832_v18  ;;  %v7919_v17 = vld [vmem:[%s11266_s1 + $0xb64] ss:$16 sps:$4 sm:$0xff]   ;;  %v7922_v18 = vld [vmem:[%s11266_s1 + $0xb6c] ss:$16 sps:$4 sm:$0xff]  }
 0x133   :  { %5136 = vmatpush1.bf16.msra.mxu0 %v7827_v19  ;;  %5669 = vmatpush1.bf16.msra.mxu1 %v7830_v20  ;;  %v7917_v19 = vld [vmem:[%s11266_s1 + $0xb60] ss:$16 sps:$4 sm:$0xff]   ;;  %v7920_v20 = vld [vmem:[%s11266_s1 + $0xb68] ss:$16 sps:$4 sm:$0xff]  }
 0x134   :  { %5137 = vmatprep.subr.bf16.mxu0 %v7835_v22  ;;  %5670 = vmatprep.subr.bf16.mxu1 %v7838_v23  ;;  %v7925_v22 = vld [vmem:[%s11266_s1 + $0xb84] ss:$16 sps:$4 sm:$0xff]   ;;  %v7928_v23 = vld [vmem:[%s11266_s1 + $0xb8c] ss:$16 sps:$4 sm:$0xff]  }
 0x137   :  { %5138 = vmatpush1.bf16.msra.mxu0 %v7833_v24  ;;  %5671 = vmatpush1.bf16.msra.mxu1 %v7836_v13  ;;  %v7923_v24 = vld [vmem:[%s11266_s1 + $0xb80] ss:$16 sps:$4 sm:$0xff]   ;;  %v7926_v13 = vld [vmem:[%s11266_s1 + $0xb88] ss:$16 sps:$4 sm:$0xff]  }
 0x138   :  { %5139 = vmatprep.subr.bf16.mxu0 %v7841_v27  ;;  %5672 = vmatprep.subr.bf16.mxu1 %v7844_v28  ;;  %v7931_v27 = vld [vmem:[%s11266_s1 + $0xba4] ss:$16 sps:$4 sm:$0xff]   ;;  %v7934_v28 = vld [vmem:[%s11266_s1 + $0xbac] ss:$16 sps:$4 sm:$0xff]  }
 0x13b   :  { %5140 = vmatpush1.bf16.msra.mxu0 %v7839_v29  ;;  %5673 = vmatpush1.bf16.msra.mxu1 %v7842_v14  ;;  %v7929_v29 = vld [vmem:[%s11266_s1 + $0xba0] ss:$16 sps:$4 sm:$0xff]   ;;  %v7932_v14 = vld [vmem:[%s11266_s1 + $0xba8] ss:$16 sps:$4 sm:$0xff]  }
 0x13c   :  { %5141 = vmatprep.subr.bf16.mxu0 %v7847_v30  ;;  %5674 = vmatprep.subr.bf16.mxu1 %v7850_v31  ;;  %v7937_v30 = vld [vmem:[%s11266_s1 + $0xbc4] ss:$16 sps:$4 sm:$0xff]   ;;  %v7940_v31 = vld [vmem:[%s11266_s1 + $0xbcc] ss:$16 sps:$4 sm:$0xff]  }
 0x13f   :  { %5142 = vmatpush1.bf16.msra.mxu0 %v7845_v25  ;;  %5675 = vmatpush1.bf16.msra.mxu1 %v7848_v32  ;;  %v8585_v25 = vld [vmem:[%s11265_s0 + $0x8] sm:$0xff] }
 0x140   :  { %5152 = vmatprep.subr.bf16.mxu0 %v7853_v33  ;;  %5685 = vmatprep.subr.bf16.mxu1 %v7856_v26  ;;  %v887_v32 = vcombine.high %v8585_v25, %v8585_v25  ;;  %v7935_v33 = vld [vmem:[%s11266_s1 + $0xbc0] ss:$16 sps:$4 sm:$0xff]   ;;  %v7938_v26 = vld [vmem:[%s11266_s1 + $0xbc8] ss:$16 sps:$4 sm:$0xff]  }
 0x141   :  { %v8019_v25 = vld [vmem:[%s11266_s1 + $0xd80] ss:$16 sps:$4 sm:$0xff]  }
 0x142   :  { %5144 = vmatmul.mubr.bf16.vlgmr.msra.gmra.mrb[0].mxu0 %v9672_v35  ;;  %5677 = vmatmul.mubr.bf16.vlgmr.msra.gmra.mrb[0].mxu1 %v9672_v35 }
 0x143   :  { %5153 = vmatpush1.bf16.msra.mxu0 %v7851_v36  ;;  %5686 = vmatpush1.bf16.msra.mxu1 %v7854_v37  ;;  %v7943_v36 = vld [vmem:[%s11266_s1 + $0xbe4] ss:$16 sps:$4 sm:$0xff]   ;;  %v7946_v37 = vld [vmem:[%s11266_s1 + $0xbec] ss:$16 sps:$4 sm:$0xff]  }
 0x144   :  { %5154 = vmatprep.subr.bf16.mxu0 %v7859_v38  ;;  %5687 = vmatprep.subr.bf16.mxu1 %v7862_v21  ;;  %v9862_v38 = vrot.slane %v887_v32, %v8785_v49  ;;  %v7941_v21 = vld [vmem:[%s11266_s1 + $0xbe0] ss:$16 sps:$4 sm:$0xff]   ;;  %v8022_v32 = vld [vmem:[%s11266_s1 + $0xd88] ss:$16 sps:$4 sm:$0xff]  }
 0x145   :  { %5184 = vmatprep.mubr.bf16.mxu0 %v934_v39  ;;  %5717 = vmatprep.mubr.bf16.mxu1 %v934_v39  ;;  %v7944_v39 = vld [vmem:[%s11266_s1 + $0xbe8] ss:$16 sps:$4 sm:$0xff]  }
 0x147   :  { %5155 = vmatpush1.bf16.msra.mxu0 %v7857_v40  ;;  %5688 = vmatpush1.bf16.msra.mxu1 %v7860_v41  ;;  %v7949_v40 = vld [vmem:[%s11266_s1 + $0xc04] ss:$16 sps:$4 sm:$0xff]   ;;  %v7952_v41 = vld [vmem:[%s11266_s1 + $0xc0c] ss:$16 sps:$4 sm:$0xff]  }
 0x148   :  { %5156 = vmatprep.subr.bf16.mxu0 %v7865_v34  ;;  %5689 = vmatprep.subr.bf16.mxu1 %v7868_v43  ;;  %v903_v34 = vcombine.high %v9862_v38, %v9862_v38  ;;  %v932_v43 = vcombine.high %v9672_v35, %v9672_v35  ;;  %v7958_v35 = vld [vmem:[%s11266_s1 + $0xc2c] ss:$16 sps:$4 sm:$0xff]  }
 0x14b   :  { %5157 = vmatpush1.bf16.msra.mxu0 %v7863_v44  ;;  %5690 = vmatpush1.bf16.msra.mxu1 %v7866_v45  ;;  %v7947_v44 = vld [vmem:[%s11266_s1 + $0xc00] ss:$16 sps:$4 sm:$0xff]   ;;  %v7950_v45 = vld [vmem:[%s11266_s1 + $0xc08] ss:$16 sps:$4 sm:$0xff]  }
 0x14c   :  { %5158 = vmatprep.subr.bf16.mxu0 %v7871_v46  ;;  %5691 = vmatprep.subr.bf16.mxu1 %v7874_v47  ;;  %v7955_v46 = vld [vmem:[%s11266_s1 + $0xc24] ss:$16 sps:$4 sm:$0xff]   ;;  %v9893_v47 = vrot.slane %v903_v34, %v8785_v49 }
 0x14d   :  { %v8039_v34 = vld [vmem:[%s11266_s1 + $0xde4] ss:$16 sps:$4 sm:$0xff]  }
 0x14f   :  { %5159 = vmatpush1.bf16.msra.mxu0 %v7869_v48  ;;  %5692 = vmatpush1.bf16.msra.mxu1 %v7872_v50  ;;  %v7953_v48 = vld [vmem:[%s11266_s1 + $0xc20] ss:$16 sps:$4 sm:$0xff]   ;;  %v7956_v50 = vld [vmem:[%s11266_s1 + $0xc28] ss:$16 sps:$4 sm:$0xff]  }
 0x150   :  { %5160 = vmatprep.subr.bf16.mxu0 %v7877_v51  ;;  %5693 = vmatprep.subr.bf16.mxu1 %v7880_v53  ;;  %v7961_v51 = vld [vmem:[%s11266_s1 + $0xc44] ss:$16 sps:$4 sm:$0xff]   ;;  %v7964_v53 = vld [vmem:[%s11266_s1 + $0xc4c] ss:$16 sps:$4 sm:$0xff]  }
 0x153   :  { %5161 = vmatpush1.bf16.msra.mxu0 %v7875_v54  ;;  %5694 = vmatpush1.bf16.msra.mxu1 %v7878_v55  ;;  %v7959_v54 = vld [vmem:[%s11266_s1 + $0xc40] ss:$16 sps:$4 sm:$0xff]   ;;  %v7962_v55 = vld [vmem:[%s11266_s1 + $0xc48] ss:$16 sps:$4 sm:$0xff]  }
 0x154   :  { %5162 = vmatprep.subr.bf16.mxu0 %v7883_v56  ;;  %5695 = vmatprep.subr.bf16.mxu1 %v7886_v57  ;;  %v7967_v56 = vld [vmem:[%s11266_s1 + $0xc64] ss:$16 sps:$4 sm:$0xff]   ;;  %v7970_v57 = vld [vmem:[%s11266_s1 + $0xc6c] ss:$16 sps:$4 sm:$0xff]  }
 0x157   :  { %5163 = vmatpush1.bf16.msra.mxu0 %v7881_v58  ;;  %5696 = vmatpush1.bf16.msra.mxu1 %v7884_v59  ;;  %v7965_v58 = vld [vmem:[%s11266_s1 + $0xc60] ss:$16 sps:$4 sm:$0xff]   ;;  %v7968_v59 = vld [vmem:[%s11266_s1 + $0xc68] ss:$16 sps:$4 sm:$0xff]  }
 0x158   :  { %5164 = vmatprep.subr.bf16.mxu0 %v7889_v60  ;;  %5697 = vmatprep.subr.bf16.mxu1 %v7892_v61  ;;  %v7973_v60 = vld [vmem:[%s11266_s1 + $0xc84] ss:$16 sps:$4 sm:$0xff]   ;;  %v7976_v61 = vld [vmem:[%s11266_s1 + $0xc8c] ss:$16 sps:$4 sm:$0xff]  }
 0x15b   :  { %5165 = vmatpush1.bf16.msra.mxu0 %v7887_v62  ;;  %5698 = vmatpush1.bf16.msra.mxu1 %v7890_v63  ;;  %v7971_v62 = vld [vmem:[%s11266_s1 + $0xc80] ss:$16 sps:$4 sm:$0xff]   ;;  %v7974_v63 = vld [vmem:[%s11266_s1 + $0xc88] ss:$16 sps:$4 sm:$0xff]  }
 0x15c   :  { %5166 = vmatprep.subr.bf16.mxu0 %v7895_v0  ;;  %5699 = vmatprep.subr.bf16.mxu1 %v7898_v1  ;;  %v7979_v0 = vld [vmem:[%s11266_s1 + $0xca4] ss:$16 sps:$4 sm:$0xff]   ;;  %v7982_v1 = vld [vmem:[%s11266_s1 + $0xcac] ss:$16 sps:$4 sm:$0xff]  }
 0x15f   :  { %5167 = vmatpush1.bf16.msra.mxu0 %v7893_v2  ;;  %5700 = vmatpush1.bf16.msra.mxu1 %v7896_v3  ;;  %v7977_v2 = vld [vmem:[%s11266_s1 + $0xca0] ss:$16 sps:$4 sm:$0xff]   ;;  %v7980_v3 = vld [vmem:[%s11266_s1 + $0xca8] ss:$16 sps:$4 sm:$0xff]  }
 0x160   :  { %5168 = vmatprep.subr.bf16.mxu0 %v7901_v4  ;;  %5701 = vmatprep.subr.bf16.mxu1 %v7904_v5  ;;  %v7985_v4 = vld [vmem:[%s11266_s1 + $0xcc4] ss:$16 sps:$4 sm:$0xff]   ;;  %v7988_v5 = vld [vmem:[%s11266_s1 + $0xccc] ss:$16 sps:$4 sm:$0xff]  }
 0x163   :  { %5169 = vmatpush1.bf16.msra.mxu0 %v7899_v6  ;;  %5702 = vmatpush1.bf16.msra.mxu1 %v7902_v7  ;;  %v7983_v6 = vld [vmem:[%s11266_s1 + $0xcc0] ss:$16 sps:$4 sm:$0xff]   ;;  %v7986_v7 = vld [vmem:[%s11266_s1 + $0xcc8] ss:$16 sps:$4 sm:$0xff]  }
 0x164   :  { %5170 = vmatprep.subr.bf16.mxu0 %v7907_v8  ;;  %5703 = vmatprep.subr.bf16.mxu1 %v7910_v9  ;;  %v7991_v8 = vld [vmem:[%s11266_s1 + $0xce4] ss:$16 sps:$4 sm:$0xff]   ;;  %v7994_v9 = vld [vmem:[%s11266_s1 + $0xcec] ss:$16 sps:$4 sm:$0xff]  }
 0x167   :  { %5171 = vmatpush1.bf16.msra.mxu0 %v7905_v10  ;;  %5704 = vmatpush1.bf16.msra.mxu1 %v7908_v11  ;;  %v7989_v10 = vld [vmem:[%s11266_s1 + $0xce0] ss:$16 sps:$4 sm:$0xff]   ;;  %v7992_v11 = vld [vmem:[%s11266_s1 + $0xce8] ss:$16 sps:$4 sm:$0xff]  }
 0x168   :  { %5172 = vmatprep.subr.bf16.mxu0 %v7913_v12  ;;  %5705 = vmatprep.subr.bf16.mxu1 %v7916_v52  ;;  %v7997_v12 = vld [vmem:[%s11266_s1 + $0xd04] ss:$16 sps:$4 sm:$0xff]   ;;  %v8000_v52 = vld [vmem:[%s11266_s1 + $0xd0c] ss:$16 sps:$4 sm:$0xff]  }
 0x16b   :  { %5173 = vmatpush1.bf16.msra.mxu0 %v7911_v15  ;;  %5706 = vmatpush1.bf16.msra.mxu1 %v7914_v16  ;;  %v7995_v15 = vld [vmem:[%s11266_s1 + $0xd00] ss:$16 sps:$4 sm:$0xff]   ;;  %v7998_v16 = vld [vmem:[%s11266_s1 + $0xd08] ss:$16 sps:$4 sm:$0xff]  }
 0x16c   :  { %5174 = vmatprep.subr.bf16.mxu0 %v7919_v17  ;;  %5707 = vmatprep.subr.bf16.mxu1 %v7922_v18  ;;  %v8003_v17 = vld [vmem:[%s11266_s1 + $0xd24] ss:$16 sps:$4 sm:$0xff]   ;;  %v8006_v18 = vld [vmem:[%s11266_s1 + $0xd2c] ss:$16 sps:$4 sm:$0xff]  }
 0x16f   :  { %5175 = vmatpush1.bf16.msra.mxu0 %v7917_v19  ;;  %5708 = vmatpush1.bf16.msra.mxu1 %v7920_v20  ;;  %v8001_v19 = vld [vmem:[%s11266_s1 + $0xd20] ss:$16 sps:$4 sm:$0xff]   ;;  %v8004_v20 = vld [vmem:[%s11266_s1 + $0xd28] ss:$16 sps:$4 sm:$0xff]  }
 0x170   :  { %5176 = vmatprep.subr.bf16.mxu0 %v7925_v22  ;;  %5709 = vmatprep.subr.bf16.mxu1 %v7928_v23  ;;  %v8009_v22 = vld [vmem:[%s11266_s1 + $0xd44] ss:$16 sps:$4 sm:$0xff]   ;;  %v8012_v23 = vld [vmem:[%s11266_s1 + $0xd4c] ss:$16 sps:$4 sm:$0xff]  }
 0x173   :  { %5177 = vmatpush1.bf16.msra.mxu0 %v7923_v24  ;;  %5710 = vmatpush1.bf16.msra.mxu1 %v7926_v13  ;;  %v8007_v24 = vld [vmem:[%s11266_s1 + $0xd40] ss:$16 sps:$4 sm:$0xff]   ;;  %v8010_v13 = vld [vmem:[%s11266_s1 + $0xd48] ss:$16 sps:$4 sm:$0xff]  }
 0x174   :  { %5178 = vmatprep.subr.bf16.mxu0 %v7931_v27  ;;  %5711 = vmatprep.subr.bf16.mxu1 %v7934_v28  ;;  %v8015_v27 = vld [vmem:[%s11266_s1 + $0xd64] ss:$16 sps:$4 sm:$0xff]   ;;  %v8018_v28 = vld [vmem:[%s11266_s1 + $0xd6c] ss:$16 sps:$4 sm:$0xff]  }
 0x177   :  { %5179 = vmatpush1.bf16.msra.mxu0 %v7929_v29  ;;  %5712 = vmatpush1.bf16.msra.mxu1 %v7932_v14  ;;  %v8013_v29 = vld [vmem:[%s11266_s1 + $0xd60] ss:$16 sps:$4 sm:$0xff]   ;;  %v8016_v14 = vld [vmem:[%s11266_s1 + $0xd68] ss:$16 sps:$4 sm:$0xff]  }
 0x178   :  { %5180 = vmatprep.subr.bf16.mxu0 %v7937_v30  ;;  %5713 = vmatprep.subr.bf16.mxu1 %v7940_v31  ;;  %v8021_v30 = vld [vmem:[%s11266_s1 + $0xd84] ss:$16 sps:$4 sm:$0xff]   ;;  %v8024_v31 = vld [vmem:[%s11266_s1 + $0xd8c] ss:$16 sps:$4 sm:$0xff]  }
 0x17b   :  { %5181 = vmatpush1.bf16.msra.mxu0 %v7935_v33  ;;  %5714 = vmatpush1.bf16.msra.mxu1 %v7938_v26  ;;  %v8027_v33 = vld [vmem:[%s11266_s1 + $0xda4] ss:$16 sps:$4 sm:$0xff]   ;;  %v8030_v26 = vld [vmem:[%s11266_s1 + $0xdac] ss:$16 sps:$4 sm:$0xff]  }
 0x17c   :  { %5182 = vmatprep.subr.bf16.mxu0 %v7943_v36  ;;  %5715 = vmatprep.subr.bf16.mxu1 %v7946_v37  ;;  %v8025_v36 = vld [vmem:[%s11266_s1 + $0xda0] ss:$16 sps:$4 sm:$0xff]   ;;  %v8028_v37 = vld [vmem:[%s11266_s1 + $0xda8] ss:$16 sps:$4 sm:$0xff]  }
 0x17f   :  { %5183 = vmatpush1.bf16.msra.mxu0 %v7941_v21  ;;  %5716 = vmatpush1.bf16.msra.mxu1 %v7944_v39  ;;  %v8033_v21 = vld [vmem:[%s11266_s1 + $0xdc4] ss:$16 sps:$4 sm:$0xff]   ;;  %v8036_v39 = vld [vmem:[%s11266_s1 + $0xdcc] ss:$16 sps:$4 sm:$0xff]  }
 0x180   :  { %5193 = vmatprep.subr.bf16.mxu0 %v7949_v40  ;;  %5726 = vmatprep.subr.bf16.mxu1 %v7952_v41  ;;  %v8031_v40 = vld [vmem:[%s11266_s1 + $0xdc0] ss:$16 sps:$4 sm:$0xff]   ;;  %v8034_v41 = vld [vmem:[%s11266_s1 + $0xdc8] ss:$16 sps:$4 sm:$0xff]  }
 0x182   :  { %5185 = vmatmul.mubr.bf16.vlgmr.msra.gmra.mrb[0].mxu0 %v932_v43  ;;  %5718 = vmatmul.mubr.bf16.vlgmr.msra.gmra.mrb[0].mxu1 %v932_v43  ;;  %v8042_v43 = vld [vmem:[%s11266_s1 + $0xdec] ss:$16 sps:$4 sm:$0xff]  }
 0x183   :  { %5194 = vmatpush1.bf16.msra.mxu0 %v7947_v44  ;;  %5727 = vmatpush1.bf16.msra.mxu1 %v7950_v45  ;;  %v8037_v44 = vld [vmem:[%s11266_s1 + $0xde0] ss:$16 sps:$4 sm:$0xff]   ;;  %v8040_v45 = vld [vmem:[%s11266_s1 + $0xde8] ss:$16 sps:$4 sm:$0xff]  }
 0x184   :  { %5195 = vmatprep.subr.bf16.mxu0 %v7955_v46  ;;  %5728 = vmatprep.subr.bf16.mxu1 %v7958_v35  ;;  %v8046_v46 = vld [vmem:[%s11266_s1 + $0xe04] ss:$16 sps:$4 sm:$0xff]   ;;  %v8049_v35 = vld [vmem:[%s11266_s1 + $0xe0c] ss:$16 sps:$4 sm:$0xff]  }
 0x185   :  { %5225 = vmatprep.mubr.bf16.mxu0 %v9893_v47  ;;  %5758 = vmatprep.mubr.bf16.mxu1 %v9893_v47 }
 0x187   :  { %5196 = vmatpush1.bf16.msra.mxu0 %v7953_v48  ;;  %5729 = vmatpush1.bf16.msra.mxu1 %v7956_v50  ;;  %v10079_v48 = vrot.slane %v9862_v38, %v8785_v49  ;;  %v8044_v50 = vld [vmem:[%s11266_s1 + $0xe00] ss:$16 sps:$4 sm:$0xff]   ;;  %v8055_v38 = vld [vmem:[%s11266_s1 + $0xe2c] ss:$16 sps:$4 sm:$0xff]  }
 0x188   :  { %5197 = vmatprep.subr.bf16.mxu0 %v7961_v51  ;;  %5730 = vmatprep.subr.bf16.mxu1 %v7964_v53  ;;  %v8047_v51 = vld [vmem:[%s11266_s1 + $0xe08] ss:$16 sps:$4 sm:$0xff]   ;;  %v8052_v53 = vld [vmem:[%s11266_s1 + $0xe24] ss:$16 sps:$4 sm:$0xff]  }
 0x18b   :  { %5198 = vmatpush1.bf16.msra.mxu0 %v7959_v54  ;;  %5731 = vmatpush1.bf16.msra.mxu1 %v7962_v55  ;;  %v935_v54 = vcombine.high %v9893_v47, %v9893_v47  ;;  %v8050_v55 = vld [vmem:[%s11266_s1 + $0xe20] ss:$16 sps:$4 sm:$0xff]   ;;  %v8058_v47 = vld [vmem:[%s11266_s1 + $0xe44] ss:$16 sps:$4 sm:$0xff]  }
 0x18c   :  { %5199 = vmatprep.subr.bf16.mxu0 %v7967_v56  ;;  %5732 = vmatprep.subr.bf16.mxu1 %v7970_v57  ;;  %v8053_v56 = vld [vmem:[%s11266_s1 + $0xe28] ss:$16 sps:$4 sm:$0xff]   ;;  %v8061_v57 = vld [vmem:[%s11266_s1 + $0xe4c] ss:$16 sps:$4 sm:$0xff]  }
 0x18f   :  { %5200 = vmatpush1.bf16.msra.mxu0 %v7965_v58  ;;  %5733 = vmatpush1.bf16.msra.mxu1 %v7968_v59  ;;  %v8056_v58 = vld [vmem:[%s11266_s1 + $0xe40] ss:$16 sps:$4 sm:$0xff]   ;;  %v8059_v59 = vld [vmem:[%s11266_s1 + $0xe48] ss:$16 sps:$4 sm:$0xff]  }
 0x190   :  { %5201 = vmatprep.subr.bf16.mxu0 %v7973_v60  ;;  %5734 = vmatprep.subr.bf16.mxu1 %v7976_v61  ;;  %v8064_v60 = vld [vmem:[%s11266_s1 + $0xe64] ss:$16 sps:$4 sm:$0xff]   ;;  %v8067_v61 = vld [vmem:[%s11266_s1 + $0xe6c] ss:$16 sps:$4 sm:$0xff]  }
 0x193   :  { %5202 = vmatpush1.bf16.msra.mxu0 %v7971_v62  ;;  %5735 = vmatpush1.bf16.msra.mxu1 %v7974_v63  ;;  %v8062_v62 = vld [vmem:[%s11266_s1 + $0xe60] ss:$16 sps:$4 sm:$0xff]   ;;  %v8065_v63 = vld [vmem:[%s11266_s1 + $0xe68] ss:$16 sps:$4 sm:$0xff]  }
 0x194   :  { %5203 = vmatprep.subr.bf16.mxu0 %v7979_v0  ;;  %5736 = vmatprep.subr.bf16.mxu1 %v7982_v1  ;;  %v8070_v0 = vld [vmem:[%s11266_s1 + $0xe84] ss:$16 sps:$4 sm:$0xff]   ;;  %v8073_v1 = vld [vmem:[%s11266_s1 + $0xe8c] ss:$16 sps:$4 sm:$0xff]  }
 0x197   :  { %5204 = vmatpush1.bf16.msra.mxu0 %v7977_v2  ;;  %5737 = vmatpush1.bf16.msra.mxu1 %v7980_v3  ;;  %v8068_v2 = vld [vmem:[%s11266_s1 + $0xe80] ss:$16 sps:$4 sm:$0xff]   ;;  %v8071_v3 = vld [vmem:[%s11266_s1 + $0xe88] ss:$16 sps:$4 sm:$0xff]  }
 0x198   :  { %5205 = vmatprep.subr.bf16.mxu0 %v7985_v4  ;;  %5738 = vmatprep.subr.bf16.mxu1 %v7988_v5  ;;  %v8076_v4 = vld [vmem:[%s11266_s1 + $0xea4] ss:$16 sps:$4 sm:$0xff]   ;;  %v8079_v5 = vld [vmem:[%s11266_s1 + $0xeac] ss:$16 sps:$4 sm:$0xff]  }
 0x19b   :  { %5206 = vmatpush1.bf16.msra.mxu0 %v7983_v6  ;;  %5739 = vmatpush1.bf16.msra.mxu1 %v7986_v7  ;;  %v8074_v6 = vld [vmem:[%s11266_s1 + $0xea0] ss:$16 sps:$4 sm:$0xff]   ;;  %v8077_v7 = vld [vmem:[%s11266_s1 + $0xea8] ss:$16 sps:$4 sm:$0xff]  }
 0x19c   :  { %5207 = vmatprep.subr.bf16.mxu0 %v7991_v8  ;;  %5740 = vmatprep.subr.bf16.mxu1 %v7994_v9  ;;  %v8082_v8 = vld [vmem:[%s11266_s1 + $0xec4] ss:$16 sps:$4 sm:$0xff]   ;;  %v8085_v9 = vld [vmem:[%s11266_s1 + $0xecc] ss:$16 sps:$4 sm:$0xff]  }
 0x19f   :  { %5208 = vmatpush1.bf16.msra.mxu0 %v7989_v10  ;;  %5741 = vmatpush1.bf16.msra.mxu1 %v7992_v11  ;;  %v8080_v10 = vld [vmem:[%s11266_s1 + $0xec0] ss:$16 sps:$4 sm:$0xff]   ;;  %v8083_v11 = vld [vmem:[%s11266_s1 + $0xec8] ss:$16 sps:$4 sm:$0xff]  }
 0x1a0   :  { %5209 = vmatprep.subr.bf16.mxu0 %v7997_v12  ;;  %5742 = vmatprep.subr.bf16.mxu1 %v8000_v52  ;;  %v8088_v12 = vld [vmem:[%s11266_s1 + $0xee4] ss:$16 sps:$4 sm:$0xff]   ;;  %v8091_v52 = vld [vmem:[%s11266_s1 + $0xeec] ss:$16 sps:$4 sm:$0xff]  }
 0x1a3   :  { %5210 = vmatpush1.bf16.msra.mxu0 %v7995_v15  ;;  %5743 = vmatpush1.bf16.msra.mxu1 %v7998_v16  ;;  %v8086_v15 = vld [vmem:[%s11266_s1 + $0xee0] ss:$16 sps:$4 sm:$0xff]   ;;  %v8089_v16 = vld [vmem:[%s11266_s1 + $0xee8] ss:$16 sps:$4 sm:$0xff]  }
 0x1a4   :  { %5211 = vmatprep.subr.bf16.mxu0 %v8003_v17  ;;  %5744 = vmatprep.subr.bf16.mxu1 %v8006_v18  ;;  %v8094_v17 = vld [vmem:[%s11266_s1 + $0xf04] ss:$16 sps:$4 sm:$0xff]   ;;  %v8097_v18 = vld [vmem:[%s11266_s1 + $0xf0c] ss:$16 sps:$4 sm:$0xff]  }
 0x1a7   :  { %5212 = vmatpush1.bf16.msra.mxu0 %v8001_v19  ;;  %5745 = vmatpush1.bf16.msra.mxu1 %v8004_v20  ;;  %v8092_v19 = vld [vmem:[%s11266_s1 + $0xf00] ss:$16 sps:$4 sm:$0xff]   ;;  %v8095_v20 = vld [vmem:[%s11266_s1 + $0xf08] ss:$16 sps:$4 sm:$0xff]  }
 0x1a8   :  { %5213 = vmatprep.subr.bf16.mxu0 %v8009_v22  ;;  %5746 = vmatprep.subr.bf16.mxu1 %v8012_v23  ;;  %v8100_v22 = vld [vmem:[%s11266_s1 + $0xf24] ss:$16 sps:$4 sm:$0xff]   ;;  %v8103_v23 = vld [vmem:[%s11266_s1 + $0xf2c] ss:$16 sps:$4 sm:$0xff]  }
 0x1ab   :  { %5214 = vmatpush1.bf16.msra.mxu0 %v8007_v24  ;;  %5747 = vmatpush1.bf16.msra.mxu1 %v8010_v13  ;;  %v8098_v24 = vld [vmem:[%s11266_s1 + $0xf20] ss:$16 sps:$4 sm:$0xff]   ;;  %v8101_v13 = vld [vmem:[%s11266_s1 + $0xf28] ss:$16 sps:$4 sm:$0xff]  }
 0x1ac   :  { %5215 = vmatprep.subr.bf16.mxu0 %v8015_v27  ;;  %5748 = vmatprep.subr.bf16.mxu1 %v8018_v28  ;;  %v8106_v27 = vld [vmem:[%s11266_s1 + $0xf44] ss:$16 sps:$4 sm:$0xff]   ;;  %v8109_v28 = vld [vmem:[%s11266_s1 + $0xf4c] ss:$16 sps:$4 sm:$0xff]  }
 0x1af   :  { %5216 = vmatpush1.bf16.msra.mxu0 %v8013_v29  ;;  %5749 = vmatpush1.bf16.msra.mxu1 %v8016_v14  ;;  %v8104_v29 = vld [vmem:[%s11266_s1 + $0xf40] ss:$16 sps:$4 sm:$0xff]   ;;  %v8107_v14 = vld [vmem:[%s11266_s1 + $0xf48] ss:$16 sps:$4 sm:$0xff]  }
 0x1b0   :  { %5217 = vmatprep.subr.bf16.mxu0 %v8021_v30  ;;  %5750 = vmatprep.subr.bf16.mxu1 %v8024_v31  ;;  %v8112_v30 = vld [vmem:[%s11266_s1 + $0xf64] ss:$16 sps:$4 sm:$0xff]   ;;  %v8115_v31 = vld [vmem:[%s11266_s1 + $0xf6c] ss:$16 sps:$4 sm:$0xff]  }
 0x1b3   :  { %5218 = vmatpush1.bf16.msra.mxu0 %v8019_v25  ;;  %5751 = vmatpush1.bf16.msra.mxu1 %v8022_v32 }
 0x1b4   :  { %5219 = vmatprep.subr.bf16.mxu0 %v8027_v33  ;;  %5752 = vmatprep.subr.bf16.mxu1 %v8030_v26 }
 0x1b7   :  { %5220 = vmatpush1.bf16.msra.mxu0 %v8025_v36  ;;  %5753 = vmatpush1.bf16.msra.mxu1 %v8028_v37 }
 0x1b8   :  { %5221 = vmatprep.subr.bf16.mxu0 %v8033_v21  ;;  %5754 = vmatprep.subr.bf16.mxu1 %v8036_v39 }
 0x1bb   :  { %5222 = vmatpush1.bf16.msra.mxu0 %v8031_v40  ;;  %5755 = vmatpush1.bf16.msra.mxu1 %v8034_v41 }
 0x1bc   :  { %5223 = vmatprep.subr.bf16.mxu0 %v8039_v34  ;;  %5756 = vmatprep.subr.bf16.mxu1 %v8042_v43 }
 0x1bf   :  { %5224 = vmatpush1.bf16.msra.mxu0 %v8037_v44  ;;  %5757 = vmatpush1.bf16.msra.mxu1 %v8040_v45 }
 0x1c0   :  { %5234 = vmatprep.subr.bf16.mxu0 %v8046_v46  ;;  %5767 = vmatprep.subr.bf16.mxu1 %v8049_v35 }
 0x1c2   :  { %5226 = vmatmul.mubr.bf16.vlgmr.msra.gmra.mrb[0].mxu0 %v10079_v48  ;;  %5759 = vmatmul.mubr.bf16.vlgmr.msra.gmra.mrb[0].mxu1 %v10079_v48 }
 0x1c3   :  { %5235 = vmatpush1.bf16.msra.mxu0 %v8044_v50  ;;  %5768 = vmatpush1.bf16.msra.mxu1 %v8047_v51 }
 0x1c4   :  { %5236 = vmatprep.subr.bf16.mxu0 %v8052_v53  ;;  %5769 = vmatprep.subr.bf16.mxu1 %v8055_v38 }
 0x1c5   :  { %5266 = vmatprep.mubr.bf16.mxu0 %v935_v54  ;;  %5799 = vmatprep.mubr.bf16.mxu1 %v935_v54 }
 0x1c7   :  { %5237 = vmatpush1.bf16.msra.mxu0 %v8050_v55  ;;  %5770 = vmatpush1.bf16.msra.mxu1 %v8053_v56 }
 0x1c8   :  { %5238 = vmatprep.subr.bf16.mxu0 %v8058_v47  ;;  %5771 = vmatprep.subr.bf16.mxu1 %v8061_v57 }
 0x1cb   :  { %5239 = vmatpush1.bf16.msra.mxu0 %v8056_v58  ;;  %5772 = vmatpush1.bf16.msra.mxu1 %v8059_v59 }
 0x1cc   :  { %5240 = vmatprep.subr.bf16.mxu0 %v8064_v60  ;;  %5773 = vmatprep.subr.bf16.mxu1 %v8067_v61 }
 0x1cf   :  { %5241 = vmatpush1.bf16.msra.mxu0 %v8062_v62  ;;  %5774 = vmatpush1.bf16.msra.mxu1 %v8065_v63 }
 0x1d0   :  { %5242 = vmatprep.subr.bf16.mxu0 %v8070_v0  ;;  %5775 = vmatprep.subr.bf16.mxu1 %v8073_v1 }
 0x1d3   :  { %5243 = vmatpush1.bf16.msra.mxu0 %v8068_v2  ;;  %5776 = vmatpush1.bf16.msra.mxu1 %v8071_v3 }
 0x1d4   :  { %5244 = vmatprep.subr.bf16.mxu0 %v8076_v4  ;;  %5777 = vmatprep.subr.bf16.mxu1 %v8079_v5 }
 0x1d7   :  { %5245 = vmatpush1.bf16.msra.mxu0 %v8074_v6  ;;  %5778 = vmatpush1.bf16.msra.mxu1 %v8077_v7 }
 0x1d8   :  { %5246 = vmatprep.subr.bf16.mxu0 %v8082_v8  ;;  %5779 = vmatprep.subr.bf16.mxu1 %v8085_v9 }
 0x1db   :  { %5247 = vmatpush1.bf16.msra.mxu0 %v8080_v10  ;;  %5780 = vmatpush1.bf16.msra.mxu1 %v8083_v11 }
 0x1dc   :  { %5248 = vmatprep.subr.bf16.mxu0 %v8088_v12  ;;  %5781 = vmatprep.subr.bf16.mxu1 %v8091_v52 }
 0x1df   :  { %5249 = vmatpush1.bf16.msra.mxu0 %v8086_v15  ;;  %5782 = vmatpush1.bf16.msra.mxu1 %v8089_v16 }
 0x1e0   :  { %5250 = vmatprep.subr.bf16.mxu0 %v8094_v17  ;;  %5783 = vmatprep.subr.bf16.mxu1 %v8097_v18 }
 0x1e3   :  { %5251 = vmatpush1.bf16.msra.mxu0 %v8092_v19  ;;  %5784 = vmatpush1.bf16.msra.mxu1 %v8095_v20 }
 0x1e4   :  { %5252 = vmatprep.subr.bf16.mxu0 %v8100_v22  ;;  %5785 = vmatprep.subr.bf16.mxu1 %v8103_v23 }
 0x1e7   :  { %5253 = vmatpush1.bf16.msra.mxu0 %v8098_v24  ;;  %5786 = vmatpush1.bf16.msra.mxu1 %v8101_v13 }
 0x1e8   :  { %5254 = vmatprep.subr.bf16.mxu0 %v8106_v27  ;;  %5787 = vmatprep.subr.bf16.mxu1 %v8109_v28 }
 0x1e9   :  { %12 = vsyncpa [#allocation3], 0  ;;  %v8110_v25 = vld [vmem:[%s11266_s1 + $0xf60] ss:$16 sps:$4 sm:$0xff]   ;;  %v8113_v32 = vld [vmem:[%s11266_s1 + $0xf68] ss:$16 sps:$4 sm:$0xff]   ;;  %v933_v47 = vcombine.high %v10079_v48, %v10079_v48 }
 0x1ea   :  { %v8118_v33 = vld [vmem:[%s11266_s1 + $0xf84] ss:$16 sps:$4 sm:$0xff]   ;;  %v8121_v26 = vld [vmem:[%s11266_s1 + $0xf8c] ss:$16 sps:$4 sm:$0xff]   ;;  %v8116_v36 = vld [vmem:[%s11266_s1 + $0xf80] ss:$16 sps:$4 sm:$0xff]  }
 0x1eb   :  { %5255 = vmatpush1.bf16.msra.mxu0 %v8104_v29  ;;  %5788 = vmatpush1.bf16.msra.mxu1 %v8107_v14  ;;  %v8119_v37 = vld [vmem:[%s11266_s1 + $0xf88] ss:$16 sps:$4 sm:$0xff]   ;;  %v8124_v21 = vld [vmem:[%s11266_s1 + $0xfa4] ss:$16 sps:$4 sm:$0xff]   ;;  %v8127_v39 = vld [vmem:[%s11266_s1 + $0xfac] ss:$16 sps:$4 sm:$0xff]  }
 0x1ec   :  { %5256 = vmatprep.subr.bf16.mxu0 %v8112_v30  ;;  %5789 = vmatprep.subr.bf16.mxu1 %v8115_v31  ;;  %v8122_v40 = vld [vmem:[%s11266_s1 + $0xfa0] ss:$16 sps:$4 sm:$0xff]   ;;  %v8125_v41 = vld [vmem:[%s11266_s1 + $0xfa8] ss:$16 sps:$4 sm:$0xff]   ;;  %v8130_v34 = vld [vmem:[%s11266_s1 + $0xfc4] ss:$16 sps:$4 sm:$0xff]  }
 0x1ed   :  { %v8133_v43 = vld [vmem:[%s11266_s1 + $0xfcc] ss:$16 sps:$4 sm:$0xff]   ;;  %v10256_v44 = vld [vmem:[%s11265_s0 + $0x10] sm:$0xff]  ;;  %v8131_v46 = vld [vmem:[%s11266_s1 + $0xfc8] ss:$16 sps:$4 sm:$0xff]   ;;  %vm4943_vm0 = vcmask 523264  }
 0x1ee   :  { %v8128_v45 = vld [vmem:[%s11266_s1 + $0xfc0] ss:$16 sps:$4 sm:$0xff]   ;;  %v8136_v35 = vld [vmem:[%s11266_s1 + $0xfe4] ss:$16 sps:$4 sm:$0xff]   ;;  %v8139_v50 = vld [vmem:[%s11266_s1 + $0xfec] ss:$16 sps:$4 sm:$0xff]   ;;  %v10272_v51 = vrot.slane %v10256_v44, %v8785_v49 }
 0x1ef   :  { %5257 = vmatpush1.bf16.msra.mxu0 %v8110_v25  ;;  %5790 = vmatpush1.bf16.msra.mxu1 %v8113_v32  ;;  %v8134_v53 = vld [vmem:[%s11266_s1 + $0xfe0] ss:$16 sps:$4 sm:$0xff]   ;;  %v8137_v38 = vld [vmem:[%s11266_s1 + $0xfe8] ss:$16 sps:$4 sm:$0xff]   ;;  %v8142_v54 = vld [vmem:[%s11266_s1 + $0x1004] ss:$16 sps:$4 sm:$0xff]  }
 0x1f0   :  { %5258 = vmatprep.subr.bf16.mxu0 %v8118_v33  ;;  %5791 = vmatprep.subr.bf16.mxu1 %v8121_v26  ;;  %v8145_v55 = vld [vmem:[%s11266_s1 + $0x100c] ss:$16 sps:$4 sm:$0xff]   ;;  %v951_v56 = vcombine.high %v10272_v51, %v10272_v51  ;;  %v8140_v57 = vld [vmem:[%s11266_s1 + $0x1000] ss:$16 sps:$4 sm:$0xff]   ;;  %v8143_v58 = vld [vmem:[%s11266_s1 + $0x1008] ss:$16 sps:$4 sm:$0xff]  }
 0x1f1   :  { %v8148_v59 = vld [vmem:[%s11266_s1 + $0x1024] ss:$16 sps:$4 sm:$0xff]   ;;  %v8151_v48 = vld [vmem:[%s11266_s1 + $0x102c] ss:$16 sps:$4 sm:$0xff]   ;;  %v8146_v61 = vld [vmem:[%s11266_s1 + $0x1020] ss:$16 sps:$4 sm:$0xff]  }
 0x1f2   :  { %v10303_v60 = vrot.slane %v951_v56, %v8785_v49  ;;  %v8149_v62 = vld [vmem:[%s11266_s1 + $0x1028] ss:$16 sps:$4 sm:$0xff]   ;;  %v8154_v63 = vld [vmem:[%s11266_s1 + $0x1044] ss:$16 sps:$4 sm:$0xff]   ;;  %v8157_v0 = vld [vmem:[%s11266_s1 + $0x104c] ss:$16 sps:$4 sm:$0xff]  }
 0x1f3   :  { %5259 = vmatpush1.bf16.msra.mxu0 %v8116_v36  ;;  %5792 = vmatpush1.bf16.msra.mxu1 %v8119_v37  ;;  %v8152_v1 = vld [vmem:[%s11266_s1 + $0x1040] ss:$16 sps:$4 sm:$0xff]   ;;  %v8155_v2 = vld [vmem:[%s11266_s1 + $0x1048] ss:$16 sps:$4 sm:$0xff]   ;;  %v8160_v3 = vld [vmem:[%s11266_s1 + $0x1064] ss:$16 sps:$4 sm:$0xff]  }
 0x1f4   :  { %5260 = vmatprep.subr.bf16.mxu0 %v8124_v21  ;;  %5793 = vmatprep.subr.bf16.mxu1 %v8127_v39  ;;  %v8163_v4 = vld [vmem:[%s11266_s1 + $0x106c] ss:$16 sps:$4 sm:$0xff]   ;;  %v8158_v5 = vld [vmem:[%s11266_s1 + $0x1060] ss:$16 sps:$4 sm:$0xff]   ;;  %v8161_v6 = vld [vmem:[%s11266_s1 + $0x1068] ss:$16 sps:$4 sm:$0xff]  }
 0x1f5   :  { %v8166_v7 = vld [vmem:[%s11266_s1 + $0x1084] ss:$16 sps:$4 sm:$0xff]   ;;  %v8169_v8 = vld [vmem:[%s11266_s1 + $0x108c] ss:$16 sps:$4 sm:$0xff]   ;;  %v8164_v9 = vld [vmem:[%s11266_s1 + $0x1080] ss:$16 sps:$4 sm:$0xff]  }
 0x1f6   :  { %v8167_v10 = vld [vmem:[%s11266_s1 + $0x1088] ss:$16 sps:$4 sm:$0xff]   ;;  %v8172_v11 = vld [vmem:[%s11266_s1 + $0x10a4] ss:$16 sps:$4 sm:$0xff]   ;;  %v8175_v12 = vld [vmem:[%s11266_s1 + $0x10ac] ss:$16 sps:$4 sm:$0xff]  }
 0x1f7   :  { %5261 = vmatpush1.bf16.msra.mxu0 %v8122_v40  ;;  %5794 = vmatpush1.bf16.msra.mxu1 %v8125_v41  ;;  %v8170_v52 = vld [vmem:[%s11266_s1 + $0x10a0] ss:$16 sps:$4 sm:$0xff]   ;;  %v8173_v15 = vld [vmem:[%s11266_s1 + $0x10a8] ss:$16 sps:$4 sm:$0xff]   ;;  %v8178_v16 = vld [vmem:[%s11266_s1 + $0x10c4] ss:$16 sps:$4 sm:$0xff]  }
 0x1f8   :  { %5262 = vmatprep.subr.bf16.mxu0 %v8130_v34  ;;  %5795 = vmatprep.subr.bf16.mxu1 %v8133_v43  ;;  %v8181_v17 = vld [vmem:[%s11266_s1 + $0x10cc] ss:$16 sps:$4 sm:$0xff]   ;;  %v8176_v18 = vld [vmem:[%s11266_s1 + $0x10c0] ss:$16 sps:$4 sm:$0xff]   ;;  %v8179_v19 = vld [vmem:[%s11266_s1 + $0x10c8] ss:$16 sps:$4 sm:$0xff]  }
 0x1f9   :  { %v8184_v20 = vld [vmem:[%s11266_s1 + $0x10e4] ss:$16 sps:$4 sm:$0xff]   ;;  %v8187_v22 = vld [vmem:[%s11266_s1 + $0x10ec] ss:$16 sps:$4 sm:$0xff]   ;;  %v8182_v23 = vld [vmem:[%s11266_s1 + $0x10e0] ss:$16 sps:$4 sm:$0xff]  }
 0x1fa   :  { %v8185_v24 = vld [vmem:[%s11266_s1 + $0x10e8] ss:$16 sps:$4 sm:$0xff]   ;;  %v8190_v13 = vld [vmem:[%s11266_s1 + $0x1104] ss:$16 sps:$4 sm:$0xff]   ;;  %v8193_v27 = vld [vmem:[%s11266_s1 + $0x110c] ss:$16 sps:$4 sm:$0xff]  }
 0x1fb   :  { %5263 = vmatpush1.bf16.msra.mxu0 %v8128_v45  ;;  %5796 = vmatpush1.bf16.msra.mxu1 %v8131_v46  ;;  %v8188_v28 = vld [vmem:[%s11266_s1 + $0x1100] ss:$16 sps:$4 sm:$0xff]   ;;  %v8191_v29 = vld [vmem:[%s11266_s1 + $0x1108] ss:$16 sps:$4 sm:$0xff]   ;;  %v8196_v14 = vld [vmem:[%s11266_s1 + $0x1124] ss:$16 sps:$4 sm:$0xff]  }
 0x1fc   :  { %5264 = vmatprep.subr.bf16.mxu0 %v8136_v35  ;;  %5797 = vmatprep.subr.bf16.mxu1 %v8139_v50  ;;  %v8199_v30 = vld [vmem:[%s11266_s1 + $0x112c] ss:$16 sps:$4 sm:$0xff]   ;;  %v8194_v31 = vld [vmem:[%s11266_s1 + $0x1120] ss:$16 sps:$4 sm:$0xff]   ;;  %v8197_v25 = vld [vmem:[%s11266_s1 + $0x1128] ss:$16 sps:$4 sm:$0xff]  }
 0x1fd   :  { %v8202_v32 = vld [vmem:[%s11266_s1 + $0x1144] ss:$16 sps:$4 sm:$0xff]   ;;  %v8205_v33 = vld [vmem:[%s11266_s1 + $0x114c] ss:$16 sps:$4 sm:$0xff]   ;;  %v8200_v26 = vld [vmem:[%s11266_s1 + $0x1140] ss:$16 sps:$4 sm:$0xff]  }
 0x1fe   :  { %v8203_v36 = vld [vmem:[%s11266_s1 + $0x1148] ss:$16 sps:$4 sm:$0xff]   ;;  %v8208_v37 = vld [vmem:[%s11266_s1 + $0x1164] ss:$16 sps:$4 sm:$0xff]   ;;  %v8211_v21 = vld [vmem:[%s11266_s1 + $0x116c] ss:$16 sps:$4 sm:$0xff]  }
 0x1ff   :  { %5265 = vmatpush1.bf16.msra.mxu0 %v8134_v53  ;;  %5798 = vmatpush1.bf16.msra.mxu1 %v8137_v38  ;;  %v8206_v39 = vld [vmem:[%s11266_s1 + $0x1160] ss:$16 sps:$4 sm:$0xff]   ;;  %v8209_v40 = vld [vmem:[%s11266_s1 + $0x1168] ss:$16 sps:$4 sm:$0xff]   ;;  %v8214_v41 = vld [vmem:[%s11266_s1 + $0x1184] ss:$16 sps:$4 sm:$0xff]  }
 0x200   :  { %5275 = vmatprep.subr.bf16.mxu0 %v8142_v54  ;;  %5808 = vmatprep.subr.bf16.mxu1 %v8145_v55  ;;  %v8217_v34 = vld [vmem:[%s11266_s1 + $0x118c] ss:$16 sps:$4 sm:$0xff]   ;;  %v8212_v43 = vld [vmem:[%s11266_s1 + $0x1180] ss:$16 sps:$4 sm:$0xff]   ;;  %v8215_v45 = vld [vmem:[%s11266_s1 + $0x1188] ss:$16 sps:$4 sm:$0xff]  }
 0x201   :  { %v8220_v46 = vld [vmem:[%s11266_s1 + $0x11a4] ss:$16 sps:$4 sm:$0xff]   ;;  %v8223_v35 = vld [vmem:[%s11266_s1 + $0x11ac] ss:$16 sps:$4 sm:$0xff]   ;;  %v8218_v50 = vld [vmem:[%s11266_s1 + $0x11a0] ss:$16 sps:$4 sm:$0xff]  }
 0x202   :  { %5267 = vmatmul.mubr.bf16.vlgmr.msra.gmra.mrb[0].mxu0 %v933_v47  ;;  %5800 = vmatmul.mubr.bf16.vlgmr.msra.gmra.mrb[0].mxu1 %v933_v47  ;;  %v8221_v53 = vld [vmem:[%s11266_s1 + $0x11a8] ss:$16 sps:$4 sm:$0xff]   ;;  %v8226_v38 = vld [vmem:[%s11266_s1 + $0x11c4] ss:$16 sps:$4 sm:$0xff]   ;;  %v8229_v54 = vld [vmem:[%s11266_s1 + $0x11cc] ss:$16 sps:$4 sm:$0xff]  }
 0x203   :  { %5276 = vmatpush1.bf16.msra.mxu0 %v8140_v57  ;;  %5809 = vmatpush1.bf16.msra.mxu1 %v8143_v58  ;;  %v8224_v55 = vld [vmem:[%s11266_s1 + $0x11c0] ss:$16 sps:$4 sm:$0xff]   ;;  %v8227_v56 = vld [vmem:[%s11266_s1 + $0x11c8] ss:$16 sps:$4 sm:$0xff]   ;;  %v8232_v47 = vld [vmem:[%s11266_s1 + $0x11e4] ss:$16 sps:$4 sm:$0xff]  }
 0x204   :  { %5277 = vmatprep.subr.bf16.mxu0 %v8148_v59  ;;  %5810 = vmatprep.subr.bf16.mxu1 %v8151_v48  ;;  %v8235_v57 = vld [vmem:[%s11266_s1 + $0x11ec] ss:$16 sps:$4 sm:$0xff]   ;;  %v8230_v58 = vld [vmem:[%s11266_s1 + $0x11e0] ss:$16 sps:$4 sm:$0xff]   ;;  %v8233_v59 = vld [vmem:[%s11266_s1 + $0x11e8] ss:$16 sps:$4 sm:$0xff]  }
 0x205   :  { %5307 = vmatprep.mubr.bf16.mxu0 %v10303_v60  ;;  %5840 = vmatprep.mubr.bf16.mxu1 %v10303_v60  ;;  %v8238_v48 = vld [vmem:[%s11266_s1 + $0x1204] ss:$16 sps:$4 sm:$0xff]   ;;  %vm6370_vm1 = vcmask 41984   ;;  %s8613_s27 = smov 122   ;;  %vm6368_vm2 = vcmask 1024   ;;  %s8614_s29 = smov [#allocation2]  }
 0x206   :  { %s6392_s30 = sshll.u32 %s8614_s29, 4  ;;  %s6393_s30 = int_to_ptr.vmem [resolvable:$true] %s6392_s30 }
 0x207   :  { %5278 = vmatpush1.bf16.msra.mxu0 %v8146_v61  ;;  %5811 = vmatpush1.bf16.msra.mxu1 %v8149_v62  ;;  %v8241_v61 = vld [vmem:[%s11266_s1 + $0x120c] ss:$16 sps:$4 sm:$0xff]   ;;  %v10489_v62 = vrot.slane %v10272_v51, %v8785_v49  ;;  %s8587_s7 = scalar_lea.vmem %s6393_s30, 32  ;;  %p8592_p1 = scmp.lt.s32.totalorder %s6393_s30, %s6393_s30 }
 0x208   :  { %5279 = vmatprep.subr.bf16.mxu0 %v8154_v63  ;;  %5812 = vmatprep.subr.bf16.mxu1 %v8157_v0  ;;  %v8236_v63 = vld [vmem:[%s11266_s1 + $0x1200] ss:$16 sps:$4 sm:$0xff]   ;;  %v8239_v0 = vld [vmem:[%s11266_s1 + $0x1208] ss:$16 sps:$4 sm:$0xff]   ;;  %v8247_v51 = vld [vmem:[%s11266_s1 + $0x122c] ss:$16 sps:$4 sm:$0xff]   ;;  %p8588_p0 = scmp.ne.s32.totalorder %s6393_s30, %s8587_s7  ;;  %p8593_p2 = scmp.lt.s32.totalorder %s8587_s7, %s8587_s7 }
 0x20a   :  { %p8594_p3 = por %p8593_p2, %p8592_p1 }
 0x20b   :  { %5280 = vmatpush1.bf16.msra.mxu0 %v8152_v1  ;;  %5813 = vmatpush1.bf16.msra.mxu1 %v8155_v2  ;;  %v8244_v1 = vld [vmem:[%s11266_s1 + $0x1224] ss:$16 sps:$4 sm:$0xff]   ;;  %v983_v2 = vcombine.high %v10303_v60, %v10303_v60 }
 0x20c   :  { %5281 = vmatprep.subr.bf16.mxu0 %v8160_v3  ;;  %5814 = vmatprep.subr.bf16.mxu1 %v8163_v4  ;;  %v8242_v3 = vld [vmem:[%s11266_s1 + $0x1220] ss:$16 sps:$4 sm:$0xff]   ;;  %v8245_v4 = vld [vmem:[%s11266_s1 + $0x1228] ss:$16 sps:$4 sm:$0xff]   ;;  %v8250_v60 = vld [vmem:[%s11266_s1 + $0x1244] ss:$16 sps:$4 sm:$0xff]   ;;  %p8595_p4 = pnand %p8594_p3, %p8588_p0 }
 0x20f   :  { %5282 = vmatpush1.bf16.msra.mxu0 %v8158_v5  ;;  %5815 = vmatpush1.bf16.msra.mxu1 %v8161_v6  ;;  %v8253_v5 = vld [vmem:[%s11266_s1 + $0x124c] ss:$16 sps:$4 sm:$0xff]   ;;  %v8248_v6 = vld [vmem:[%s11266_s1 + $0x1240] ss:$16 sps:$4 sm:$0xff]  }
 0x210   :  { %5283 = vmatprep.subr.bf16.mxu0 %v8166_v7  ;;  %5816 = vmatprep.subr.bf16.mxu1 %v8169_v8  ;;  %v8251_v7 = vld [vmem:[%s11266_s1 + $0x1248] ss:$16 sps:$4 sm:$0xff]   ;;  %v8256_v8 = vld [vmem:[%s11266_s1 + $0x1264] ss:$16 sps:$4 sm:$0xff]  }
 0x213   :  { %5284 = vmatpush1.bf16.msra.mxu0 %v8164_v9  ;;  %5817 = vmatpush1.bf16.msra.mxu1 %v8167_v10  ;;  %v8259_v9 = vld [vmem:[%s11266_s1 + $0x126c] ss:$16 sps:$4 sm:$0xff]   ;;  %v8254_v10 = vld [vmem:[%s11266_s1 + $0x1260] ss:$16 sps:$4 sm:$0xff]  }
 0x214   :  { %5285 = vmatprep.subr.bf16.mxu0 %v8172_v11  ;;  %5818 = vmatprep.subr.bf16.mxu1 %v8175_v12  ;;  %v8257_v11 = vld [vmem:[%s11266_s1 + $0x1268] ss:$16 sps:$4 sm:$0xff]   ;;  %v8262_v12 = vld [vmem:[%s11266_s1 + $0x1284] ss:$16 sps:$4 sm:$0xff]  }
 0x217   :  { %5286 = vmatpush1.bf16.msra.mxu0 %v8170_v52  ;;  %5819 = vmatpush1.bf16.msra.mxu1 %v8173_v15  ;;  %v8265_v52 = vld [vmem:[%s11266_s1 + $0x128c] ss:$16 sps:$4 sm:$0xff]   ;;  %v8260_v15 = vld [vmem:[%s11266_s1 + $0x1280] ss:$16 sps:$4 sm:$0xff]  }
 0x218   :  { %5287 = vmatprep.subr.bf16.mxu0 %v8178_v16  ;;  %5820 = vmatprep.subr.bf16.mxu1 %v8181_v17  ;;  %v8263_v16 = vld [vmem:[%s11266_s1 + $0x1288] ss:$16 sps:$4 sm:$0xff]   ;;  %v8268_v17 = vld [vmem:[%s11266_s1 + $0x12a4] ss:$16 sps:$4 sm:$0xff]  }
 0x21b   :  { %5288 = vmatpush1.bf16.msra.mxu0 %v8176_v18  ;;  %5821 = vmatpush1.bf16.msra.mxu1 %v8179_v19  ;;  %v8271_v18 = vld [vmem:[%s11266_s1 + $0x12ac] ss:$16 sps:$4 sm:$0xff]   ;;  %v8266_v19 = vld [vmem:[%s11266_s1 + $0x12a0] ss:$16 sps:$4 sm:$0xff]  }
 0x21c   :  { %5289 = vmatprep.subr.bf16.mxu0 %v8184_v20  ;;  %5822 = vmatprep.subr.bf16.mxu1 %v8187_v22  ;;  %v8269_v20 = vld [vmem:[%s11266_s1 + $0x12a8] ss:$16 sps:$4 sm:$0xff]   ;;  %v8274_v22 = vld [vmem:[%s11266_s1 + $0x12c4] ss:$16 sps:$4 sm:$0xff]  }
 0x21f   :  { %5290 = vmatpush1.bf16.msra.mxu0 %v8182_v23  ;;  %5823 = vmatpush1.bf16.msra.mxu1 %v8185_v24  ;;  %v8277_v23 = vld [vmem:[%s11266_s1 + $0x12cc] ss:$16 sps:$4 sm:$0xff]   ;;  %v8272_v24 = vld [vmem:[%s11266_s1 + $0x12c0] ss:$16 sps:$4 sm:$0xff]  }
 0x220   :  { %5291 = vmatprep.subr.bf16.mxu0 %v8190_v13  ;;  %5824 = vmatprep.subr.bf16.mxu1 %v8193_v27  ;;  %v8275_v13 = vld [vmem:[%s11266_s1 + $0x12c8] ss:$16 sps:$4 sm:$0xff]   ;;  %v8280_v27 = vld [vmem:[%s11266_s1 + $0x12e4] ss:$16 sps:$4 sm:$0xff]  }
 0x223   :  { %5292 = vmatpush1.bf16.msra.mxu0 %v8188_v28  ;;  %5825 = vmatpush1.bf16.msra.mxu1 %v8191_v29  ;;  %v8283_v28 = vld [vmem:[%s11266_s1 + $0x12ec] ss:$16 sps:$4 sm:$0xff]   ;;  %v8278_v29 = vld [vmem:[%s11266_s1 + $0x12e0] ss:$16 sps:$4 sm:$0xff]  }
 0x224   :  { %5293 = vmatprep.subr.bf16.mxu0 %v8196_v14  ;;  %5826 = vmatprep.subr.bf16.mxu1 %v8199_v30  ;;  %v8281_v14 = vld [vmem:[%s11266_s1 + $0x12e8] ss:$16 sps:$4 sm:$0xff]   ;;  %v8286_v30 = vld [vmem:[%s11266_s1 + $0x1304] ss:$16 sps:$4 sm:$0xff]  }
 0x227   :  { %5294 = vmatpush1.bf16.msra.mxu0 %v8194_v31  ;;  %5827 = vmatpush1.bf16.msra.mxu1 %v8197_v25  ;;  %v8289_v31 = vld [vmem:[%s11266_s1 + $0x130c] ss:$16 sps:$4 sm:$0xff]   ;;  %v8284_v25 = vld [vmem:[%s11266_s1 + $0x1300] ss:$16 sps:$4 sm:$0xff]  }
 0x228   :  { %5295 = vmatprep.subr.bf16.mxu0 %v8202_v32  ;;  %5828 = vmatprep.subr.bf16.mxu1 %v8205_v33  ;;  %v8287_v32 = vld [vmem:[%s11266_s1 + $0x1308] ss:$16 sps:$4 sm:$0xff]   ;;  %v8292_v33 = vld [vmem:[%s11266_s1 + $0x1324] ss:$16 sps:$4 sm:$0xff]  }
 0x22b   :  { %5296 = vmatpush1.bf16.msra.mxu0 %v8200_v26  ;;  %5829 = vmatpush1.bf16.msra.mxu1 %v8203_v36  ;;  %v8295_v26 = vld [vmem:[%s11266_s1 + $0x132c] ss:$16 sps:$4 sm:$0xff]   ;;  %v8290_v36 = vld [vmem:[%s11266_s1 + $0x1320] ss:$16 sps:$4 sm:$0xff]  }
 0x22c   :  { %5297 = vmatprep.subr.bf16.mxu0 %v8208_v37  ;;  %5830 = vmatprep.subr.bf16.mxu1 %v8211_v21  ;;  %v8293_v37 = vld [vmem:[%s11266_s1 + $0x1328] ss:$16 sps:$4 sm:$0xff]   ;;  %v8298_v21 = vld [vmem:[%s11266_s1 + $0x1344] ss:$16 sps:$4 sm:$0xff]  }
 0x22f   :  { %5298 = vmatpush1.bf16.msra.mxu0 %v8206_v39  ;;  %5831 = vmatpush1.bf16.msra.mxu1 %v8209_v40  ;;  %v8301_v39 = vld [vmem:[%s11266_s1 + $0x134c] ss:$16 sps:$4 sm:$0xff]   ;;  %v8296_v40 = vld [vmem:[%s11266_s1 + $0x1340] ss:$16 sps:$4 sm:$0xff]  }
 0x230   :  { %5299 = vmatprep.subr.bf16.mxu0 %v8214_v41  ;;  %5832 = vmatprep.subr.bf16.mxu1 %v8217_v34  ;;  %v8299_v41 = vld [vmem:[%s11266_s1 + $0x1348] ss:$16 sps:$4 sm:$0xff]   ;;  %v8304_v34 = vld [vmem:[%s11266_s1 + $0x1364] ss:$16 sps:$4 sm:$0xff]  }
 0x233   :  { %5300 = vmatpush1.bf16.msra.mxu0 %v8212_v43  ;;  %5833 = vmatpush1.bf16.msra.mxu1 %v8215_v45  ;;  %v8307_v43 = vld [vmem:[%s11266_s1 + $0x136c] ss:$16 sps:$4 sm:$0xff]   ;;  %v8302_v45 = vld [vmem:[%s11266_s1 + $0x1360] ss:$16 sps:$4 sm:$0xff]  }
 0x234   :  { %5301 = vmatprep.subr.bf16.mxu0 %v8220_v46  ;;  %5834 = vmatprep.subr.bf16.mxu1 %v8223_v35  ;;  %v8305_v46 = vld [vmem:[%s11266_s1 + $0x1368] ss:$16 sps:$4 sm:$0xff]   ;;  %v8310_v35 = vld [vmem:[%s11266_s1 + $0x1384] ss:$16 sps:$4 sm:$0xff]  }
 0x237   :  { %5302 = vmatpush1.bf16.msra.mxu0 %v8218_v50  ;;  %5835 = vmatpush1.bf16.msra.mxu1 %v8221_v53  ;;  %v8313_v50 = vld [vmem:[%s11266_s1 + $0x138c] ss:$16 sps:$4 sm:$0xff]   ;;  %v8308_v53 = vld [vmem:[%s11266_s1 + $0x1380] ss:$16 sps:$4 sm:$0xff]  }
 0x238   :  { %5303 = vmatprep.subr.bf16.mxu0 %v8226_v38  ;;  %5836 = vmatprep.subr.bf16.mxu1 %v8229_v54  ;;  %v8311_v38 = vld [vmem:[%s11266_s1 + $0x1388] ss:$16 sps:$4 sm:$0xff]   ;;  %v8316_v54 = vld [vmem:[%s11266_s1 + $0x13a4] ss:$16 sps:$4 sm:$0xff]  }
 0x23b   :  { %5304 = vmatpush1.bf16.msra.mxu0 %v8224_v55  ;;  %5837 = vmatpush1.bf16.msra.mxu1 %v8227_v56  ;;  %v8319_v55 = vld [vmem:[%s11266_s1 + $0x13ac] ss:$16 sps:$4 sm:$0xff]   ;;  %v8314_v56 = vld [vmem:[%s11266_s1 + $0x13a0] ss:$16 sps:$4 sm:$0xff]  }
 0x23c   :  { %5305 = vmatprep.subr.bf16.mxu0 %v8232_v47  ;;  %5838 = vmatprep.subr.bf16.mxu1 %v8235_v57  ;;  %v8317_v47 = vld [vmem:[%s11266_s1 + $0x13a8] ss:$16 sps:$4 sm:$0xff]   ;;  %v8322_v57 = vld [vmem:[%s11266_s1 + $0x13c4] ss:$16 sps:$4 sm:$0xff]  }
 0x23f   :  { %5306 = vmatpush1.bf16.msra.mxu0 %v8230_v58  ;;  %5839 = vmatpush1.bf16.msra.mxu1 %v8233_v59  ;;  %v8325_v58 = vld [vmem:[%s11266_s1 + $0x13cc] ss:$16 sps:$4 sm:$0xff]   ;;  %v936_v59 = vcombine.high %v10256_v44, %v10256_v44 }
 0x240   :  { %5316 = vmatprep.subr.bf16.mxu0 %v8238_v48  ;;  %5849 = vmatprep.subr.bf16.mxu1 %v8241_v61  ;;  %v8320_v48 = vld [vmem:[%s11266_s1 + $0x13c0] ss:$16 sps:$4 sm:$0xff]   ;;  %v8323_v61 = vld [vmem:[%s11266_s1 + $0x13c8] ss:$16 sps:$4 sm:$0xff]   ;;  %v8331_v44 = vld [vmem:[%s11266_s1 + $0x13ec] ss:$16 sps:$4 sm:$0xff]  }
 0x242   :  { %5308 = vmatmul.mubr.bf16.vlgmr.msra.gmra.mrb[0].mxu0 %v10489_v62  ;;  %5841 = vmatmul.mubr.bf16.vlgmr.msra.gmra.mrb[0].mxu1 %v10489_v62 }
 0x243   :  { %5317 = vmatpush1.bf16.msra.mxu0 %v8236_v63  ;;  %5850 = vmatpush1.bf16.msra.mxu1 %v8239_v0  ;;  %v8328_v63 = vld [vmem:[%s11266_s1 + $0x13e4] ss:$16 sps:$4 sm:$0xff]   ;;  %v10678_v0 = vrot.slane %v936_v59, %v8785_v49  ;;  %v8407_v59 = vld [vmem:[%s11266_s1 + $0x1588] ss:$16 sps:$4 sm:$0xff]  }
 0x244   :  { %5318 = vmatprep.subr.bf16.mxu0 %v8244_v1  ;;  %5851 = vmatprep.subr.bf16.mxu1 %v8247_v51  ;;  %v8326_v1 = vld [vmem:[%s11266_s1 + $0x13e0] ss:$16 sps:$4 sm:$0xff]   ;;  %v8329_v51 = vld [vmem:[%s11266_s1 + $0x13e8] ss:$16 sps:$4 sm:$0xff]  }
 0x245   :  { %5348 = vmatprep.mubr.bf16.mxu0 %v983_v2  ;;  %5881 = vmatprep.mubr.bf16.mxu1 %v983_v2  ;;  %v8334_v2 = vld [vmem:[%s11266_s1 + $0x1404] ss:$16 sps:$4 sm:$0xff]  }
 0x247   :  { %5319 = vmatpush1.bf16.msra.mxu0 %v8242_v3  ;;  %5852 = vmatpush1.bf16.msra.mxu1 %v8245_v4  ;;  %v8337_v3 = vld [vmem:[%s11266_s1 + $0x140c] ss:$16 sps:$4 sm:$0xff]   ;;  %v952_v4 = vcombine.high %v10678_v0, %v10678_v0 }
 0x248   :  { %5320 = vmatprep.subr.bf16.mxu0 %v8250_v60  ;;  %5853 = vmatprep.subr.bf16.mxu1 %v8253_v5  ;;  %v981_v60 = vcombine.high %v10489_v62, %v10489_v62  ;;  %v8332_v5 = vld [vmem:[%s11266_s1 + $0x1400] ss:$16 sps:$4 sm:$0xff]   ;;  %v8343_v62 = vld [vmem:[%s11266_s1 + $0x142c] ss:$16 sps:$4 sm:$0xff]  }
 0x24b   :  { %5321 = vmatpush1.bf16.msra.mxu0 %v8248_v6  ;;  %5854 = vmatpush1.bf16.msra.mxu1 %v8251_v7  ;;  %v8335_v6 = vld [vmem:[%s11266_s1 + $0x1408] ss:$16 sps:$4 sm:$0xff]   ;;  %v8340_v7 = vld [vmem:[%s11266_s1 + $0x1424] ss:$16 sps:$4 sm:$0xff]  }
 0x24c   :  { %5322 = vmatprep.subr.bf16.mxu0 %v8256_v8  ;;  %5855 = vmatprep.subr.bf16.mxu1 %v8259_v9  ;;  %v10709_v8 = vrot.slane %v952_v4, %v8785_v49  ;;  %v8338_v9 = vld [vmem:[%s11266_s1 + $0x1420] ss:$16 sps:$4 sm:$0xff]   ;;  %v8424_v4 = vld [vmem:[%s11266_s1 + $0x15e4] ss:$16 sps:$4 sm:$0xff]  }
 0x24f   :  { %5323 = vmatpush1.bf16.msra.mxu0 %v8254_v10  ;;  %5856 = vmatpush1.bf16.msra.mxu1 %v8257_v11  ;;  %v8341_v10 = vld [vmem:[%s11266_s1 + $0x1428] ss:$16 sps:$4 sm:$0xff]   ;;  %v8346_v11 = vld [vmem:[%s11266_s1 + $0x1444] ss:$16 sps:$4 sm:$0xff]  }
 0x250   :  { %5324 = vmatprep.subr.bf16.mxu0 %v8262_v12  ;;  %5857 = vmatprep.subr.bf16.mxu1 %v8265_v52  ;;  %v8349_v12 = vld [vmem:[%s11266_s1 + $0x144c] ss:$16 sps:$4 sm:$0xff]   ;;  %v8344_v52 = vld [vmem:[%s11266_s1 + $0x1440] ss:$16 sps:$4 sm:$0xff]  }
 0x253   :  { %5325 = vmatpush1.bf16.msra.mxu0 %v8260_v15  ;;  %5858 = vmatpush1.bf16.msra.mxu1 %v8263_v16  ;;  %v8347_v15 = vld [vmem:[%s11266_s1 + $0x1448] ss:$16 sps:$4 sm:$0xff]   ;;  %v8352_v16 = vld [vmem:[%s11266_s1 + $0x1464] ss:$16 sps:$4 sm:$0xff]  }
 0x254   :  { %5326 = vmatprep.subr.bf16.mxu0 %v8268_v17  ;;  %5859 = vmatprep.subr.bf16.mxu1 %v8271_v18  ;;  %v8355_v17 = vld [vmem:[%s11266_s1 + $0x146c] ss:$16 sps:$4 sm:$0xff]   ;;  %v8350_v18 = vld [vmem:[%s11266_s1 + $0x1460] ss:$16 sps:$4 sm:$0xff]  }
 0x257   :  { %5327 = vmatpush1.bf16.msra.mxu0 %v8266_v19  ;;  %5860 = vmatpush1.bf16.msra.mxu1 %v8269_v20  ;;  %v8353_v19 = vld [vmem:[%s11266_s1 + $0x1468] ss:$16 sps:$4 sm:$0xff]   ;;  %v8358_v20 = vld [vmem:[%s11266_s1 + $0x1484] ss:$16 sps:$4 sm:$0xff]  }
 0x258   :  { %5328 = vmatprep.subr.bf16.mxu0 %v8274_v22  ;;  %5861 = vmatprep.subr.bf16.mxu1 %v8277_v23  ;;  %v8361_v22 = vld [vmem:[%s11266_s1 + $0x148c] ss:$16 sps:$4 sm:$0xff]   ;;  %v8356_v23 = vld [vmem:[%s11266_s1 + $0x1480] ss:$16 sps:$4 sm:$0xff]  }
 0x25b   :  { %5329 = vmatpush1.bf16.msra.mxu0 %v8272_v24  ;;  %5862 = vmatpush1.bf16.msra.mxu1 %v8275_v13  ;;  %v8359_v24 = vld [vmem:[%s11266_s1 + $0x1488] ss:$16 sps:$4 sm:$0xff]   ;;  %v8364_v13 = vld [vmem:[%s11266_s1 + $0x14a4] ss:$16 sps:$4 sm:$0xff]  }
 0x25c   :  { %5330 = vmatprep.subr.bf16.mxu0 %v8280_v27  ;;  %5863 = vmatprep.subr.bf16.mxu1 %v8283_v28  ;;  %v8367_v27 = vld [vmem:[%s11266_s1 + $0x14ac] ss:$16 sps:$4 sm:$0xff]   ;;  %v8362_v28 = vld [vmem:[%s11266_s1 + $0x14a0] ss:$16 sps:$4 sm:$0xff]  }
 0x25f   :  { %5331 = vmatpush1.bf16.msra.mxu0 %v8278_v29  ;;  %5864 = vmatpush1.bf16.msra.mxu1 %v8281_v14  ;;  %v8365_v29 = vld [vmem:[%s11266_s1 + $0x14a8] ss:$16 sps:$4 sm:$0xff]   ;;  %v8370_v14 = vld [vmem:[%s11266_s1 + $0x14c4] ss:$16 sps:$4 sm:$0xff]  }
 0x260   :  { %5332 = vmatprep.subr.bf16.mxu0 %v8286_v30  ;;  %5865 = vmatprep.subr.bf16.mxu1 %v8289_v31  ;;  %v8373_v30 = vld [vmem:[%s11266_s1 + $0x14cc] ss:$16 sps:$4 sm:$0xff]   ;;  %v8368_v31 = vld [vmem:[%s11266_s1 + $0x14c0] ss:$16 sps:$4 sm:$0xff]  }
 0x263   :  { %5333 = vmatpush1.bf16.msra.mxu0 %v8284_v25  ;;  %5866 = vmatpush1.bf16.msra.mxu1 %v8287_v32  ;;  %v8371_v25 = vld [vmem:[%s11266_s1 + $0x14c8] ss:$16 sps:$4 sm:$0xff]   ;;  %v8376_v32 = vld [vmem:[%s11266_s1 + $0x14e4] ss:$16 sps:$4 sm:$0xff]  }
 0x264   :  { %5334 = vmatprep.subr.bf16.mxu0 %v8292_v33  ;;  %5867 = vmatprep.subr.bf16.mxu1 %v8295_v26  ;;  %v8379_v33 = vld [vmem:[%s11266_s1 + $0x14ec] ss:$16 sps:$4 sm:$0xff]   ;;  %v8374_v26 = vld [vmem:[%s11266_s1 + $0x14e0] ss:$16 sps:$4 sm:$0xff]  }
 0x267   :  { %5335 = vmatpush1.bf16.msra.mxu0 %v8290_v36  ;;  %5868 = vmatpush1.bf16.msra.mxu1 %v8293_v37  ;;  %v8377_v36 = vld [vmem:[%s11266_s1 + $0x14e8] ss:$16 sps:$4 sm:$0xff]   ;;  %v8382_v37 = vld [vmem:[%s11266_s1 + $0x1504] ss:$16 sps:$4 sm:$0xff]  }
 0x268   :  { %5336 = vmatprep.subr.bf16.mxu0 %v8298_v21  ;;  %5869 = vmatprep.subr.bf16.mxu1 %v8301_v39  ;;  %v8385_v21 = vld [vmem:[%s11266_s1 + $0x150c] ss:$16 sps:$4 sm:$0xff]   ;;  %v8380_v39 = vld [vmem:[%s11266_s1 + $0x1500] ss:$16 sps:$4 sm:$0xff]  }
 0x26b   :  { %5337 = vmatpush1.bf16.msra.mxu0 %v8296_v40  ;;  %5870 = vmatpush1.bf16.msra.mxu1 %v8299_v41  ;;  %v8383_v40 = vld [vmem:[%s11266_s1 + $0x1508] ss:$16 sps:$4 sm:$0xff]   ;;  %v8388_v41 = vld [vmem:[%s11266_s1 + $0x1524] ss:$16 sps:$4 sm:$0xff]  }
 0x26c   :  { %5338 = vmatprep.subr.bf16.mxu0 %v8304_v34  ;;  %5871 = vmatprep.subr.bf16.mxu1 %v8307_v43  ;;  %v8391_v34 = vld [vmem:[%s11266_s1 + $0x152c] ss:$16 sps:$4 sm:$0xff]   ;;  %v8386_v43 = vld [vmem:[%s11266_s1 + $0x1520] ss:$16 sps:$4 sm:$0xff]  }
 0x26f   :  { %5339 = vmatpush1.bf16.msra.mxu0 %v8302_v45  ;;  %5872 = vmatpush1.bf16.msra.mxu1 %v8305_v46  ;;  %v8389_v45 = vld [vmem:[%s11266_s1 + $0x1528] ss:$16 sps:$4 sm:$0xff]   ;;  %v8394_v46 = vld [vmem:[%s11266_s1 + $0x1544] ss:$16 sps:$4 sm:$0xff]  }
 0x270   :  { %5340 = vmatprep.subr.bf16.mxu0 %v8310_v35  ;;  %5873 = vmatprep.subr.bf16.mxu1 %v8313_v50  ;;  %v8397_v35 = vld [vmem:[%s11266_s1 + $0x154c] ss:$16 sps:$4 sm:$0xff]   ;;  %v8392_v50 = vld [vmem:[%s11266_s1 + $0x1540] ss:$16 sps:$4 sm:$0xff]  }
 0x273   :  { %5341 = vmatpush1.bf16.msra.mxu0 %v8308_v53  ;;  %5874 = vmatpush1.bf16.msra.mxu1 %v8311_v38  ;;  %v8395_v53 = vld [vmem:[%s11266_s1 + $0x1548] ss:$16 sps:$4 sm:$0xff]   ;;  %v8400_v38 = vld [vmem:[%s11266_s1 + $0x1564] ss:$16 sps:$4 sm:$0xff]  }
 0x274   :  { %5342 = vmatprep.subr.bf16.mxu0 %v8316_v54  ;;  %5875 = vmatprep.subr.bf16.mxu1 %v8319_v55  ;;  %v8403_v54 = vld [vmem:[%s11266_s1 + $0x156c] ss:$16 sps:$4 sm:$0xff]   ;;  %v8398_v55 = vld [vmem:[%s11266_s1 + $0x1560] ss:$16 sps:$4 sm:$0xff]  }
 0x277   :  { %5343 = vmatpush1.bf16.msra.mxu0 %v8314_v56  ;;  %5876 = vmatpush1.bf16.msra.mxu1 %v8317_v47  ;;  %v8401_v56 = vld [vmem:[%s11266_s1 + $0x1568] ss:$16 sps:$4 sm:$0xff]   ;;  %v8406_v47 = vld [vmem:[%s11266_s1 + $0x1584] ss:$16 sps:$4 sm:$0xff]  }
 0x278   :  { %5344 = vmatprep.subr.bf16.mxu0 %v8322_v57  ;;  %5877 = vmatprep.subr.bf16.mxu1 %v8325_v58  ;;  %v8409_v57 = vld [vmem:[%s11266_s1 + $0x158c] ss:$16 sps:$4 sm:$0xff]   ;;  %v8404_v58 = vld [vmem:[%s11266_s1 + $0x1580] ss:$16 sps:$4 sm:$0xff]  }
 0x27b   :  { %5345 = vmatpush1.bf16.msra.mxu0 %v8320_v48  ;;  %5878 = vmatpush1.bf16.msra.mxu1 %v8323_v61  ;;  %v8412_v48 = vld [vmem:[%s11266_s1 + $0x15a4] ss:$16 sps:$4 sm:$0xff]   ;;  %v8415_v61 = vld [vmem:[%s11266_s1 + $0x15ac] ss:$16 sps:$4 sm:$0xff]  }
 0x27c   :  { %5346 = vmatprep.subr.bf16.mxu0 %v8328_v63  ;;  %5879 = vmatprep.subr.bf16.mxu1 %v8331_v44  ;;  %v8410_v63 = vld [vmem:[%s11266_s1 + $0x15a0] ss:$16 sps:$4 sm:$0xff]   ;;  %v8413_v44 = vld [vmem:[%s11266_s1 + $0x15a8] ss:$16 sps:$4 sm:$0xff]  }
 0x27f   :  { %5347 = vmatpush1.bf16.msra.mxu0 %v8326_v1  ;;  %5880 = vmatpush1.bf16.msra.mxu1 %v8329_v51  ;;  %v8418_v1 = vld [vmem:[%s11266_s1 + $0x15c4] ss:$16 sps:$4 sm:$0xff]   ;;  %v8421_v51 = vld [vmem:[%s11266_s1 + $0x15cc] ss:$16 sps:$4 sm:$0xff]  }
 0x280   :  { %5357 = vmatprep.subr.bf16.mxu0 %v8334_v2  ;;  %5890 = vmatprep.subr.bf16.mxu1 %v8337_v3  ;;  %v8416_v2 = vld [vmem:[%s11266_s1 + $0x15c0] ss:$16 sps:$4 sm:$0xff]   ;;  %v8419_v3 = vld [vmem:[%s11266_s1 + $0x15c8] ss:$16 sps:$4 sm:$0xff]  }
 0x282   :  { %5349 = vmatmul.mubr.bf16.vlgmr.msra.gmra.mrb[0].mxu0 %v981_v60  ;;  %5882 = vmatmul.mubr.bf16.vlgmr.msra.gmra.mrb[0].mxu1 %v981_v60  ;;  %v8427_v60 = vld [vmem:[%s11266_s1 + $0x15ec] ss:$16 sps:$4 sm:$0xff]  }
 0x283   :  { %5358 = vmatpush1.bf16.msra.mxu0 %v8332_v5  ;;  %5891 = vmatpush1.bf16.msra.mxu1 %v8335_v6  ;;  %v8422_v5 = vld [vmem:[%s11266_s1 + $0x15e0] ss:$16 sps:$4 sm:$0xff]   ;;  %v8425_v6 = vld [vmem:[%s11266_s1 + $0x15e8] ss:$16 sps:$4 sm:$0xff]  }
 0x284   :  { %5359 = vmatprep.subr.bf16.mxu0 %v8340_v7  ;;  %5892 = vmatprep.subr.bf16.mxu1 %v8343_v62  ;;  %v8431_v7 = vld [vmem:[%s11266_s1 + $0x1604] ss:$16 sps:$4 sm:$0xff]   ;;  %v8434_v62 = vld [vmem:[%s11266_s1 + $0x160c] ss:$16 sps:$4 sm:$0xff]  }
 0x285   :  { %5389 = vmatprep.mubr.bf16.mxu0 %v10709_v8  ;;  %5922 = vmatprep.mubr.bf16.mxu1 %v10709_v8 }
 0x287   :  { %5360 = vmatpush1.bf16.msra.mxu0 %v8338_v9  ;;  %5893 = vmatpush1.bf16.msra.mxu1 %v8341_v10  ;;  %v10895_v9 = vrot.slane %v10678_v0, %v8785_v49  ;;  %v8429_v10 = vld [vmem:[%s11266_s1 + $0x1600] ss:$16 sps:$4 sm:$0xff]   ;;  %v8440_v0 = vld [vmem:[%s11266_s1 + $0x162c] ss:$16 sps:$4 sm:$0xff]  }
 0x288   :  { %5361 = vmatprep.subr.bf16.mxu0 %v8346_v11  ;;  %5894 = vmatprep.subr.bf16.mxu1 %v8349_v12  ;;  %v8432_v11 = vld [vmem:[%s11266_s1 + $0x1608] ss:$16 sps:$4 sm:$0xff]   ;;  %v8437_v12 = vld [vmem:[%s11266_s1 + $0x1624] ss:$16 sps:$4 sm:$0xff]  }
 0x28b   :  { %5362 = vmatpush1.bf16.msra.mxu0 %v8344_v52  ;;  %5895 = vmatpush1.bf16.msra.mxu1 %v8347_v15  ;;  %v984_v52 = vcombine.high %v10709_v8, %v10709_v8  ;;  %v8435_v15 = vld [vmem:[%s11266_s1 + $0x1620] ss:$16 sps:$4 sm:$0xff]   ;;  %v8443_v8 = vld [vmem:[%s11266_s1 + $0x1644] ss:$16 sps:$4 sm:$0xff]  }
 0x28c   :  { %5363 = vmatprep.subr.bf16.mxu0 %v8352_v16  ;;  %5896 = vmatprep.subr.bf16.mxu1 %v8355_v17  ;;  %v8438_v16 = vld [vmem:[%s11266_s1 + $0x1628] ss:$16 sps:$4 sm:$0xff]   ;;  %v8446_v17 = vld [vmem:[%s11266_s1 + $0x164c] ss:$16 sps:$4 sm:$0xff]  }
 0x28f   :  { %5364 = vmatpush1.bf16.msra.mxu0 %v8350_v18  ;;  %5897 = vmatpush1.bf16.msra.mxu1 %v8353_v19  ;;  %v8441_v18 = vld [vmem:[%s11266_s1 + $0x1640] ss:$16 sps:$4 sm:$0xff]   ;;  %v8444_v19 = vld [vmem:[%s11266_s1 + $0x1648] ss:$16 sps:$4 sm:$0xff]  }
 0x290   :  { %5365 = vmatprep.subr.bf16.mxu0 %v8358_v20  ;;  %5898 = vmatprep.subr.bf16.mxu1 %v8361_v22  ;;  %v8449_v20 = vld [vmem:[%s11266_s1 + $0x1664] ss:$16 sps:$4 sm:$0xff]   ;;  %v8452_v22 = vld [vmem:[%s11266_s1 + $0x166c] ss:$16 sps:$4 sm:$0xff]  }
 0x293   :  { %5366 = vmatpush1.bf16.msra.mxu0 %v8356_v23  ;;  %5899 = vmatpush1.bf16.msra.mxu1 %v8359_v24  ;;  %v8447_v23 = vld [vmem:[%s11266_s1 + $0x1660] ss:$16 sps:$4 sm:$0xff]   ;;  %v8450_v24 = vld [vmem:[%s11266_s1 + $0x1668] ss:$16 sps:$4 sm:$0xff]  }
 0x294   :  { %5367 = vmatprep.subr.bf16.mxu0 %v8364_v13  ;;  %5900 = vmatprep.subr.bf16.mxu1 %v8367_v27  ;;  %v8455_v13 = vld [vmem:[%s11266_s1 + $0x1684] ss:$16 sps:$4 sm:$0xff]   ;;  %v8458_v27 = vld [vmem:[%s11266_s1 + $0x168c] ss:$16 sps:$4 sm:$0xff]  }
 0x297   :  { %5368 = vmatpush1.bf16.msra.mxu0 %v8362_v28  ;;  %5901 = vmatpush1.bf16.msra.mxu1 %v8365_v29  ;;  %v8453_v28 = vld [vmem:[%s11266_s1 + $0x1680] ss:$16 sps:$4 sm:$0xff]   ;;  %v8456_v29 = vld [vmem:[%s11266_s1 + $0x1688] ss:$16 sps:$4 sm:$0xff]  }
 0x298   :  { %5369 = vmatprep.subr.bf16.mxu0 %v8370_v14  ;;  %5902 = vmatprep.subr.bf16.mxu1 %v8373_v30  ;;  %v8461_v14 = vld [vmem:[%s11266_s1 + $0x16a4] ss:$16 sps:$4 sm:$0xff]   ;;  %v8464_v30 = vld [vmem:[%s11266_s1 + $0x16ac] ss:$16 sps:$4 sm:$0xff]  }
 0x29b   :  { %5370 = vmatpush1.bf16.msra.mxu0 %v8368_v31  ;;  %5903 = vmatpush1.bf16.msra.mxu1 %v8371_v25  ;;  %v8459_v31 = vld [vmem:[%s11266_s1 + $0x16a0] ss:$16 sps:$4 sm:$0xff]   ;;  %v8462_v25 = vld [vmem:[%s11266_s1 + $0x16a8] ss:$16 sps:$4 sm:$0xff]  }
 0x29c   :  { %5371 = vmatprep.subr.bf16.mxu0 %v8376_v32  ;;  %5904 = vmatprep.subr.bf16.mxu1 %v8379_v33  ;;  %v8467_v32 = vld [vmem:[%s11266_s1 + $0x16c4] ss:$16 sps:$4 sm:$0xff]   ;;  %v8470_v33 = vld [vmem:[%s11266_s1 + $0x16cc] ss:$16 sps:$4 sm:$0xff]  }
 0x29f   :  { %5372 = vmatpush1.bf16.msra.mxu0 %v8374_v26  ;;  %5905 = vmatpush1.bf16.msra.mxu1 %v8377_v36  ;;  %v8465_v26 = vld [vmem:[%s11266_s1 + $0x16c0] ss:$16 sps:$4 sm:$0xff]   ;;  %v8468_v36 = vld [vmem:[%s11266_s1 + $0x16c8] ss:$16 sps:$4 sm:$0xff]  }
 0x2a0   :  { %5373 = vmatprep.subr.bf16.mxu0 %v8382_v37  ;;  %5906 = vmatprep.subr.bf16.mxu1 %v8385_v21  ;;  %v8473_v37 = vld [vmem:[%s11266_s1 + $0x16e4] ss:$16 sps:$4 sm:$0xff]   ;;  %v8476_v21 = vld [vmem:[%s11266_s1 + $0x16ec] ss:$16 sps:$4 sm:$0xff]  }
 0x2a3   :  { %5374 = vmatpush1.bf16.msra.mxu0 %v8380_v39  ;;  %5907 = vmatpush1.bf16.msra.mxu1 %v8383_v40  ;;  %v8471_v39 = vld [vmem:[%s11266_s1 + $0x16e0] ss:$16 sps:$4 sm:$0xff]   ;;  %v8474_v40 = vld [vmem:[%s11266_s1 + $0x16e8] ss:$16 sps:$4 sm:$0xff]  }
 0x2a4   :  { %5375 = vmatprep.subr.bf16.mxu0 %v8388_v41  ;;  %5908 = vmatprep.subr.bf16.mxu1 %v8391_v34  ;;  %v8479_v41 = vld [vmem:[%s11266_s1 + $0x1704] ss:$16 sps:$4 sm:$0xff]   ;;  %v8482_v34 = vld [vmem:[%s11266_s1 + $0x170c] ss:$16 sps:$4 sm:$0xff]  }
 0x2a7   :  { %5376 = vmatpush1.bf16.msra.mxu0 %v8386_v43  ;;  %5909 = vmatpush1.bf16.msra.mxu1 %v8389_v45  ;;  %v8477_v43 = vld [vmem:[%s11266_s1 + $0x1700] ss:$16 sps:$4 sm:$0xff]   ;;  %v8480_v45 = vld [vmem:[%s11266_s1 + $0x1708] ss:$16 sps:$4 sm:$0xff]  }
 0x2a8   :  { %5377 = vmatprep.subr.bf16.mxu0 %v8394_v46  ;;  %5910 = vmatprep.subr.bf16.mxu1 %v8397_v35  ;;  %v8485_v46 = vld [vmem:[%s11266_s1 + $0x1724] ss:$16 sps:$4 sm:$0xff]   ;;  %v8488_v35 = vld [vmem:[%s11266_s1 + $0x172c] ss:$16 sps:$4 sm:$0xff]  }
 0x2ab   :  { %5378 = vmatpush1.bf16.msra.mxu0 %v8392_v50  ;;  %5911 = vmatpush1.bf16.msra.mxu1 %v8395_v53  ;;  %v8483_v50 = vld [vmem:[%s11266_s1 + $0x1720] ss:$16 sps:$4 sm:$0xff]   ;;  %v8486_v53 = vld [vmem:[%s11266_s1 + $0x1728] ss:$16 sps:$4 sm:$0xff]  }
 0x2ac   :  { %5379 = vmatprep.subr.bf16.mxu0 %v8400_v38  ;;  %5912 = vmatprep.subr.bf16.mxu1 %v8403_v54  ;;  %v8491_v38 = vld [vmem:[%s11266_s1 + $0x1744] ss:$16 sps:$4 sm:$0xff]   ;;  %v8494_v54 = vld [vmem:[%s11266_s1 + $0x174c] ss:$16 sps:$4 sm:$0xff]  }
 0x2af   :  { %5380 = vmatpush1.bf16.msra.mxu0 %v8398_v55  ;;  %5913 = vmatpush1.bf16.msra.mxu1 %v8401_v56  ;;  %v8489_v55 = vld [vmem:[%s11266_s1 + $0x1740] ss:$16 sps:$4 sm:$0xff]   ;;  %v8492_v56 = vld [vmem:[%s11266_s1 + $0x1748] ss:$16 sps:$4 sm:$0xff]  }
 0x2b0   :  { %5381 = vmatprep.subr.bf16.mxu0 %v8406_v47  ;;  %5914 = vmatprep.subr.bf16.mxu1 %v8409_v57  ;;  %v8497_v47 = vld [vmem:[%s11266_s1 + $0x1764] ss:$16 sps:$4 sm:$0xff]   ;;  %v8500_v57 = vld [vmem:[%s11266_s1 + $0x176c] ss:$16 sps:$4 sm:$0xff]  }
 0x2b3   :  { %5382 = vmatpush1.bf16.msra.mxu0 %v8404_v58  ;;  %5915 = vmatpush1.bf16.msra.mxu1 %v8407_v59  ;;  %v8495_v58 = vld [vmem:[%s11266_s1 + $0x1760] ss:$16 sps:$4 sm:$0xff]   ;;  %v8498_v59 = vld [vmem:[%s11266_s1 + $0x1768] ss:$16 sps:$4 sm:$0xff]  }
 0x2b4   :  { %5383 = vmatprep.subr.bf16.mxu0 %v8412_v48  ;;  %5916 = vmatprep.subr.bf16.mxu1 %v8415_v61  ;;  %v8503_v48 = vld [vmem:[%s11266_s1 + $0x1784] ss:$16 sps:$4 sm:$0xff]   ;;  %v8506_v61 = vld [vmem:[%s11266_s1 + $0x178c] ss:$16 sps:$4 sm:$0xff]  }
 0x2b7   :  { %5384 = vmatpush1.bf16.msra.mxu0 %v8410_v63  ;;  %5917 = vmatpush1.bf16.msra.mxu1 %v8413_v44  ;;  %v8501_v63 = vld [vmem:[%s11266_s1 + $0x1780] ss:$16 sps:$4 sm:$0xff]   ;;  %v8504_v44 = vld [vmem:[%s11266_s1 + $0x1788] ss:$16 sps:$4 sm:$0xff]  }
 0x2b8   :  { %5385 = vmatprep.subr.bf16.mxu0 %v8418_v1  ;;  %5918 = vmatprep.subr.bf16.mxu1 %v8421_v51  ;;  %v8509_v1 = vld [vmem:[%s11266_s1 + $0x17a4] ss:$16 sps:$4 sm:$0xff]   ;;  %v8512_v51 = vld [vmem:[%s11266_s1 + $0x17ac] ss:$16 sps:$4 sm:$0xff]  }
 0x2bb   :  { %5386 = vmatpush1.bf16.msra.mxu0 %v8416_v2  ;;  %5919 = vmatpush1.bf16.msra.mxu1 %v8419_v3  ;;  %v8507_v2 = vld [vmem:[%s11266_s1 + $0x17a0] ss:$16 sps:$4 sm:$0xff]   ;;  %v8510_v3 = vld [vmem:[%s11266_s1 + $0x17a8] ss:$16 sps:$4 sm:$0xff]  }
 0x2bc   :  { %5387 = vmatprep.subr.bf16.mxu0 %v8424_v4  ;;  %5920 = vmatprep.subr.bf16.mxu1 %v8427_v60  ;;  %v8515_v4 = vld [vmem:[%s11266_s1 + $0x17c4] ss:$16 sps:$4 sm:$0xff]   ;;  %v8518_v60 = vld [vmem:[%s11266_s1 + $0x17cc] ss:$16 sps:$4 sm:$0xff]  }
 0x2bf   :  { %5388 = vmatpush1.bf16.msra.mxu0 %v8422_v5  ;;  %5921 = vmatpush1.bf16.msra.mxu1 %v8425_v6  ;;  %v8513_v5 = vld [vmem:[%s11266_s1 + $0x17c0] ss:$16 sps:$4 sm:$0xff]   ;;  %v8516_v6 = vld [vmem:[%s11266_s1 + $0x17c8] ss:$16 sps:$4 sm:$0xff]  }
 0x2c0   :  { %5398 = vmatprep.subr.bf16.mxu0 %v8431_v7  ;;  %5931 = vmatprep.subr.bf16.mxu1 %v8434_v62  ;;  %v8521_v7 = vld [vmem:[%s11266_s1 + $0x17e4] ss:$16 sps:$4 sm:$0xff]   ;;  %v8524_v62 = vld [vmem:[%s11266_s1 + $0x17ec] ss:$16 sps:$4 sm:$0xff]  }
 0x2c2   :  { %5390 = vmatmul.mubr.bf16.vlgmr.msra.gmra.mrb[0].mxu0 %v10895_v9  ;;  %5923 = vmatmul.mubr.bf16.vlgmr.msra.gmra.mrb[0].mxu1 %v10895_v9 }
 0x2c3   :  { %5399 = vmatpush1.bf16.msra.mxu0 %v8429_v10  ;;  %5932 = vmatpush1.bf16.msra.mxu1 %v8432_v11  ;;  %v8519_v10 = vld [vmem:[%s11266_s1 + $0x17e0] ss:$16 sps:$4 sm:$0xff]   ;;  %v8522_v11 = vld [vmem:[%s11266_s1 + $0x17e8] ss:$16 sps:$4 sm:$0xff]  }
 0x2c4   :  { %5400 = vmatprep.subr.bf16.mxu0 %v8437_v12  ;;  %5933 = vmatprep.subr.bf16.mxu1 %v8440_v0  ;;  %v8527_v12 = vld [vmem:[%s11266_s1 + $0x1804] ss:$16 sps:$4 sm:$0xff]   ;;  %v8530_v0 = vld [vmem:[%s11266_s1 + $0x180c] ss:$16 sps:$4 sm:$0xff]  }
 0x2c5   :  { %5430 = vmatprep.mubr.bf16.mxu0 %v984_v52  ;;  %5963 = vmatprep.mubr.bf16.mxu1 %v984_v52  ;;  %v982_v52 = vcombine.high %v10895_v9, %v10895_v9  ;;  %v8536_v9 = vld [vmem:[%s11266_s1 + $0x182c] ss:$16 sps:$4 sm:$0xff]  }
 0x2c7   :  { %5401 = vmatpush1.bf16.msra.mxu0 %v8435_v15  ;;  %5934 = vmatpush1.bf16.msra.mxu1 %v8438_v16  ;;  %v8525_v15 = vld [vmem:[%s11266_s1 + $0x1800] ss:$16 sps:$4 sm:$0xff]   ;;  %v8528_v16 = vld [vmem:[%s11266_s1 + $0x1808] ss:$16 sps:$4 sm:$0xff]  }
 0x2c8   :  { %5402 = vmatprep.subr.bf16.mxu0 %v8443_v8  ;;  %5935 = vmatprep.subr.bf16.mxu1 %v8446_v17  ;;  %v8533_v8 = vld [vmem:[%s11266_s1 + $0x1824] ss:$16 sps:$4 sm:$0xff]   ;;  %v8531_v17 = vld [vmem:[%s11266_s1 + $0x1820] ss:$16 sps:$4 sm:$0xff]  }
 0x2cb   :  { %5403 = vmatpush1.bf16.msra.mxu0 %v8441_v18  ;;  %5936 = vmatpush1.bf16.msra.mxu1 %v8444_v19  ;;  %v8534_v18 = vld [vmem:[%s11266_s1 + $0x1828] ss:$16 sps:$4 sm:$0xff]   ;;  %v8539_v19 = vld [vmem:[%s11266_s1 + $0x1844] ss:$16 sps:$4 sm:$0xff]  }
 0x2cc   :  { %5404 = vmatprep.subr.bf16.mxu0 %v8449_v20  ;;  %5937 = vmatprep.subr.bf16.mxu1 %v8452_v22  ;;  %v8542_v20 = vld [vmem:[%s11266_s1 + $0x184c] ss:$16 sps:$4 sm:$0xff]   ;;  %v8612_v22 = vmov 0  }
 0x2cf   :  { %5405 = vmatpush1.bf16.msra.mxu0 %v8447_v23  ;;  %5938 = vmatpush1.bf16.msra.mxu1 %v8450_v24  ;;  %v8537_v23 = vld [vmem:[%s11266_s1 + $0x1840] ss:$16 sps:$4 sm:$0xff]   ;;  %v8540_v24 = vld [vmem:[%s11266_s1 + $0x1848] ss:$16 sps:$4 sm:$0xff]  }
 0x2d0   :  { %5406 = vmatprep.subr.bf16.mxu0 %v8455_v13  ;;  %5939 = vmatprep.subr.bf16.mxu1 %v8458_v27  ;;  %v8545_v13 = vld [vmem:[%s11266_s1 + $0x1864] ss:$16 sps:$4 sm:$0xff]   ;;  %v8548_v27 = vld [vmem:[%s11266_s1 + $0x186c] ss:$16 sps:$4 sm:$0xff]  }
 0x2d3   :  { %5407 = vmatpush1.bf16.msra.mxu0 %v8453_v28  ;;  %5940 = vmatpush1.bf16.msra.mxu1 %v8456_v29  ;;  %v8543_v28 = vld [vmem:[%s11266_s1 + $0x1860] ss:$16 sps:$4 sm:$0xff]   ;;  %v8546_v29 = vld [vmem:[%s11266_s1 + $0x1868] ss:$16 sps:$4 sm:$0xff]  }
 0x2d4   :  { %5408 = vmatprep.subr.bf16.mxu0 %v8461_v14  ;;  %5941 = vmatprep.subr.bf16.mxu1 %v8464_v30  ;;  %v6402_v14 = vld.sshfl [vmem:[%s11265_s0 + $0x18] sm:$0x1 pattern:$0x75316420]  ;;  %v8549_v30 = vld [vmem:[%s11268_s3 + $0x40] sm:$0xff]  }
 0x2d7   :  { %5409 = vmatpush1.bf16.msra.mxu0 %v8459_v31  ;;  %5942 = vmatpush1.bf16.msra.mxu1 %v8462_v25  ;;  %v8550_v31 = vld [vmem:[%s11268_s3 + $0xc0] sm:$0xff]   ;;  %v998_v25 = vrot.slane %v6402_v14, %v8785_v49  ;;  %v8554_v49 = vld [vmem:[%s11268_s3 + $0xc8] sm:$0xff]  }
 0x2d8   :  { %5410 = vmatprep.subr.bf16.mxu0 %v8467_v32  ;;  %5943 = vmatprep.subr.bf16.mxu1 %v8470_v33  ;;  %v8551_v32 = vld [vmem:[%s11268_s3] sm:$0xff]  }
 0x2d9   :  { %v8552_v33 = vld [vmem:[%s11268_s3 + $0x80] sm:$0xff]  }
 0x2db   :  { %5411 = vmatpush1.bf16.msra.mxu0 %v8465_v26  ;;  %5944 = vmatpush1.bf16.msra.mxu1 %v8468_v36  ;;  %v8553_v26 = vld [vmem:[%s11268_s3 + $0x48] sm:$0xff]  }
 0x2dc   :  { %5412 = vmatprep.subr.bf16.mxu0 %v8473_v37  ;;  %5945 = vmatprep.subr.bf16.mxu1 %v8476_v21  ;;  %v8555_v36 = vld [vmem:[%s11268_s3 + $0x8] sm:$0xff]   ;;  %v8557_v21 = vld [vmem:[%s11268_s3 + $0x50] sm:$0xff]  }
 0x2dd   :  { %v8556_v37 = vld [vmem:[%s11268_s3 + $0x88] sm:$0xff]  }
 0x2df   :  { %5413 = vmatpush1.bf16.msra.mxu0 %v8471_v39  ;;  %5946 = vmatpush1.bf16.msra.mxu1 %v8474_v40  ;;  %v8558_v39 = vld [vmem:[%s11268_s3 + $0xd0] sm:$0xff]  }
 0x2e0   :  { %5414 = vmatprep.subr.bf16.mxu0 %v8479_v41  ;;  %5947 = vmatprep.subr.bf16.mxu1 %v8482_v34  ;;  %v8559_v40 = vld [vmem:[%s11268_s3 + $0x10] sm:$0xff]   ;;  %v8561_v34 = vld [vmem:[%s11268_s3 + $0x58] sm:$0xff]  }
 0x2e1   :  { %v8560_v41 = vld [vmem:[%s11268_s3 + $0x90] sm:$0xff]  }
 0x2e3   :  { %5415 = vmatpush1.bf16.msra.mxu0 %v8477_v43  ;;  %5948 = vmatpush1.bf16.msra.mxu1 %v8480_v45  ;;  %v8562_v43 = vld [vmem:[%s11268_s3 + $0xd8] sm:$0xff]  }
 0x2e4   :  { %5416 = vmatprep.subr.bf16.mxu0 %v8485_v46  ;;  %5949 = vmatprep.subr.bf16.mxu1 %v8488_v35  ;;  %v8563_v45 = vld [vmem:[%s11268_s3 + $0x18] sm:$0xff]   ;;  %v8565_v35 = vld [vmem:[%s11268_s3 + $0x60] sm:$0xff]  }
 0x2e5   :  { %v8564_v46 = vld [vmem:[%s11268_s3 + $0x98] sm:$0xff]  }
 0x2e7   :  { %5417 = vmatpush1.bf16.msra.mxu0 %v8483_v50  ;;  %5950 = vmatpush1.bf16.msra.mxu1 %v8486_v53  ;;  %v8566_v50 = vld [vmem:[%s11268_s3 + $0xe0] sm:$0xff]  }
 0x2e8   :  { %5418 = vmatprep.subr.bf16.mxu0 %v8491_v38  ;;  %5951 = vmatprep.subr.bf16.mxu1 %v8494_v54  ;;  %v8567_v53 = vld [vmem:[%s11268_s3 + $0x20] sm:$0xff]   ;;  %v8569_v54 = vld [vmem:[%s11268_s3 + $0x68] sm:$0xff]  }
 0x2e9   :  { %v8568_v38 = vld [vmem:[%s11268_s3 + $0xa0] sm:$0xff]  }
 0x2eb   :  { %5419 = vmatpush1.bf16.msra.mxu0 %v8489_v55  ;;  %5952 = vmatpush1.bf16.msra.mxu1 %v8492_v56  ;;  %v8570_v55 = vld [vmem:[%s11268_s3 + $0xe8] sm:$0xff]  }
 0x2ec   :  { %5420 = vmatprep.subr.bf16.mxu0 %v8497_v47  ;;  %5953 = vmatprep.subr.bf16.mxu1 %v8500_v57  ;;  %v8571_v56 = vld [vmem:[%s11268_s3 + $0x28] sm:$0xff]   ;;  %v8573_v57 = vld [vmem:[%s11268_s3 + $0x70] sm:$0xff]  }
 0x2ed   :  { %v8572_v47 = vld [vmem:[%s11268_s3 + $0xa8] sm:$0xff]  }
 0x2ef   :  { %5421 = vmatpush1.bf16.msra.mxu0 %v8495_v58  ;;  %5954 = vmatpush1.bf16.msra.mxu1 %v8498_v59  ;;  %v8574_v58 = vld [vmem:[%s11268_s3 + $0xf0] sm:$0xff]  }
 0x2f0   :  { %5422 = vmatprep.subr.bf16.mxu0 %v8503_v48  ;;  %5955 = vmatprep.subr.bf16.mxu1 %v8506_v61  ;;  %v8575_v59 = vld [vmem:[%s11268_s3 + $0x30] sm:$0xff]   ;;  %v8577_v61 = vld [vmem:[%s11268_s3 + $0x78] sm:$0xff]  }
 0x2f1   :  { %v8576_v48 = vld [vmem:[%s11268_s3 + $0xb0] sm:$0xff]  }
 0x2f3   :  { %5423 = vmatpush1.bf16.msra.mxu0 %v8501_v63  ;;  %5956 = vmatpush1.bf16.msra.mxu1 %v8504_v44  ;;  %v8578_v63 = vld [vmem:[%s11268_s3 + $0xf8] sm:$0xff]  }
 0x2f4   :  { %5424 = vmatprep.subr.bf16.mxu0 %v8509_v1  ;;  %5957 = vmatprep.subr.bf16.mxu1 %v8512_v51  ;;  %v8579_v44 = vld [vmem:[%s11268_s3 + $0x38] sm:$0xff]   ;;  %v816_v51 = vsub.s32 0, %v8767_v42 }
 0x2f5   :  { %v8580_v1 = vld [vmem:[%s11268_s3 + $0xb8] sm:$0xff]  }
 0x2f7   :  { %5425 = vmatpush1.bf16.msra.mxu0 %v8507_v2  ;;  %5958 = vmatpush1.bf16.msra.mxu1 %v8510_v3  ;;  %v824_v2 = vsub.s32 2, %v8767_v42  ;;  %v812_v3 = vld [vmem:[%s11267_s2] sm:$0xf] }
 0x2f8   :  { %5426 = vmatprep.subr.bf16.mxu0 %v8515_v4  ;;  %5959 = vmatprep.subr.bf16.mxu1 %v8518_v60  ;;  %v820_v4 = vsub.s32 1, %v8767_v42  ;;  %v828_v60 = vsub.s32 3, %v8767_v42 }
 0x2fb   :  { %5427 = vmatpush1.bf16.msra.mxu0 %v8513_v5  ;;  %5960 = vmatpush1.bf16.msra.mxu1 %v8516_v6  ;;  %v817_v5 = vrot.slane %v812_v3, %v816_v51  ;;  %v825_v6 = vrot.slane %v812_v3, %v824_v2 }
 0x2fc   :  { %5428 = vmatprep.subr.bf16.mxu0 %v8521_v7  ;;  %5961 = vmatprep.subr.bf16.mxu1 %v8524_v62  ;;  %v821_v7 = vrot.slane %v812_v3, %v820_v4  ;;  %v829_v62 = vrot.slane %v812_v3, %v828_v60 }
 0x2ff   :  { %5429 = vmatpush1.bf16.msra.mxu0 %v8519_v10  ;;  %5962 = vmatpush1.bf16.msra.mxu1 %v8522_v11 }
 0x300   :  { %5439 = vmatprep.subr.bf16.mxu0 %v8527_v12  ;;  %5972 = vmatprep.subr.bf16.mxu1 %v8530_v0 }
 0x302   :  { %5431 = vmatmul.mubr.bf16.vlgmr.msra.gmra.mrb[0].mxu0 %v982_v52  ;;  %5964 = vmatmul.mubr.bf16.vlgmr.msra.gmra.mrb[0].mxu1 %v982_v52 }
 0x303   :  { %5440 = vmatpush1.bf16.msra.mxu0 %v8525_v15  ;;  %5973 = vmatpush1.bf16.msra.mxu1 %v8528_v16 }
 0x304   :  { %5441 = vmatprep.subr.bf16.mxu0 %v8533_v8  ;;  %5974 = vmatprep.subr.bf16.mxu1 %v8536_v9 }
 0x305   :  { %5471 = vmatprep.mubr.bf16.mxu0 %v8612_v22  ;;  %6004 = vmatprep.mubr.bf16.mxu1 %v8612_v22 }
 0x307   :  { %5442 = vmatpush1.bf16.msra.mxu0 %v8531_v17  ;;  %5975 = vmatpush1.bf16.msra.mxu1 %v8534_v18 }
 0x308   :  { %5443 = vmatprep.subr.bf16.mxu0 %v8539_v19  ;;  %5976 = vmatprep.subr.bf16.mxu1 %v8542_v20 }
 0x30b   :  { %5444 = vmatpush1.bf16.msra.mxu0 %v8537_v23  ;;  %5977 = vmatpush1.bf16.msra.mxu1 %v8540_v24 }
 0x30c   :  { %5445 = vmatprep.subr.bf16.mxu0 %v8545_v13  ;;  %5978 = vmatprep.subr.bf16.mxu1 %v8548_v27 }
 0x30f   :  { %5446 = vmatpush1.bf16.msra.mxu0 %v8543_v28  ;;  %5979 = vmatpush1.bf16.msra.mxu1 %v8546_v29 }
 0x310   :  { %7222 = vmatprep.subr.bf16.mxu0 %v8549_v30  ;;  %7244 = vmatprep.subr.bf16.mxu1 %v8550_v31  ;;  %v7189_v30 = vld [vmem:[%s11269_s4] ss:$0 sm:$0xff] }
 0x312   :  { %7187 = vmatmul.mubr.msk.bf16.vlgmr.msra.gmra.mrb[0].mxu0 %vm4943_vm0, %v998_v25  ;;  %7188 = vmatmul.mubr.msk.bf16.vlgmr.msra.gmra.mrb[0].mxu1 %vm4943_vm0, %v998_v25 }
 0x313   :  { %7223 = vmatpush3.bf16.msra.mxu0 %v8551_v32  ;;  %7245 = vmatpush3.bf16.msra.mxu1 %v8552_v33 }
 0x314   :  { %7224 = vmatprep.subr.bf16.mxu0 %v8553_v26  ;;  %7246 = vmatprep.subr.bf16.mxu1 %v8554_v49 }
 0x317   :  { %7225 = vmatpush3.bf16.msra.mxu0 %v8555_v36  ;;  %7247 = vmatpush3.bf16.msra.mxu1 %v8556_v37 }
 0x318   :  { %7226 = vmatprep.subr.bf16.mxu0 %v8557_v21  ;;  %7248 = vmatprep.subr.bf16.mxu1 %v8558_v39 }
 0x31b   :  { %7227 = vmatpush3.bf16.msra.mxu0 %v8559_v40  ;;  %7249 = vmatpush3.bf16.msra.mxu1 %v8560_v41 }
 0x31c   :  { %7228 = vmatprep.subr.bf16.mxu0 %v8561_v34  ;;  %7250 = vmatprep.subr.bf16.mxu1 %v8562_v43 }
 0x31f   :  { %7229 = vmatpush3.bf16.msra.mxu0 %v8563_v45  ;;  %7251 = vmatpush3.bf16.msra.mxu1 %v8564_v46 }
 0x320   :  { %7230 = vmatprep.subr.bf16.mxu0 %v8565_v35  ;;  %7252 = vmatprep.subr.bf16.mxu1 %v8566_v50 }
 0x323   :  { %7231 = vmatpush3.bf16.msra.mxu0 %v8567_v53  ;;  %7253 = vmatpush3.bf16.msra.mxu1 %v8568_v38 }
 0x324   :  { %7232 = vmatprep.subr.bf16.mxu0 %v8569_v54  ;;  %7254 = vmatprep.subr.bf16.mxu1 %v8570_v55 }
 0x327   :  { %7233 = vmatpush3.bf16.msra.mxu0 %v8571_v56  ;;  %7255 = vmatpush3.bf16.msra.mxu1 %v8572_v47 }
 0x328   :  { %7234 = vmatprep.subr.bf16.mxu0 %v8573_v57  ;;  %7256 = vmatprep.subr.bf16.mxu1 %v8574_v58 }
 0x32b   :  { %7235 = vmatpush3.bf16.msra.mxu0 %v8575_v59  ;;  %7257 = vmatpush3.bf16.msra.mxu1 %v8576_v48 }
 0x32c   :  { %7236 = vmatprep.subr.bf16.mxu0 %v8577_v61  ;;  %7258 = vmatprep.subr.bf16.mxu1 %v8578_v63 }
 0x32f   :  { %7237 = vmatpush3.bf16.msra.mxu0 %v8579_v44  ;;  %7259 = vmatpush3.bf16.msra.mxu1 %v8580_v1 }
 0x3e5   :  { %v5473_v10 = vpop.f32.mrb[0].mxu0  ;;  %v6006_v11 = vpop.f32.mrb[0].mxu1 }
 0x3e6   :  { %v7266_v12 = vadd.f32 %v5473_v10, %v817_v5  ;;  %v7268_v0 = vadd.f32 %v6006_v11, %v825_v6  ;;  %v5475_v52 = vpop.f32.mrb[1].mxu0  ;;  %v6008_v15 = vpop.f32.mrb[1].mxu1 }
 0x3e7   :  { %v7267_v16 = vadd.f32 %v5475_v52, %v821_v7  ;;  %v7269_v8 = vadd.f32 %v6008_v15, %v829_v62  ;;  %v5477_v9 = vpop.f32.mrb[2].mxu0  ;;  %v6010_v17 = vpop.f32.mrb[2].mxu1 }
 0x3e8   :  { %v6013_v18 = vmax.f32 %v7266_v12, 0.0  ;;  %v6015_v19 = vmax.f32 %v7268_v0, 0.0  ;;  %v5478_v20 = vpop.f32.mrb[3].mxu0  ;;  %v6011_v22 = vpop.f32.mrb[3].mxu1 }
 0x3e9   :  { %v6014_v23 = vmax.f32 %v7267_v16, 0.0  ;;  %v6016_v42 = vmax.f32 %v7269_v8, 0.0 }
 0x3ea   :  { %v6017_v27 = vpack.c.bf16 %v6013_v18, %v6013_v18  ;;  %v6019_v28 = vpack.c.bf16 %v6015_v19, %v6015_v19 }
 0x3eb   :  { %v6018_v24 = vpack.c.bf16 %v6014_v23, %v6014_v23  ;;  %v6020_v13 = vpack.c.bf16 %v6016_v42, %v6016_v42 }
 0x3ed   :  { %6316 = vmatprep.mubr.bf16.mxu0 %v6018_v24  ;;  %6356 = vmatprep.mubr.bf16.mxu1 %v6020_v13 }
 0x3ee   :  { %6317 = vmatmul.mubr.bf16.vlgmr.msra.gmra.mrb[4].mxu0 %v6017_v27  ;;  %6357 = vmatmul.mubr.bf16.vlgmr.msra.gmra.mrb[4].mxu1 %v6019_v28 }
 0x4c1   :  { %v7238_v29 = vpop.f32.mrb[4].mxu0  ;;  %v7260_v14 = vpop.f32.mrb[4].mxu1 }
 0x4c2   :  { %v7239_v31 = vpop.f32.mrb[5].mxu0  ;;  %v7261_v25 = vpop.f32.mrb[5].mxu1 }
 0x4c3   :  { %v7240_v32 = vadd.f32 %v7239_v31, %v7238_v29  ;;  %v7262_v33 = vadd.f32 %v7261_v25, %v7260_v14  ;;  %v7241_v26 = vpop.f32.mrb[6].mxu0  ;;  %v7263_v49 = vpop.f32.mrb[6].mxu1 }
 0x4c4   :  { %v7242_v36 = vpop.f32.mrb[7].mxu0  ;;  %v7264_v37 = vpop.f32.mrb[7].mxu1 }
 0x4c5   :  { %v6319_v21 = vadd.f32 %v7240_v32, %v7189_v30 }
 0x4c7   :  { %v6359_v39 = vadd.f32 %v7262_v33, %v6319_v21 }
 0x4c9   :  { %6365 = vrot.lane.b32.xlu1 %v6359_v39, %s8613_s27  ;;  %v6371_v40 = vsel %vm6370_vm1, %v6359_v39, -inf }
 0x4ca   :  { %6372 = vmax.xlane.f32.xlu0 %v6371_v40 }
 0x53b   :  { %v6366_v41 = vpop.permute.xlu1 %6365 }
 0x53c   :  { %6369 = vst.msk [vmem:[%s11270_s5] sm:$0x3] %vm6368_vm2, %v6366_v41 }
 0x557   :  { %v6373_v34 = vpop.xlane.xlu0 %6372 }
 0x558   :  { %v6374_v43 = vsub.f32 %v6359_v39, %v6373_v34 }
 0x55a   :  { %v6375_v45 = vmul.f32 1.442695, %v6374_v43 }
 0x55c   :  { %8581 = vpow2.f32 %v6375_v45 }
 0x566   :  { %v8582_v46 = vpop.eup %8581 }
 0x567   :  { %v6377_v35 = vsel %vm6370_vm1, %v8582_v46, 0.0 }
 0x568   :  { %6378 = vadd.xlane.f32.xlu0 %v6377_v35 }
 0x5f5   :  { %v6379_v50 = vpop.xlane.xlu0 %6378 }
 0x5f6   :  { %8583 = vlog2.f32 %v6379_v50 }
 0x600   :  { %v8584_v53 = vpop.eup %8583 }
 0x601   :  { %v6381_v38 = vmul.f32 0.6931472, %v8584_v53 }
 0x603   :  { %v6382_v54 = vsub.f32 %v6374_v43, %v6381_v38 }
 0x605   :  { %6383 = vst.msk [vmem:[#allocation2] sm:$0x3] %vm6370_vm1, %v6382_v54 }
 0x606   :  { %8598 = shalt.err (!%p8595_p4)
}
 0x607   :  { %s8599_s9 = scalar_lea.hbm %s11271_s6, 32 }
 0x608   :  { %p8600_p5 = scmp.ne.s32.totalorder %s11271_s6, %s8599_s9  ;;  %p8603_p6 = scmp.lt.u32.totalorder %s8599_s9, %s11271_s6 }
 0x60a   :  { %p8605_p7 = pnand %p8603_p6, %p8600_p5 }
 0x60c   :  { %8608 = shalt.err (!%p8605_p7)
}
 0x60d   :  { %6395 = dma.vmem_to_hbm [thread:$0]  %s6393_s30, 32, %s11271_s6, [#allocation3]  }
 0x60e   :  { %8609 = dma.done.wait [#allocation3], 32  }
 0x60f   :  { %8610 = vsyncadd [#allocation3], 4294967264 }
 0x610   :  { %6401 = vsyncpa [#allocation3], 1 }

</bundles_post_ra>
